<compile_context>
chip_gen: v6e
topology: v6e:2x2x1
jax: 0.10.0
libtpu: 0.0.40
codegen_flags: <defaults>
</compile_context>

<pallas_src>
import math
import functools

import jax
import jax.numpy as jnp
from jax.experimental import pallas as pl
from jax.experimental.pallas import tpu as pltpu

# ---------------- configuration (small demo shapes) ----------------
VOCAB_SIZE = 128
NUM_LAYERS = 2
UNITS      = 64
D_MODEL    = 32
NUM_HEADS  = 8
BATCH      = 2
SEQ        = 8      # decoder sequence length
ENC_SEQ    = 8      # encoder sequence length

LAYER_PARAM_KEYS = (
    "w_qkv1", "b_qkv1", "w_o1", "b_o1",
    "w_q2", "b_q2", "w_kv2", "b_kv2", "w_o2", "b_o2",
    "ln_g", "ln_b",
    "w_f1", "b_f1", "w_f2", "b_f2",
)


# ---------------- the fused kernel ----------------
def decoder_chat_kernel(
    ids_ref, emb_ref, pe_ref, enc_ref,
    m_self_ref, m_cross_ref,
    rt_self_ref, seg_self_ref, hm_self_ref,
    rt_cross_ref, seg_cross_ref, hm_cross_ref,
    w_qkv1_ref, b_qkv1_ref, w_o1_ref, b_o1_ref,
    w_q2_ref, b_q2_ref, w_kv2_ref, b_kv2_ref, w_o2_ref, b_o2_ref,
    ln_g_ref, ln_b_ref, w_f1_ref, b_f1_ref, w_f2_ref, b_f2_ref,
    out_ref,
    *, num_layers, d_model, batch, seq,
):
    D = d_model
    N = batch * seq
    vocab = emb_ref.shape[0]

    # ---- embedding gather as a one-hot MXU matmul (no XLA gather op) ----
    onehot = (jax.lax.broadcasted_iota(jnp.int32, (N, vocab), 1)
              == ids_ref[...]).astype(jnp.float32)                      # (N, VOCAB)
    x = jnp.dot(onehot, emb_ref[...],
                preferred_element_type=jnp.float32) * math.sqrt(D)      # (N, D)
    # sinusoidal PE rows 0..S-1 replicated over the batch (sublane concat)
    pe_s = pe_ref[0:seq, :]
    x = x + jnp.concatenate([pe_s] * batch, axis=0)
    # TODO(synk): nn.Dropout (top-level and per-layer) is identity in eval mode.

    enc = enc_ref[...]                                                  # (Ne, D)
    m_self = m_self_ref[...]                                            # (N, H*N)  additive, head-tiled
    m_cross = m_cross_ref[...]                                          # (N, H*Ne) additive, head-tiled
    rt_s, seg_s, hm_s = rt_self_ref[...], seg_self_ref[...], hm_self_ref[...]
    rt_c, seg_c, hm_c = rt_cross_ref[...], seg_cross_ref[...], hm_cross_ref[...]

    def layer_norm(a, g, b, eps=1e-6):
        # eps=1e-6 (TF-style chatbot); PyTorch nn.LayerNorm default is 1e-5.
        mu = jnp.mean(a, axis=-1, keepdims=True)
        d = a - mu
        var = jnp.mean(d * d, axis=-1, keepdims=True)                   # centered (no cancellation)
        return d * jax.lax.rsqrt(var + eps) * g + b

    def mha(q2d, kv2d, mask_add, rt, seg, hm2, wo, bo):
        """Lane-dense multi-head attention.

        kv2d : (Nk, 2D) packed [K | V] projection.
        rt   : (H*Nk, Nk)  replication matrix (tiled identity).
        hm2  : (H*Nk, 2D)  0/1 head-lane selector for [K | V]; the K half is
               pre-scaled by 1/sqrt(dh), so no explicit score scaling here.
        seg  : (H*Nk, H*Nk) block-diag ones -> per-head softmax sums via matmul.
        """
        kv_exp = jnp.dot(rt, kv2d, preferred_element_type=jnp.float32) * hm2   # (H*Nk, 2D)
        k_exp = kv_exp[:, 0:D]                                                  # (H*Nk, D)
        v_exp = kv_exp[:, D:2 * D]                                              # (H*Nk, D)

        # scores: one lane-dense matmul, all H*Nk lanes used
        s = jnp.einsum("qd,jd->qj", q2d, k_exp,
                       preferred_element_type=jnp.float32) + mask_add           # (Nq, H*Nk)
        # per-row max is a valid per-head stabilizer (same constant within each
        # head segment) -> exact per-head softmax, no (Nq,H,Nk) reshape needed.
        s = s - jnp.max(s, axis=-1, keepdims=True)
        p = jnp.exp(s)
        denom = jnp.dot(p, seg, preferred_element_type=jnp.float32)             # per-head sums, lane-broadcast
        p = p * pl.reciprocal(denom, approx=True)
        # context: head-summed, lane-packed (= concat of heads) in one matmul
        ctx = jnp.dot(p, v_exp, preferred_element_type=jnp.float32)             # (Nq, D)
        return jnp.dot(ctx, wo, preferred_element_type=jnp.float32) + bo

    # ---- decoder layers (static unroll; num_layers is a compile-time const) ----
    for l in range(num_layers):
        lg = ln_g_ref[l]                                                # (3, D)
        lb = ln_b_ref[l]

        # masked self-attention + add&norm (fused QKV projection)
        qkv = jnp.dot(x, w_qkv1_ref[l],
                      preferred_element_type=jnp.float32) + b_qkv1_ref[l]       # (N, 3D)
        attn1 = mha(qkv[:, 0:D], qkv[:, D:3 * D], m_self,
                    rt_s, seg_s, hm_s, w_o1_ref[l], b_o1_ref[l])
        x1 = layer_norm(attn1 + x, lg[0:1], lb[0:1])

        # encoder-decoder cross-attention + add&norm (fused KV projection)
        q2 = jnp.dot(x1, w_q2_ref[l],
                     preferred_element_type=jnp.float32) + b_q2_ref[l]          # (N, D)
        kv2 = jnp.dot(enc, w_kv2_ref[l],
                      preferred_element_type=jnp.float32) + b_kv2_ref[l]        # (Ne, 2D)
        attn2 = mha(q2, kv2, m_cross, rt_c, seg_c, hm_c, w_o2_ref[l], b_o2_ref[l])
        x2 = layer_norm(attn2 + x1, lg[1:2], lb[1:2])

        # position-wise feed-forward + add&norm
        hid = jnp.maximum(
            jnp.dot(x2, w_f1_ref[l],
                    preferred_element_type=jnp.float32) + b_f1_ref[l], 0.0)
        ffn = jnp.dot(hid, w_f2_ref[l],
                      preferred_element_type=jnp.float32) + b_f2_ref[l]
        x = layer_norm(ffn + x2, lg[2:3], lb[2:3])

    out_ref[...] = x


# ---------------- shape-only constants (constant-folded at trace time) ----------------
def _mha_constants(num_keys, num_heads, d_model):
    """Replication matrix, per-head segment-sum matrix, head-lane mask."""
    H, D, Nk = num_heads, d_model, num_keys
    dh = D // H
    j = jnp.arange(H * Nk)
    rt = jnp.tile(jnp.eye(Nk, dtype=jnp.float32), (H, 1))                       # (H*Nk, Nk)
    seg = (j[:, None] // Nk == j[None, :] // Nk).astype(jnp.float32)            # (H*Nk, H*Nk)
    hm = (jnp.arange(D)[None, :] // dh == j[:, None] // Nk).astype(jnp.float32) # (H*Nk, D)
    # fold the 1/sqrt(dh) score scale into the K half of the [K|V] lane mask
    hm2 = jnp.concatenate([hm * (1.0 / math.sqrt(dh)), hm], axis=1)             # (H*Nk, 2D)
    return rt, seg, hm2


def _batch_block_pattern(B, rows_per_batch, cols_per_batch):
    """(B*R, B*C) additive pattern: 0 within a batch's diagonal block, -1e9 elsewhere."""
    bq = jnp.arange(B * rows_per_batch) // rows_per_batch
    bk = jnp.arange(B * cols_per_batch) // cols_per_batch
    return jnp.where(bq[:, None] == bk[None, :], 0.0, -1e9).astype(jnp.float32)


# ---------------- wrapper ----------------
def decoder_chat_forward(params, inputs, enc_outputs, look_ahead_mask, padding_mask):
    B, S = inputs.shape
    Se = enc_outputs.shape[1]
    D = params["embedding"].shape[1]
    H = NUM_HEADS
    L = params["layers"]["w_qkv1"].shape[0]
    N, Ne = B * S, B * Se

    ids = inputs.reshape(N, 1).astype(jnp.int32)
    enc2d = enc_outputs.astype(jnp.float32).reshape(Ne, D)

    # Batch-block-diagonal additive masks (no Python DUS loop), pre-tiled per
    # head to the lane-dense (N, H*Nk) layout the kernel consumes directly.
    if look_ahead_mask.ndim == 3:
        look_ahead_mask = look_ahead_mask[0]          # causal mask is batch-invariant
    m_self = (jnp.tile(look_ahead_mask.astype(jnp.float32), (B, B))
              + _batch_block_pattern(B, S, S))                                   # (N, N)
    m_cross = (jnp.tile(padding_mask.astype(jnp.float32).reshape(N, Se), (1, B))
               + _batch_block_pattern(B, S, Se))                                 # (N, Ne)
    m_self_h = jnp.tile(m_self, (1, H))                                          # (N, H*N)
    m_cross_h = jnp.tile(m_cross, (1, H))                                        # (N, H*Ne)

    rt_s, seg_s, hm_s = _mha_constants(N, H, D)       # self-attention constants
    rt_c, seg_c, hm_c = _mha_constants(Ne, H, D)      # cross-attention constants

    n_inputs = 12 + len(LAYER_PARAM_KEYS)
    out2d = pl.pallas_call(
        functools.partial(decoder_chat_kernel,
                          num_layers=L, d_model=D, batch=B, seq=S),
        out_shape=jax.ShapeDtypeStruct((N, D), jnp.float32),
        in_specs=[pl.BlockSpec(memory_space=pltpu.MemorySpace.VMEM)] * n_inputs,
        out_specs=pl.BlockSpec(memory_space=pltpu.MemorySpace.VMEM),
    )(ids, params["embedding"], params["pe"], enc2d,
      m_self_h, m_cross_h,
      rt_s, seg_s, hm_s, rt_c, seg_c, hm_c,
      *[params["layers"][k] for k in LAYER_PARAM_KEYS])
    return out2d.reshape(B, S, D)


# ---------------- parameter construction (deterministic, synthetic) ----------------
def _linear_init(key, fan_in, fan_out):
    kw, kb = jax.random.split(key)
    bound = 1.0 / math.sqrt(fan_in)
    w = jax.random.uniform(kw, (fan_in, fan_out), jnp.float32, -bound, bound)
    b = jax.random.uniform(kb, (1, fan_out), jnp.float32, -bound, bound)
    return w, b


def init_layer_params(key, d_model, units):
    ks = jax.random.split(key, 10)
    wq1, bq1 = _linear_init(ks[0], d_model, d_model)
    wk1, bk1 = _linear_init(ks[1], d_model, d_model)
    wv1, bv1 = _linear_init(ks[2], d_model, d_model)
    wo1, bo1 = _linear_init(ks[3], d_model, d_model)
    wq2, bq2 = _linear_init(ks[4], d_model, d_model)
    wk2, bk2 = _linear_init(ks[5], d_model, d_model)
    wv2, bv2 = _linear_init(ks[6], d_model, d_model)
    wo2, bo2 = _linear_init(ks[7], d_model, d_model)
    wf1, bf1 = _linear_init(ks[8], d_model, units)
    wf2, bf2 = _linear_init(ks[9], units, d_model)
    return {
        "w_qkv1": jnp.concatenate([wq1, wk1, wv1], axis=1),   # (D, 3D) fused QKV
        "b_qkv1": jnp.concatenate([bq1, bk1, bv1], axis=1),   # (1, 3D)
        "w_o1": wo1, "b_o1": bo1,
        "w_q2": wq2, "b_q2": bq2,
        "w_kv2": jnp.concatenate([wk2, wv2], axis=1),         # (D, 2D) fused KV
        "b_kv2": jnp.concatenate([bk2, bv2], axis=1),
        "w_o2": wo2, "b_o2": bo2,
        "ln_g": jnp.ones((3, d_model), jnp.float32),          # 3 LayerNorms per layer
        "ln_b": jnp.zeros((3, d_model), jnp.float32),
        "w_f1": wf1, "b_f1": bf1, "w_f2": wf2, "b_f2": bf2,
    }


def make_positional_encoding(max_len, d_model):
    pos = jnp.arange(max_len, dtype=jnp.float32)[:, None]
    div = jnp.exp(jnp.arange(0, d_model, 2, dtype=jnp.float32)
                  * (-math.log(10000.0) / d_model))
    pe = jnp.zeros((max_len, d_model), jnp.float32)
    pe = pe.at[:, 0::2].set(jnp.sin(pos * div))
    pe = pe.at[:, 1::2].set(jnp.cos(pos * div))
    return pe                    # (max_len, d_model)


def init_params(key):
    k_emb, k_layers = jax.random.split(key)
    per_layer = [init_layer_params(k, D_MODEL, UNITS)
                 for k in jax.random.split(k_layers, NUM_LAYERS)]
    layers = {k: jnp.stack([lp[k] for lp in per_layer]) for k in LAYER_PARAM_KEYS}
    return {
        "embedding": jax.random.normal(k_emb, (VOCAB_SIZE, D_MODEL), jnp.float32),
        "pe": make_positional_encoding(VOCAB_SIZE, D_MODEL),
        "layers": layers,
    }


# ---------------- demo ----------------
if __name__ == "__main__":
    key = jax.random.PRNGKey(0)
    k_params, k_tok, k_enc = jax.random.split(key, 3)

    params = init_params(k_params)
    inputs = jax.random.randint(k_tok, (BATCH, SEQ), 0, VOCAB_SIZE)            # token ids
    enc_outputs = jax.random.normal(k_enc, (BATCH, ENC_SEQ, D_MODEL), jnp.float32)

    # additive masks: 0 = attend, -1e9 = masked
    causal = jnp.tril(jnp.ones((SEQ, SEQ), jnp.float32))
    look_ahead_mask = jnp.where(causal == 0, -1e9, 0.0).astype(jnp.float32)    # (S, S)
    padding_mask = jnp.zeros((BATCH, SEQ, ENC_SEQ), jnp.float32)               # no padding

    fwd = jax.jit(decoder_chat_forward)
    out = fwd(params, inputs, enc_outputs, look_ahead_mask, padding_mask)
    jax.block_until_ready(out)
    assert out.shape == (BATCH, SEQ, D_MODEL)
    assert bool(jnp.all(jnp.isfinite(out)))
    print("KERNEL_OK")
</pallas_src>

<mosaic_0001>
module attributes {stable_mosaic.version = 11 : i64} {
  func.func @decoder_chat_kernel(%arg0: memref<16x1xi32, #tpu.memory_space<vmem>>, %arg1: memref<128x32xf32, #tpu.memory_space<vmem>>, %arg2: memref<128x32xf32, #tpu.memory_space<vmem>>, %arg3: memref<16x32xf32, #tpu.memory_space<vmem>>, %arg4: memref<16x128xf32, #tpu.memory_space<vmem>>, %arg5: memref<16x128xf32, #tpu.memory_space<vmem>>, %arg6: memref<128x16xf32, #tpu.memory_space<vmem>>, %arg7: memref<128x128xf32, #tpu.memory_space<vmem>>, %arg8: memref<128x64xf32, #tpu.memory_space<vmem>>, %arg9: memref<128x16xf32, #tpu.memory_space<vmem>>, %arg10: memref<128x128xf32, #tpu.memory_space<vmem>>, %arg11: memref<128x64xf32, #tpu.memory_space<vmem>>, %arg12: memref<2x32x96xf32, #tpu.memory_space<vmem>>, %arg13: memref<2x1x96xf32, #tpu.memory_space<vmem>>, %arg14: memref<2x32x32xf32, #tpu.memory_space<vmem>>, %arg15: memref<2x1x32xf32, #tpu.memory_space<vmem>>, %arg16: memref<2x32x32xf32, #tpu.memory_space<vmem>>, %arg17: memref<2x1x32xf32, #tpu.memory_space<vmem>>, %arg18: memref<2x32x64xf32, #tpu.memory_space<vmem>>, %arg19: memref<2x1x64xf32, #tpu.memory_space<vmem>>, %arg20: memref<2x32x32xf32, #tpu.memory_space<vmem>>, %arg21: memref<2x1x32xf32, #tpu.memory_space<vmem>>, %arg22: memref<2x3x32xf32, #tpu.memory_space<vmem>>, %arg23: memref<2x3x32xf32, #tpu.memory_space<vmem>>, %arg24: memref<2x32x64xf32, #tpu.memory_space<vmem>>, %arg25: memref<2x1x64xf32, #tpu.memory_space<vmem>>, %arg26: memref<2x64x32xf32, #tpu.memory_space<vmem>>, %arg27: memref<2x1x32xf32, #tpu.memory_space<vmem>>, %arg28: memref<16x32xf32, #tpu.memory_space<vmem>>) attributes {dimension_semantics = [], scalar_prefetch = 0 : i64, scratch_operands = 0 : i64, tpu.core_type = #tpu.core_type<tc>} {
    %0 = tpu.iota {dimensions = array<i32: 1>} : vector<16x128xi32>
    %c0 = arith.constant 0 : index
    %c0_0 = arith.constant 0 : index
    %1 = vector.load %arg0[%c0, %c0_0] : memref<16x1xi32, #tpu.memory_space<vmem>>, vector<16x1xi32>
    %2 = vector.broadcast %1 : vector<16x1xi32> to vector<16x128xi32>
    %3 = arith.cmpi eq, %0, %2 : vector<16x128xi32>
    %4 = arith.extui %3 : vector<16x128xi1> to vector<16x128xi32>
    %5 = arith.sitofp %4 : vector<16x128xi32> to vector<16x128xf32>
    %c0_1 = arith.constant 0 : index
    %c0_2 = arith.constant 0 : index
    %6 = vector.load %arg1[%c0_1, %c0_2] : memref<128x32xf32, #tpu.memory_space<vmem>>, vector<128x32xf32>
    %cst = arith.constant dense<0.000000e+00> : vector<16x32xf32>
    %7 = tpu.matmul %5, %6, %cst {dimension_numbers = #tpu.dot_dimension_numbers<[1], [0], [0], [1], [0, 0, 1, 1], [], []>} : vector<16x128xf32>, vector<128x32xf32>, vector<16x32xf32> -> vector<16x32xf32>
    %cst_3 = arith.constant 5.65685415 : f32
    %8 = vector.broadcast %cst_3 : f32 to vector<16x32xf32>
    %9 = arith.mulf %7, %8 : vector<16x32xf32>
    %c0_4 = arith.constant 0 : index
    %c0_5 = arith.constant 0 : index
    %10 = vector.load %arg2[%c0_4, %c0_5] : memref<128x32xf32, #tpu.memory_space<vmem>>, vector<8x32xf32>
    %11 = tpu.concatenate %10, %10 in 0 : vector<8x32xf32>, vector<8x32xf32> -> vector<16x32xf32>
    %12 = arith.addf %9, %11 : vector<16x32xf32>
    %c0_6 = arith.constant 0 : index
    %c0_7 = arith.constant 0 : index
    %13 = vector.load %arg3[%c0_6, %c0_7] : memref<16x32xf32, #tpu.memory_space<vmem>>, vector<16x32xf32>
    %c0_8 = arith.constant 0 : index
    %c0_9 = arith.constant 0 : index
    %14 = vector.load %arg4[%c0_8, %c0_9] : memref<16x128xf32, #tpu.memory_space<vmem>>, vector<16x128xf32>
    %c0_10 = arith.constant 0 : index
    %c0_11 = arith.constant 0 : index
    %15 = vector.load %arg5[%c0_10, %c0_11] : memref<16x128xf32, #tpu.memory_space<vmem>>, vector<16x128xf32>
    %c0_12 = arith.constant 0 : index
    %c0_13 = arith.constant 0 : index
    %16 = vector.load %arg6[%c0_12, %c0_13] : memref<128x16xf32, #tpu.memory_space<vmem>>, vector<128x16xf32>
    %c0_14 = arith.constant 0 : index
    %c0_15 = arith.constant 0 : index
    %17 = vector.load %arg7[%c0_14, %c0_15] : memref<128x128xf32, #tpu.memory_space<vmem>>, vector<128x128xf32>
    %c0_16 = arith.constant 0 : index
    %c0_17 = arith.constant 0 : index
    %18 = vector.load %arg8[%c0_16, %c0_17] : memref<128x64xf32, #tpu.memory_space<vmem>>, vector<128x64xf32>
    %c0_18 = arith.constant 0 : index
    %c0_19 = arith.constant 0 : index
    %19 = vector.load %arg9[%c0_18, %c0_19] : memref<128x16xf32, #tpu.memory_space<vmem>>, vector<128x16xf32>
    %c0_20 = arith.constant 0 : index
    %c0_21 = arith.constant 0 : index
    %20 = vector.load %arg10[%c0_20, %c0_21] : memref<128x128xf32, #tpu.memory_space<vmem>>, vector<128x128xf32>
    %c0_22 = arith.constant 0 : index
    %c0_23 = arith.constant 0 : index
    %21 = vector.load %arg11[%c0_22, %c0_23] : memref<128x64xf32, #tpu.memory_space<vmem>>, vector<128x64xf32>
    %c0_24 = arith.constant 0 : index
    %c0_25 = arith.constant 0 : index
    %c0_26 = arith.constant 0 : index
    %22 = vector.load %arg22[%c0_24, %c0_25, %c0_26] : memref<2x3x32xf32, #tpu.memory_space<vmem>>, vector<1x3x32xf32>
    %23 = vector.shape_cast %22 : vector<1x3x32xf32> to vector<3x32xf32>
    %c0_27 = arith.constant 0 : index
    %c0_28 = arith.constant 0 : index
    %c0_29 = arith.constant 0 : index
    %24 = vector.load %arg23[%c0_27, %c0_28, %c0_29] : memref<2x3x32xf32, #tpu.memory_space<vmem>>, vector<1x3x32xf32>
    %25 = vector.shape_cast %24 : vector<1x3x32xf32> to vector<3x32xf32>
    %c0_30 = arith.constant 0 : index
    %c0_31 = arith.constant 0 : index
    %c0_32 = arith.constant 0 : index
    %26 = vector.load %arg12[%c0_30, %c0_31, %c0_32] : memref<2x32x96xf32, #tpu.memory_space<vmem>>, vector<1x32x96xf32>
    %27 = vector.shape_cast %26 : vector<1x32x96xf32> to vector<32x96xf32>
    %cst_33 = arith.constant dense<0.000000e+00> : vector<16x96xf32>
    %28 = tpu.matmul %12, %27, %cst_33 {dimension_numbers = #tpu.dot_dimension_numbers<[1], [0], [0], [1], [0, 0, 1, 1], [], []>} : vector<16x32xf32>, vector<32x96xf32>, vector<16x96xf32> -> vector<16x96xf32>
    %c0_34 = arith.constant 0 : index
    %c0_35 = arith.constant 0 : index
    %c0_36 = arith.constant 0 : index
    %29 = vector.load %arg13[%c0_34, %c0_35, %c0_36] : memref<2x1x96xf32, #tpu.memory_space<vmem>>, vector<1x1x96xf32>
    %30 = vector.shape_cast %29 : vector<1x1x96xf32> to vector<1x96xf32>
    %31 = vector.broadcast %30 : vector<1x96xf32> to vector<16x96xf32>
    %32 = arith.addf %28, %31 : vector<16x96xf32>
    %33 = vector.extract_strided_slice %32 {offsets = [0, 0], sizes = [16, 32], strides = [1, 1]} : vector<16x96xf32> to vector<16x32xf32>
    %34 = vector.extract_strided_slice %32 {offsets = [0, 32], sizes = [16, 64], strides = [1, 1]} : vector<16x96xf32> to vector<16x64xf32>
    %c0_37 = arith.constant 0 : index
    %c0_38 = arith.constant 0 : index
    %c0_39 = arith.constant 0 : index
    %35 = vector.load %arg14[%c0_37, %c0_38, %c0_39] : memref<2x32x32xf32, #tpu.memory_space<vmem>>, vector<1x32x32xf32>
    %36 = vector.shape_cast %35 : vector<1x32x32xf32> to vector<32x32xf32>
    %c0_40 = arith.constant 0 : index
    %c0_41 = arith.constant 0 : index
    %c0_42 = arith.constant 0 : index
    %37 = vector.load %arg15[%c0_40, %c0_41, %c0_42] : memref<2x1x32xf32, #tpu.memory_space<vmem>>, vector<1x1x32xf32>
    %38 = vector.shape_cast %37 : vector<1x1x32xf32> to vector<1x32xf32>
    %cst_43 = arith.constant dense<0.000000e+00> : vector<128x64xf32>
    %39 = tpu.matmul %16, %34, %cst_43 {dimension_numbers = #tpu.dot_dimension_numbers<[1], [0], [0], [1], [0, 0, 1, 1], [], []>} : vector<128x16xf32>, vector<16x64xf32>, vector<128x64xf32> -> vector<128x64xf32>
    %40 = arith.mulf %39, %18 : vector<128x64xf32>
    %41 = vector.extract_strided_slice %40 {offsets = [0, 0], sizes = [128, 32], strides = [1, 1]} : vector<128x64xf32> to vector<128x32xf32>
    %42 = vector.extract_strided_slice %40 {offsets = [0, 32], sizes = [128, 32], strides = [1, 1]} : vector<128x64xf32> to vector<128x32xf32>
    "tpu.trace_start"() <{level = 10 : i32, message = "qd,jd->qj"}> : () -> ()
    %cst_44 = arith.constant dense<0.000000e+00> : vector<16x128xf32>
    %43 = tpu.matmul %33, %41, %cst_44 {dimension_numbers = #tpu.dot_dimension_numbers<[1], [1], [0], [0], [0, 0, 1, 0], [], []>} : vector<16x32xf32>, vector<128x32xf32>, vector<16x128xf32> -> vector<16x128xf32>
    "tpu.trace_stop"() : () -> ()
    %44 = arith.addf %43, %14 : vector<16x128xf32>
    %cst_45 = arith.constant dense<0xFF800000> : vector<16xf32>
    %45 = vector.multi_reduction <maximumf>, %44, %cst_45 [1] : vector<16x128xf32> to vector<16xf32>
    %46 = vector.shape_cast %45 : vector<16xf32> to vector<16x1xf32>
    %47 = vector.broadcast %46 : vector<16x1xf32> to vector<16x128xf32>
    %48 = arith.subf %44, %47 : vector<16x128xf32>
    %49 = math.exp %48 : vector<16x128xf32>
    %cst_46 = arith.constant dense<0.000000e+00> : vector<16x128xf32>
    %50 = tpu.matmul %49, %17, %cst_46 {dimension_numbers = #tpu.dot_dimension_numbers<[1], [0], [0], [1], [0, 0, 1, 1], [], []>} : vector<16x128xf32>, vector<128x128xf32>, vector<16x128xf32> -> vector<16x128xf32>
    %51 = tpu.reciprocal %50 {approx = true} : vector<16x128xf32> -> vector<16x128xf32>
    %52 = arith.mulf %49, %51 : vector<16x128xf32>
    %cst_47 = arith.constant dense<0.000000e+00> : vector<16x32xf32>
    %53 = tpu.matmul %52, %42, %cst_47 {dimension_numbers = #tpu.dot_dimension_numbers<[1], [0], [0], [1], [0, 0, 1, 1], [], []>} : vector<16x128xf32>, vector<128x32xf32>, vector<16x32xf32> -> vector<16x32xf32>
    %cst_48 = arith.constant dense<0.000000e+00> : vector<16x32xf32>
    %54 = tpu.matmul %53, %36, %cst_48 {dimension_numbers = #tpu.dot_dimension_numbers<[1], [0], [0], [1], [0, 0, 1, 1], [], []>} : vector<16x32xf32>, vector<32x32xf32>, vector<16x32xf32> -> vector<16x32xf32>
    %55 = vector.broadcast %38 : vector<1x32xf32> to vector<16x32xf32>
    %56 = arith.addf %54, %55 : vector<16x32xf32>
    %57 = arith.addf %56, %12 : vector<16x32xf32>
    %58 = vector.extract_strided_slice %23 {offsets = [0, 0], sizes = [1, 32], strides = [1, 1]} : vector<3x32xf32> to vector<1x32xf32>
    %59 = vector.extract_strided_slice %25 {offsets = [0, 0], sizes = [1, 32], strides = [1, 1]} : vector<3x32xf32> to vector<1x32xf32>
    %cst_49 = arith.constant dense<0.000000e+00> : vector<16xf32>
    %60 = vector.multi_reduction <add>, %57, %cst_49 [1] : vector<16x32xf32> to vector<16xf32>
    %61 = vector.shape_cast %60 : vector<16xf32> to vector<16x1xf32>
    %cst_50 = arith.constant 3.200000e+01 : f32
    %62 = vector.broadcast %cst_50 : f32 to vector<16x1xf32>
    %63 = arith.divf %61, %62 : vector<16x1xf32>
    %64 = vector.broadcast %63 : vector<16x1xf32> to vector<16x32xf32>
    %65 = arith.subf %57, %64 : vector<16x32xf32>
    %66 = arith.mulf %65, %65 : vector<16x32xf32>
    %cst_51 = arith.constant dense<0.000000e+00> : vector<16xf32>
    %67 = vector.multi_reduction <add>, %66, %cst_51 [1] : vector<16x32xf32> to vector<16xf32>
    %68 = vector.shape_cast %67 : vector<16xf32> to vector<16x1xf32>
    %cst_52 = arith.constant 3.200000e+01 : f32
    %69 = vector.broadcast %cst_52 : f32 to vector<16x1xf32>
    %70 = arith.divf %68, %69 : vector<16x1xf32>
    %cst_53 = arith.constant 9.99999997E-7 : f32
    %71 = vector.broadcast %cst_53 : f32 to vector<16x1xf32>
    %72 = arith.addf %70, %71 : vector<16x1xf32>
    %73 = math.rsqrt %72 : vector<16x1xf32>
    %74 = vector.broadcast %73 : vector<16x1xf32> to vector<16x32xf32>
    %75 = arith.mulf %65, %74 : vector<16x32xf32>
    %76 = vector.broadcast %58 : vector<1x32xf32> to vector<16x32xf32>
    %77 = arith.mulf %75, %76 : vector<16x32xf32>
    %78 = vector.broadcast %59 : vector<1x32xf32> to vector<16x32xf32>
    %79 = arith.addf %77, %78 : vector<16x32xf32>
    %c0_54 = arith.constant 0 : index
    %c0_55 = arith.constant 0 : index
    %c0_56 = arith.constant 0 : index
    %80 = vector.load %arg16[%c0_54, %c0_55, %c0_56] : memref<2x32x32xf32, #tpu.memory_space<vmem>>, vector<1x32x32xf32>
    %81 = vector.shape_cast %80 : vector<1x32x32xf32> to vector<32x32xf32>
    %cst_57 = arith.constant dense<0.000000e+00> : vector<16x32xf32>
    %82 = tpu.matmul %79, %81, %cst_57 {dimension_numbers = #tpu.dot_dimension_numbers<[1], [0], [0], [1], [0, 0, 1, 1], [], []>} : vector<16x32xf32>, vector<32x32xf32>, vector<16x32xf32> -> vector<16x32xf32>
    %c0_58 = arith.constant 0 : index
    %c0_59 = arith.constant 0 : index
    %c0_60 = arith.constant 0 : index
    %83 = vector.load %arg17[%c0_58, %c0_59, %c0_60] : memref<2x1x32xf32, #tpu.memory_space<vmem>>, vector<1x1x32xf32>
    %84 = vector.shape_cast %83 : vector<1x1x32xf32> to vector<1x32xf32>
    %85 = vector.broadcast %84 : vector<1x32xf32> to vector<16x32xf32>
    %86 = arith.addf %82, %85 : vector<16x32xf32>
    %c0_61 = arith.constant 0 : index
    %c0_62 = arith.constant 0 : index
    %c0_63 = arith.constant 0 : index
    %87 = vector.load %arg18[%c0_61, %c0_62, %c0_63] : memref<2x32x64xf32, #tpu.memory_space<vmem>>, vector<1x32x64xf32>
    %88 = vector.shape_cast %87 : vector<1x32x64xf32> to vector<32x64xf32>
    %cst_64 = arith.constant dense<0.000000e+00> : vector<16x64xf32>
    %89 = tpu.matmul %13, %88, %cst_64 {dimension_numbers = #tpu.dot_dimension_numbers<[1], [0], [0], [1], [0, 0, 1, 1], [], []>} : vector<16x32xf32>, vector<32x64xf32>, vector<16x64xf32> -> vector<16x64xf32>
    %c0_65 = arith.constant 0 : index
    %c0_66 = arith.constant 0 : index
    %c0_67 = arith.constant 0 : index
    %90 = vector.load %arg19[%c0_65, %c0_66, %c0_67] : memref<2x1x64xf32, #tpu.memory_space<vmem>>, vector<1x1x64xf32>
    %91 = vector.shape_cast %90 : vector<1x1x64xf32> to vector<1x64xf32>
    %92 = vector.broadcast %91 : vector<1x64xf32> to vector<16x64xf32>
    %93 = arith.addf %89, %92 : vector<16x64xf32>
    %c0_68 = arith.constant 0 : index
    %c0_69 = arith.constant 0 : index
    %c0_70 = arith.constant 0 : index
    %94 = vector.load %arg20[%c0_68, %c0_69, %c0_70] : memref<2x32x32xf32, #tpu.memory_space<vmem>>, vector<1x32x32xf32>
    %95 = vector.shape_cast %94 : vector<1x32x32xf32> to vector<32x32xf32>
    %c0_71 = arith.constant 0 : index
    %c0_72 = arith.constant 0 : index
    %c0_73 = arith.constant 0 : index
    %96 = vector.load %arg21[%c0_71, %c0_72, %c0_73] : memref<2x1x32xf32, #tpu.memory_space<vmem>>, vector<1x1x32xf32>
    %97 = vector.shape_cast %96 : vector<1x1x32xf32> to vector<1x32xf32>
    %cst_74 = arith.constant dense<0.000000e+00> : vector<128x64xf32>
    %98 = tpu.matmul %19, %93, %cst_74 {dimension_numbers = #tpu.dot_dimension_numbers<[1], [0], [0], [1], [0, 0, 1, 1], [], []>} : vector<128x16xf32>, vector<16x64xf32>, vector<128x64xf32> -> vector<128x64xf32>
    %99 = arith.mulf %98, %21 : vector<128x64xf32>
    %100 = vector.extract_strided_slice %99 {offsets = [0, 0], sizes = [128, 32], strides = [1, 1]} : vector<128x64xf32> to vector<128x32xf32>
    %101 = vector.extract_strided_slice %99 {offsets = [0, 32], sizes = [128, 32], strides = [1, 1]} : vector<128x64xf32> to vector<128x32xf32>
    "tpu.trace_start"() <{level = 10 : i32, message = "qd,jd->qj"}> : () -> ()
    %cst_75 = arith.constant dense<0.000000e+00> : vector<16x128xf32>
    %102 = tpu.matmul %86, %100, %cst_75 {dimension_numbers = #tpu.dot_dimension_numbers<[1], [1], [0], [0], [0, 0, 1, 0], [], []>} : vector<16x32xf32>, vector<128x32xf32>, vector<16x128xf32> -> vector<16x128xf32>
    "tpu.trace_stop"() : () -> ()
    %103 = arith.addf %102, %15 : vector<16x128xf32>
    %cst_76 = arith.constant dense<0xFF800000> : vector<16xf32>
    %104 = vector.multi_reduction <maximumf>, %103, %cst_76 [1] : vector<16x128xf32> to vector<16xf32>
    %105 = vector.shape_cast %104 : vector<16xf32> to vector<16x1xf32>
    %106 = vector.broadcast %105 : vector<16x1xf32> to vector<16x128xf32>
    %107 = arith.subf %103, %106 : vector<16x128xf32>
    %108 = math.exp %107 : vector<16x128xf32>
    %cst_77 = arith.constant dense<0.000000e+00> : vector<16x128xf32>
    %109 = tpu.matmul %108, %20, %cst_77 {dimension_numbers = #tpu.dot_dimension_numbers<[1], [0], [0], [1], [0, 0, 1, 1], [], []>} : vector<16x128xf32>, vector<128x128xf32>, vector<16x128xf32> -> vector<16x128xf32>
    %110 = tpu.reciprocal %109 {approx = true} : vector<16x128xf32> -> vector<16x128xf32>
    %111 = arith.mulf %108, %110 : vector<16x128xf32>
    %cst_78 = arith.constant dense<0.000000e+00> : vector<16x32xf32>
    %112 = tpu.matmul %111, %101, %cst_78 {dimension_numbers = #tpu.dot_dimension_numbers<[1], [0], [0], [1], [0, 0, 1, 1], [], []>} : vector<16x128xf32>, vector<128x32xf32>, vector<16x32xf32> -> vector<16x32xf32>
    %cst_79 = arith.constant dense<0.000000e+00> : vector<16x32xf32>
    %113 = tpu.matmul %112, %95, %cst_79 {dimension_numbers = #tpu.dot_dimension_numbers<[1], [0], [0], [1], [0, 0, 1, 1], [], []>} : vector<16x32xf32>, vector<32x32xf32>, vector<16x32xf32> -> vector<16x32xf32>
    %114 = vector.broadcast %97 : vector<1x32xf32> to vector<16x32xf32>
    %115 = arith.addf %113, %114 : vector<16x32xf32>
    %116 = arith.addf %115, %79 : vector<16x32xf32>
    %117 = vector.extract_strided_slice %23 {offsets = [1, 0], sizes = [1, 32], strides = [1, 1]} : vector<3x32xf32> to vector<1x32xf32>
    %118 = vector.extract_strided_slice %25 {offsets = [1, 0], sizes = [1, 32], strides = [1, 1]} : vector<3x32xf32> to vector<1x32xf32>
    %cst_80 = arith.constant dense<0.000000e+00> : vector<16xf32>
    %119 = vector.multi_reduction <add>, %116, %cst_80 [1] : vector<16x32xf32> to vector<16xf32>
    %120 = vector.shape_cast %119 : vector<16xf32> to vector<16x1xf32>
    %cst_81 = arith.constant 3.200000e+01 : f32
    %121 = vector.broadcast %cst_81 : f32 to vector<16x1xf32>
    %122 = arith.divf %120, %121 : vector<16x1xf32>
    %123 = vector.broadcast %122 : vector<16x1xf32> to vector<16x32xf32>
    %124 = arith.subf %116, %123 : vector<16x32xf32>
    %125 = arith.mulf %124, %124 : vector<16x32xf32>
    %cst_82 = arith.constant dense<0.000000e+00> : vector<16xf32>
    %126 = vector.multi_reduction <add>, %125, %cst_82 [1] : vector<16x32xf32> to vector<16xf32>
    %127 = vector.shape_cast %126 : vector<16xf32> to vector<16x1xf32>
    %cst_83 = arith.constant 3.200000e+01 : f32
    %128 = vector.broadcast %cst_83 : f32 to vector<16x1xf32>
    %129 = arith.divf %127, %128 : vector<16x1xf32>
    %cst_84 = arith.constant 9.99999997E-7 : f32
    %130 = vector.broadcast %cst_84 : f32 to vector<16x1xf32>
    %131 = arith.addf %129, %130 : vector<16x1xf32>
    %132 = math.rsqrt %131 : vector<16x1xf32>
    %133 = vector.broadcast %132 : vector<16x1xf32> to vector<16x32xf32>
    %134 = arith.mulf %124, %133 : vector<16x32xf32>
    %135 = vector.broadcast %117 : vector<1x32xf32> to vector<16x32xf32>
    %136 = arith.mulf %134, %135 : vector<16x32xf32>
    %137 = vector.broadcast %118 : vector<1x32xf32> to vector<16x32xf32>
    %138 = arith.addf %136, %137 : vector<16x32xf32>
    %c0_85 = arith.constant 0 : index
    %c0_86 = arith.constant 0 : index
    %c0_87 = arith.constant 0 : index
    %139 = vector.load %arg24[%c0_85, %c0_86, %c0_87] : memref<2x32x64xf32, #tpu.memory_space<vmem>>, vector<1x32x64xf32>
    %140 = vector.shape_cast %139 : vector<1x32x64xf32> to vector<32x64xf32>
    %cst_88 = arith.constant dense<0.000000e+00> : vector<16x64xf32>
    %141 = tpu.matmul %138, %140, %cst_88 {dimension_numbers = #tpu.dot_dimension_numbers<[1], [0], [0], [1], [0, 0, 1, 1], [], []>} : vector<16x32xf32>, vector<32x64xf32>, vector<16x64xf32> -> vector<16x64xf32>
    %c0_89 = arith.constant 0 : index
    %c0_90 = arith.constant 0 : index
    %c0_91 = arith.constant 0 : index
    %142 = vector.load %arg25[%c0_89, %c0_90, %c0_91] : memref<2x1x64xf32, #tpu.memory_space<vmem>>, vector<1x1x64xf32>
    %143 = vector.shape_cast %142 : vector<1x1x64xf32> to vector<1x64xf32>
    %144 = vector.broadcast %143 : vector<1x64xf32> to vector<16x64xf32>
    %145 = arith.addf %141, %144 : vector<16x64xf32>
    %cst_92 = arith.constant 0.000000e+00 : f32
    %146 = vector.broadcast %cst_92 : f32 to vector<16x64xf32>
    %147 = arith.maximumf %145, %146 : vector<16x64xf32>
    %c0_93 = arith.constant 0 : index
    %c0_94 = arith.constant 0 : index
    %c0_95 = arith.constant 0 : index
    %148 = vector.load %arg26[%c0_93, %c0_94, %c0_95] : memref<2x64x32xf32, #tpu.memory_space<vmem>>, vector<1x64x32xf32>
    %149 = vector.shape_cast %148 : vector<1x64x32xf32> to vector<64x32xf32>
    %cst_96 = arith.constant dense<0.000000e+00> : vector<16x32xf32>
    %150 = tpu.matmul %147, %149, %cst_96 {dimension_numbers = #tpu.dot_dimension_numbers<[1], [0], [0], [1], [0, 0, 1, 1], [], []>} : vector<16x64xf32>, vector<64x32xf32>, vector<16x32xf32> -> vector<16x32xf32>
    %c0_97 = arith.constant 0 : index
    %c0_98 = arith.constant 0 : index
    %c0_99 = arith.constant 0 : index
    %151 = vector.load %arg27[%c0_97, %c0_98, %c0_99] : memref<2x1x32xf32, #tpu.memory_space<vmem>>, vector<1x1x32xf32>
    %152 = vector.shape_cast %151 : vector<1x1x32xf32> to vector<1x32xf32>
    %153 = vector.broadcast %152 : vector<1x32xf32> to vector<16x32xf32>
    %154 = arith.addf %150, %153 : vector<16x32xf32>
    %155 = arith.addf %154, %138 : vector<16x32xf32>
    %156 = vector.extract_strided_slice %23 {offsets = [2, 0], sizes = [1, 32], strides = [1, 1]} : vector<3x32xf32> to vector<1x32xf32>
    %157 = vector.extract_strided_slice %25 {offsets = [2, 0], sizes = [1, 32], strides = [1, 1]} : vector<3x32xf32> to vector<1x32xf32>
    %cst_100 = arith.constant dense<0.000000e+00> : vector<16xf32>
    %158 = vector.multi_reduction <add>, %155, %cst_100 [1] : vector<16x32xf32> to vector<16xf32>
    %159 = vector.shape_cast %158 : vector<16xf32> to vector<16x1xf32>
    %cst_101 = arith.constant 3.200000e+01 : f32
    %160 = vector.broadcast %cst_101 : f32 to vector<16x1xf32>
    %161 = arith.divf %159, %160 : vector<16x1xf32>
    %162 = vector.broadcast %161 : vector<16x1xf32> to vector<16x32xf32>
    %163 = arith.subf %155, %162 : vector<16x32xf32>
    %164 = arith.mulf %163, %163 : vector<16x32xf32>
    %cst_102 = arith.constant dense<0.000000e+00> : vector<16xf32>
    %165 = vector.multi_reduction <add>, %164, %cst_102 [1] : vector<16x32xf32> to vector<16xf32>
    %166 = vector.shape_cast %165 : vector<16xf32> to vector<16x1xf32>
    %cst_103 = arith.constant 3.200000e+01 : f32
    %167 = vector.broadcast %cst_103 : f32 to vector<16x1xf32>
    %168 = arith.divf %166, %167 : vector<16x1xf32>
    %cst_104 = arith.constant 9.99999997E-7 : f32
    %169 = vector.broadcast %cst_104 : f32 to vector<16x1xf32>
    %170 = arith.addf %168, %169 : vector<16x1xf32>
    %171 = math.rsqrt %170 : vector<16x1xf32>
    %172 = vector.broadcast %171 : vector<16x1xf32> to vector<16x32xf32>
    %173 = arith.mulf %163, %172 : vector<16x32xf32>
    %174 = vector.broadcast %156 : vector<1x32xf32> to vector<16x32xf32>
    %175 = arith.mulf %173, %174 : vector<16x32xf32>
    %176 = vector.broadcast %157 : vector<1x32xf32> to vector<16x32xf32>
    %177 = arith.addf %175, %176 : vector<16x32xf32>
    %c1 = arith.constant 1 : index
    %c0_105 = arith.constant 0 : index
    %c0_106 = arith.constant 0 : index
    %178 = vector.load %arg22[%c1, %c0_105, %c0_106] : memref<2x3x32xf32, #tpu.memory_space<vmem>>, vector<1x3x32xf32>
    %179 = vector.shape_cast %178 : vector<1x3x32xf32> to vector<3x32xf32>
    %c1_107 = arith.constant 1 : index
    %c0_108 = arith.constant 0 : index
    %c0_109 = arith.constant 0 : index
    %180 = vector.load %arg23[%c1_107, %c0_108, %c0_109] : memref<2x3x32xf32, #tpu.memory_space<vmem>>, vector<1x3x32xf32>
    %181 = vector.shape_cast %180 : vector<1x3x32xf32> to vector<3x32xf32>
    %c1_110 = arith.constant 1 : index
    %c0_111 = arith.constant 0 : index
    %c0_112 = arith.constant 0 : index
    %182 = vector.load %arg12[%c1_110, %c0_111, %c0_112] : memref<2x32x96xf32, #tpu.memory_space<vmem>>, vector<1x32x96xf32>
    %183 = vector.shape_cast %182 : vector<1x32x96xf32> to vector<32x96xf32>
    %cst_113 = arith.constant dense<0.000000e+00> : vector<16x96xf32>
    %184 = tpu.matmul %177, %183, %cst_113 {dimension_numbers = #tpu.dot_dimension_numbers<[1], [0], [0], [1], [0, 0, 1, 1], [], []>} : vector<16x32xf32>, vector<32x96xf32>, vector<16x96xf32> -> vector<16x96xf32>
    %c1_114 = arith.constant 1 : index
    %c0_115 = arith.constant 0 : index
    %c0_116 = arith.constant 0 : index
    %185 = vector.load %arg13[%c1_114, %c0_115, %c0_116] : memref<2x1x96xf32, #tpu.memory_space<vmem>>, vector<1x1x96xf32>
    %186 = vector.shape_cast %185 : vector<1x1x96xf32> to vector<1x96xf32>
    %187 = vector.broadcast %186 : vector<1x96xf32> to vector<16x96xf32>
    %188 = arith.addf %184, %187 : vector<16x96xf32>
    %189 = vector.extract_strided_slice %188 {offsets = [0, 0], sizes = [16, 32], strides = [1, 1]} : vector<16x96xf32> to vector<16x32xf32>
    %190 = vector.extract_strided_slice %188 {offsets = [0, 32], sizes = [16, 64], strides = [1, 1]} : vector<16x96xf32> to vector<16x64xf32>
    %c1_117 = arith.constant 1 : index
    %c0_118 = arith.constant 0 : index
    %c0_119 = arith.constant 0 : index
    %191 = vector.load %arg14[%c1_117, %c0_118, %c0_119] : memref<2x32x32xf32, #tpu.memory_space<vmem>>, vector<1x32x32xf32>
    %192 = vector.shape_cast %191 : vector<1x32x32xf32> to vector<32x32xf32>
    %c1_120 = arith.constant 1 : index
    %c0_121 = arith.constant 0 : index
    %c0_122 = arith.constant 0 : index
    %193 = vector.load %arg15[%c1_120, %c0_121, %c0_122] : memref<2x1x32xf32, #tpu.memory_space<vmem>>, vector<1x1x32xf32>
    %194 = vector.shape_cast %193 : vector<1x1x32xf32> to vector<1x32xf32>
    %cst_123 = arith.constant dense<0.000000e+00> : vector<128x64xf32>
    %195 = tpu.matmul %16, %190, %cst_123 {dimension_numbers = #tpu.dot_dimension_numbers<[1], [0], [0], [1], [0, 0, 1, 1], [], []>} : vector<128x16xf32>, vector<16x64xf32>, vector<128x64xf32> -> vector<128x64xf32>
    %196 = arith.mulf %195, %18 : vector<128x64xf32>
    %197 = vector.extract_strided_slice %196 {offsets = [0, 0], sizes = [128, 32], strides = [1, 1]} : vector<128x64xf32> to vector<128x32xf32>
    %198 = vector.extract_strided_slice %196 {offsets = [0, 32], sizes = [128, 32], strides = [1, 1]} : vector<128x64xf32> to vector<128x32xf32>
    "tpu.trace_start"() <{level = 10 : i32, message = "qd,jd->qj"}> : () -> ()
    %cst_124 = arith.constant dense<0.000000e+00> : vector<16x128xf32>
    %199 = tpu.matmul %189, %197, %cst_124 {dimension_numbers = #tpu.dot_dimension_numbers<[1], [1], [0], [0], [0, 0, 1, 0], [], []>} : vector<16x32xf32>, vector<128x32xf32>, vector<16x128xf32> -> vector<16x128xf32>
    "tpu.trace_stop"() : () -> ()
    %200 = arith.addf %199, %14 : vector<16x128xf32>
    %cst_125 = arith.constant dense<0xFF800000> : vector<16xf32>
    %201 = vector.multi_reduction <maximumf>, %200, %cst_125 [1] : vector<16x128xf32> to vector<16xf32>
    %202 = vector.shape_cast %201 : vector<16xf32> to vector<16x1xf32>
    %203 = vector.broadcast %202 : vector<16x1xf32> to vector<16x128xf32>
    %204 = arith.subf %200, %203 : vector<16x128xf32>
    %205 = math.exp %204 : vector<16x128xf32>
    %cst_126 = arith.constant dense<0.000000e+00> : vector<16x128xf32>
    %206 = tpu.matmul %205, %17, %cst_126 {dimension_numbers = #tpu.dot_dimension_numbers<[1], [0], [0], [1], [0, 0, 1, 1], [], []>} : vector<16x128xf32>, vector<128x128xf32>, vector<16x128xf32> -> vector<16x128xf32>
    %207 = tpu.reciprocal %206 {approx = true} : vector<16x128xf32> -> vector<16x128xf32>
    %208 = arith.mulf %205, %207 : vector<16x128xf32>
    %cst_127 = arith.constant dense<0.000000e+00> : vector<16x32xf32>
    %209 = tpu.matmul %208, %198, %cst_127 {dimension_numbers = #tpu.dot_dimension_numbers<[1], [0], [0], [1], [0, 0, 1, 1], [], []>} : vector<16x128xf32>, vector<128x32xf32>, vector<16x32xf32> -> vector<16x32xf32>
    %cst_128 = arith.constant dense<0.000000e+00> : vector<16x32xf32>
    %210 = tpu.matmul %209, %192, %cst_128 {dimension_numbers = #tpu.dot_dimension_numbers<[1], [0], [0], [1], [0, 0, 1, 1], [], []>} : vector<16x32xf32>, vector<32x32xf32>, vector<16x32xf32> -> vector<16x32xf32>
    %211 = vector.broadcast %194 : vector<1x32xf32> to vector<16x32xf32>
    %212 = arith.addf %210, %211 : vector<16x32xf32>
    %213 = arith.addf %212, %177 : vector<16x32xf32>
    %214 = vector.extract_strided_slice %179 {offsets = [0, 0], sizes = [1, 32], strides = [1, 1]} : vector<3x32xf32> to vector<1x32xf32>
    %215 = vector.extract_strided_slice %181 {offsets = [0, 0], sizes = [1, 32], strides = [1, 1]} : vector<3x32xf32> to vector<1x32xf32>
    %cst_129 = arith.constant dense<0.000000e+00> : vector<16xf32>
    %216 = vector.multi_reduction <add>, %213, %cst_129 [1] : vector<16x32xf32> to vector<16xf32>
    %217 = vector.shape_cast %216 : vector<16xf32> to vector<16x1xf32>
    %cst_130 = arith.constant 3.200000e+01 : f32
    %218 = vector.broadcast %cst_130 : f32 to vector<16x1xf32>
    %219 = arith.divf %217, %218 : vector<16x1xf32>
    %220 = vector.broadcast %219 : vector<16x1xf32> to vector<16x32xf32>
    %221 = arith.subf %213, %220 : vector<16x32xf32>
    %222 = arith.mulf %221, %221 : vector<16x32xf32>
    %cst_131 = arith.constant dense<0.000000e+00> : vector<16xf32>
    %223 = vector.multi_reduction <add>, %222, %cst_131 [1] : vector<16x32xf32> to vector<16xf32>
    %224 = vector.shape_cast %223 : vector<16xf32> to vector<16x1xf32>
    %cst_132 = arith.constant 3.200000e+01 : f32
    %225 = vector.broadcast %cst_132 : f32 to vector<16x1xf32>
    %226 = arith.divf %224, %225 : vector<16x1xf32>
    %cst_133 = arith.constant 9.99999997E-7 : f32
    %227 = vector.broadcast %cst_133 : f32 to vector<16x1xf32>
    %228 = arith.addf %226, %227 : vector<16x1xf32>
    %229 = math.rsqrt %228 : vector<16x1xf32>
    %230 = vector.broadcast %229 : vector<16x1xf32> to vector<16x32xf32>
    %231 = arith.mulf %221, %230 : vector<16x32xf32>
    %232 = vector.broadcast %214 : vector<1x32xf32> to vector<16x32xf32>
    %233 = arith.mulf %231, %232 : vector<16x32xf32>
    %234 = vector.broadcast %215 : vector<1x32xf32> to vector<16x32xf32>
    %235 = arith.addf %233, %234 : vector<16x32xf32>
    %c1_134 = arith.constant 1 : index
    %c0_135 = arith.constant 0 : index
    %c0_136 = arith.constant 0 : index
    %236 = vector.load %arg16[%c1_134, %c0_135, %c0_136] : memref<2x32x32xf32, #tpu.memory_space<vmem>>, vector<1x32x32xf32>
    %237 = vector.shape_cast %236 : vector<1x32x32xf32> to vector<32x32xf32>
    %cst_137 = arith.constant dense<0.000000e+00> : vector<16x32xf32>
    %238 = tpu.matmul %235, %237, %cst_137 {dimension_numbers = #tpu.dot_dimension_numbers<[1], [0], [0], [1], [0, 0, 1, 1], [], []>} : vector<16x32xf32>, vector<32x32xf32>, vector<16x32xf32> -> vector<16x32xf32>
    %c1_138 = arith.constant 1 : index
    %c0_139 = arith.constant 0 : index
    %c0_140 = arith.constant 0 : index
    %239 = vector.load %arg17[%c1_138, %c0_139, %c0_140] : memref<2x1x32xf32, #tpu.memory_space<vmem>>, vector<1x1x32xf32>
    %240 = vector.shape_cast %239 : vector<1x1x32xf32> to vector<1x32xf32>
    %241 = vector.broadcast %240 : vector<1x32xf32> to vector<16x32xf32>
    %242 = arith.addf %238, %241 : vector<16x32xf32>
    %c1_141 = arith.constant 1 : index
    %c0_142 = arith.constant 0 : index
    %c0_143 = arith.constant 0 : index
    %243 = vector.load %arg18[%c1_141, %c0_142, %c0_143] : memref<2x32x64xf32, #tpu.memory_space<vmem>>, vector<1x32x64xf32>
    %244 = vector.shape_cast %243 : vector<1x32x64xf32> to vector<32x64xf32>
    %cst_144 = arith.constant dense<0.000000e+00> : vector<16x64xf32>
    %245 = tpu.matmul %13, %244, %cst_144 {dimension_numbers = #tpu.dot_dimension_numbers<[1], [0], [0], [1], [0, 0, 1, 1], [], []>} : vector<16x32xf32>, vector<32x64xf32>, vector<16x64xf32> -> vector<16x64xf32>
    %c1_145 = arith.constant 1 : index
    %c0_146 = arith.constant 0 : index
    %c0_147 = arith.constant 0 : index
    %246 = vector.load %arg19[%c1_145, %c0_146, %c0_147] : memref<2x1x64xf32, #tpu.memory_space<vmem>>, vector<1x1x64xf32>
    %247 = vector.shape_cast %246 : vector<1x1x64xf32> to vector<1x64xf32>
    %248 = vector.broadcast %247 : vector<1x64xf32> to vector<16x64xf32>
    %249 = arith.addf %245, %248 : vector<16x64xf32>
    %c1_148 = arith.constant 1 : index
    %c0_149 = arith.constant 0 : index
    %c0_150 = arith.constant 0 : index
    %250 = vector.load %arg20[%c1_148, %c0_149, %c0_150] : memref<2x32x32xf32, #tpu.memory_space<vmem>>, vector<1x32x32xf32>
    %251 = vector.shape_cast %250 : vector<1x32x32xf32> to vector<32x32xf32>
    %c1_151 = arith.constant 1 : index
    %c0_152 = arith.constant 0 : index
    %c0_153 = arith.constant 0 : index
    %252 = vector.load %arg21[%c1_151, %c0_152, %c0_153] : memref<2x1x32xf32, #tpu.memory_space<vmem>>, vector<1x1x32xf32>
    %253 = vector.shape_cast %252 : vector<1x1x32xf32> to vector<1x32xf32>
    %cst_154 = arith.constant dense<0.000000e+00> : vector<128x64xf32>
    %254 = tpu.matmul %19, %249, %cst_154 {dimension_numbers = #tpu.dot_dimension_numbers<[1], [0], [0], [1], [0, 0, 1, 1], [], []>} : vector<128x16xf32>, vector<16x64xf32>, vector<128x64xf32> -> vector<128x64xf32>
    %255 = arith.mulf %254, %21 : vector<128x64xf32>
    %256 = vector.extract_strided_slice %255 {offsets = [0, 0], sizes = [128, 32], strides = [1, 1]} : vector<128x64xf32> to vector<128x32xf32>
    %257 = vector.extract_strided_slice %255 {offsets = [0, 32], sizes = [128, 32], strides = [1, 1]} : vector<128x64xf32> to vector<128x32xf32>
    "tpu.trace_start"() <{level = 10 : i32, message = "qd,jd->qj"}> : () -> ()
    %cst_155 = arith.constant dense<0.000000e+00> : vector<16x128xf32>
    %258 = tpu.matmul %242, %256, %cst_155 {dimension_numbers = #tpu.dot_dimension_numbers<[1], [1], [0], [0], [0, 0, 1, 0], [], []>} : vector<16x32xf32>, vector<128x32xf32>, vector<16x128xf32> -> vector<16x128xf32>
    "tpu.trace_stop"() : () -> ()
    %259 = arith.addf %258, %15 : vector<16x128xf32>
    %cst_156 = arith.constant dense<0xFF800000> : vector<16xf32>
    %260 = vector.multi_reduction <maximumf>, %259, %cst_156 [1] : vector<16x128xf32> to vector<16xf32>
    %261 = vector.shape_cast %260 : vector<16xf32> to vector<16x1xf32>
    %262 = vector.broadcast %261 : vector<16x1xf32> to vector<16x128xf32>
    %263 = arith.subf %259, %262 : vector<16x128xf32>
    %264 = math.exp %263 : vector<16x128xf32>
    %cst_157 = arith.constant dense<0.000000e+00> : vector<16x128xf32>
    %265 = tpu.matmul %264, %20, %cst_157 {dimension_numbers = #tpu.dot_dimension_numbers<[1], [0], [0], [1], [0, 0, 1, 1], [], []>} : vector<16x128xf32>, vector<128x128xf32>, vector<16x128xf32> -> vector<16x128xf32>
    %266 = tpu.reciprocal %265 {approx = true} : vector<16x128xf32> -> vector<16x128xf32>
    %267 = arith.mulf %264, %266 : vector<16x128xf32>
    %cst_158 = arith.constant dense<0.000000e+00> : vector<16x32xf32>
    %268 = tpu.matmul %267, %257, %cst_158 {dimension_numbers = #tpu.dot_dimension_numbers<[1], [0], [0], [1], [0, 0, 1, 1], [], []>} : vector<16x128xf32>, vector<128x32xf32>, vector<16x32xf32> -> vector<16x32xf32>
    %cst_159 = arith.constant dense<0.000000e+00> : vector<16x32xf32>
    %269 = tpu.matmul %268, %251, %cst_159 {dimension_numbers = #tpu.dot_dimension_numbers<[1], [0], [0], [1], [0, 0, 1, 1], [], []>} : vector<16x32xf32>, vector<32x32xf32>, vector<16x32xf32> -> vector<16x32xf32>
    %270 = vector.broadcast %253 : vector<1x32xf32> to vector<16x32xf32>
    %271 = arith.addf %269, %270 : vector<16x32xf32>
    %272 = arith.addf %271, %235 : vector<16x32xf32>
    %273 = vector.extract_strided_slice %179 {offsets = [1, 0], sizes = [1, 32], strides = [1, 1]} : vector<3x32xf32> to vector<1x32xf32>
    %274 = vector.extract_strided_slice %181 {offsets = [1, 0], sizes = [1, 32], strides = [1, 1]} : vector<3x32xf32> to vector<1x32xf32>
    %cst_160 = arith.constant dense<0.000000e+00> : vector<16xf32>
    %275 = vector.multi_reduction <add>, %272, %cst_160 [1] : vector<16x32xf32> to vector<16xf32>
    %276 = vector.shape_cast %275 : vector<16xf32> to vector<16x1xf32>
    %cst_161 = arith.constant 3.200000e+01 : f32
    %277 = vector.broadcast %cst_161 : f32 to vector<16x1xf32>
    %278 = arith.divf %276, %277 : vector<16x1xf32>
    %279 = vector.broadcast %278 : vector<16x1xf32> to vector<16x32xf32>
    %280 = arith.subf %272, %279 : vector<16x32xf32>
    %281 = arith.mulf %280, %280 : vector<16x32xf32>
    %cst_162 = arith.constant dense<0.000000e+00> : vector<16xf32>
    %282 = vector.multi_reduction <add>, %281, %cst_162 [1] : vector<16x32xf32> to vector<16xf32>
    %283 = vector.shape_cast %282 : vector<16xf32> to vector<16x1xf32>
    %cst_163 = arith.constant 3.200000e+01 : f32
    %284 = vector.broadcast %cst_163 : f32 to vector<16x1xf32>
    %285 = arith.divf %283, %284 : vector<16x1xf32>
    %cst_164 = arith.constant 9.99999997E-7 : f32
    %286 = vector.broadcast %cst_164 : f32 to vector<16x1xf32>
    %287 = arith.addf %285, %286 : vector<16x1xf32>
    %288 = math.rsqrt %287 : vector<16x1xf32>
    %289 = vector.broadcast %288 : vector<16x1xf32> to vector<16x32xf32>
    %290 = arith.mulf %280, %289 : vector<16x32xf32>
    %291 = vector.broadcast %273 : vector<1x32xf32> to vector<16x32xf32>
    %292 = arith.mulf %290, %291 : vector<16x32xf32>
    %293 = vector.broadcast %274 : vector<1x32xf32> to vector<16x32xf32>
    %294 = arith.addf %292, %293 : vector<16x32xf32>
    %c1_165 = arith.constant 1 : index
    %c0_166 = arith.constant 0 : index
    %c0_167 = arith.constant 0 : index
    %295 = vector.load %arg24[%c1_165, %c0_166, %c0_167] : memref<2x32x64xf32, #tpu.memory_space<vmem>>, vector<1x32x64xf32>
    %296 = vector.shape_cast %295 : vector<1x32x64xf32> to vector<32x64xf32>
    %cst_168 = arith.constant dense<0.000000e+00> : vector<16x64xf32>
    %297 = tpu.matmul %294, %296, %cst_168 {dimension_numbers = #tpu.dot_dimension_numbers<[1], [0], [0], [1], [0, 0, 1, 1], [], []>} : vector<16x32xf32>, vector<32x64xf32>, vector<16x64xf32> -> vector<16x64xf32>
    %c1_169 = arith.constant 1 : index
    %c0_170 = arith.constant 0 : index
    %c0_171 = arith.constant 0 : index
    %298 = vector.load %arg25[%c1_169, %c0_170, %c0_171] : memref<2x1x64xf32, #tpu.memory_space<vmem>>, vector<1x1x64xf32>
    %299 = vector.shape_cast %298 : vector<1x1x64xf32> to vector<1x64xf32>
    %300 = vector.broadcast %299 : vector<1x64xf32> to vector<16x64xf32>
    %301 = arith.addf %297, %300 : vector<16x64xf32>
    %cst_172 = arith.constant 0.000000e+00 : f32
    %302 = vector.broadcast %cst_172 : f32 to vector<16x64xf32>
    %303 = arith.maximumf %301, %302 : vector<16x64xf32>
    %c1_173 = arith.constant 1 : index
    %c0_174 = arith.constant 0 : index
    %c0_175 = arith.constant 0 : index
    %304 = vector.load %arg26[%c1_173, %c0_174, %c0_175] : memref<2x64x32xf32, #tpu.memory_space<vmem>>, vector<1x64x32xf32>
    %305 = vector.shape_cast %304 : vector<1x64x32xf32> to vector<64x32xf32>
    %cst_176 = arith.constant dense<0.000000e+00> : vector<16x32xf32>
    %306 = tpu.matmul %303, %305, %cst_176 {dimension_numbers = #tpu.dot_dimension_numbers<[1], [0], [0], [1], [0, 0, 1, 1], [], []>} : vector<16x64xf32>, vector<64x32xf32>, vector<16x32xf32> -> vector<16x32xf32>
    %c1_177 = arith.constant 1 : index
    %c0_178 = arith.constant 0 : index
    %c0_179 = arith.constant 0 : index
    %307 = vector.load %arg27[%c1_177, %c0_178, %c0_179] : memref<2x1x32xf32, #tpu.memory_space<vmem>>, vector<1x1x32xf32>
    %308 = vector.shape_cast %307 : vector<1x1x32xf32> to vector<1x32xf32>
    %309 = vector.broadcast %308 : vector<1x32xf32> to vector<16x32xf32>
    %310 = arith.addf %306, %309 : vector<16x32xf32>
    %311 = arith.addf %310, %294 : vector<16x32xf32>
    %312 = vector.extract_strided_slice %179 {offsets = [2, 0], sizes = [1, 32], strides = [1, 1]} : vector<3x32xf32> to vector<1x32xf32>
    %313 = vector.extract_strided_slice %181 {offsets = [2, 0], sizes = [1, 32], strides = [1, 1]} : vector<3x32xf32> to vector<1x32xf32>
    %cst_180 = arith.constant dense<0.000000e+00> : vector<16xf32>
    %314 = vector.multi_reduction <add>, %311, %cst_180 [1] : vector<16x32xf32> to vector<16xf32>
    %315 = vector.shape_cast %314 : vector<16xf32> to vector<16x1xf32>
    %cst_181 = arith.constant 3.200000e+01 : f32
    %316 = vector.broadcast %cst_181 : f32 to vector<16x1xf32>
    %317 = arith.divf %315, %316 : vector<16x1xf32>
    %318 = vector.broadcast %317 : vector<16x1xf32> to vector<16x32xf32>
    %319 = arith.subf %311, %318 : vector<16x32xf32>
    %320 = arith.mulf %319, %319 : vector<16x32xf32>
    %cst_182 = arith.constant dense<0.000000e+00> : vector<16xf32>
    %321 = vector.multi_reduction <add>, %320, %cst_182 [1] : vector<16x32xf32> to vector<16xf32>
    %322 = vector.shape_cast %321 : vector<16xf32> to vector<16x1xf32>
    %cst_183 = arith.constant 3.200000e+01 : f32
    %323 = vector.broadcast %cst_183 : f32 to vector<16x1xf32>
    %324 = arith.divf %322, %323 : vector<16x1xf32>
    %cst_184 = arith.constant 9.99999997E-7 : f32
    %325 = vector.broadcast %cst_184 : f32 to vector<16x1xf32>
    %326 = arith.addf %324, %325 : vector<16x1xf32>
    %327 = math.rsqrt %326 : vector<16x1xf32>
    %328 = vector.broadcast %327 : vector<16x1xf32> to vector<16x32xf32>
    %329 = arith.mulf %319, %328 : vector<16x32xf32>
    %330 = vector.broadcast %312 : vector<1x32xf32> to vector<16x32xf32>
    %331 = arith.mulf %329, %330 : vector<16x32xf32>
    %332 = vector.broadcast %313 : vector<1x32xf32> to vector<16x32xf32>
    %333 = arith.addf %331, %332 : vector<16x32xf32>
    %c0_185 = arith.constant 0 : index
    %c0_186 = arith.constant 0 : index
    %334 = vector.load %arg28[%c0_185, %c0_186] : memref<16x32xf32, #tpu.memory_space<vmem>>, vector<16x32xf32>
    tpu.vector_store %arg28[%c0_185, %c0_186], %333 {strides = array<i32>} : memref<16x32xf32, #tpu.memory_space<vmem>>, vector<16x32xf32>,
    return
  }
}

</mosaic_0001>

<bundles_post_ra>
// kernel: tile.32
= control target key start
LH: loop header
LB: loop body
LE: loop exit
PB: predicated region body
PF: predicated region fallthrough
CT: control target
= control target key end

     0   :  { %s154_s0 = inlined_call_operand.vmem [shape: f32[8,8], index: 0, kind: input, shape index: {}]   ;;  %s155_s1 = inlined_call_operand.vmem [shape: f32[2,8,2,8], index: 1, kind: output, shape index: {}]  }
   0x1   :  { %v4_v0 = vld [vmem:[%s154_s0] ss:$0 sm:$0xff]  ;;  %v51_v1 = vld [vmem:[%s154_s0 + $0x1] ss:$0 sm:$0xff]  ;;  %v54_v2 = vld [vmem:[%s154_s0 + $0x2] ss:$0 sm:$0xff] }
   0x2   :  { %5 = vst [vmem:[%s155_s1] sm:$0x3] %v4_v0  ;;  %50 = vst [vmem:[%s155_s1 + $0x10] sm:$0x3] %v4_v0  ;;  %v57_v3 = vld [vmem:[%s154_s0 + $0x3] ss:$0 sm:$0xff] }
   0x3   :  { %52 = vst [vmem:[%s155_s1 + $0x2] sm:$0x3] %v51_v1  ;;  %53 = vst [vmem:[%s155_s1 + $0x12] sm:$0x3] %v51_v1  ;;  %v60_v4 = vld [vmem:[%s154_s0 + $0x4] ss:$0 sm:$0xff] }
   0x4   :  { %55 = vst [vmem:[%s155_s1 + $0x4] sm:$0x3] %v54_v2  ;;  %56 = vst [vmem:[%s155_s1 + $0x14] sm:$0x3] %v54_v2  ;;  %v63_v5 = vld [vmem:[%s154_s0 + $0x5] ss:$0 sm:$0xff] }
   0x5   :  { %58 = vst [vmem:[%s155_s1 + $0x6] sm:$0x3] %v57_v3  ;;  %59 = vst [vmem:[%s155_s1 + $0x16] sm:$0x3] %v57_v3  ;;  %v66_v6 = vld [vmem:[%s154_s0 + $0x6] ss:$0 sm:$0xff] }
   0x6   :  { %61 = vst [vmem:[%s155_s1 + $0x8] sm:$0x3] %v60_v4  ;;  %62 = vst [vmem:[%s155_s1 + $0x18] sm:$0x3] %v60_v4  ;;  %v69_v7 = vld [vmem:[%s154_s0 + $0x7] ss:$0 sm:$0xff] }
   0x7   :  { %64 = vst [vmem:[%s155_s1 + $0xa] sm:$0x3] %v63_v5  ;;  %65 = vst [vmem:[%s155_s1 + $0x1a] sm:$0x3] %v63_v5 }
   0x8   :  { %67 = vst [vmem:[%s155_s1 + $0xc] sm:$0x3] %v66_v6  ;;  %68 = vst [vmem:[%s155_s1 + $0x1c] sm:$0x3] %v66_v6 }
   0x9   :  { %70 = vst [vmem:[%s155_s1 + $0xe] sm:$0x3] %v69_v7  ;;  %71 = vst [vmem:[%s155_s1 + $0x1e] sm:$0x3] %v69_v7 }

// kernel: tile.42
= control target key start
LH: loop header
LB: loop body
LE: loop exit
PB: predicated region body
PF: predicated region fallthrough
CT: control target
= control target key end

     0   :  { %vm4_vm0 = vcmask 1047556   ;;  %s209_s14 = smov 96   ;;  %s210_s19 = smov 112   ;;  %vm6_vm1 = vcmask 130048   ;;  %vm25_vm2 = vcmask 1048448   ;;  %vm46_vm3 = vcmask 917248   ;;  %s388_s0 = inlined_call_operand.vmem [shape: f32[16,8,16], index: 0, kind: input, shape index: {}]   ;;  %s389_s1 = inlined_call_operand.vmem [shape: f32[16,128], index: 1, kind: output, shape index: {}]  }
   0x1   :  { %v172_v0 = vld [vmem:[%s388_s0 + $0x6] ss:$8 sm:$0xf]   ;;  %v167_v3 = vld [vmem:[%s388_s0 + $0x7] ss:$8 sm:$0xf]  }
   0x2   :  { %v173_v1 = vld [vmem:[%s388_s0 + $0x6] ss:$8 sm:$0xf0]   ;;  %v168_v4 = vld [vmem:[%s388_s0 + $0x7] ss:$8 sm:$0xf0]  }
   0x3   :  { %v43_v2 = vsel %vm4_vm0, %v173_v1, %v172_v0  ;;  %v22_v5 = vsel %vm4_vm0, %v168_v4, %v167_v3  ;;  %v174_v6 = vld [vmem:[%s388_s0 + $0x46] ss:$8 sm:$0xf]   ;;  %v169_v9 = vld [vmem:[%s388_s0 + $0x47] ss:$8 sm:$0xf]  }
   0x4   :  { %44 = vrot.lane.b32.xlu1 %v43_v2, %s209_s14  ;;  %v175_v7 = vld [vmem:[%s388_s0 + $0x46] ss:$8 sm:$0xf0]   ;;  %23 = vrot.lane.b32.xlu0 %v22_v5, %s210_s19  ;;  %v170_v10 = vld [vmem:[%s388_s0 + $0x47] ss:$8 sm:$0xf0]  }
   0x5   :  { %v53_v8 = vsel %vm4_vm0, %v175_v7, %v174_v6  ;;  %v32_v11 = vsel %vm4_vm0, %v170_v10, %v169_v9  ;;  %v179_v12 = vld [vmem:[%s388_s0 + $0x45] ss:$8 sm:$0xf]   ;;  %v184_v18 = vld [vmem:[%s388_s0 + $0x44] ss:$8 sm:$0xf]  }
   0x6   :  { %v180_v13 = vld [vmem:[%s388_s0 + $0x45] ss:$8 sm:$0xf0]   ;;  %v185_v19 = vld [vmem:[%s388_s0 + $0x44] ss:$8 sm:$0xf0]  }
   0x7   :  { %v177_v14 = vld [vmem:[%s388_s0 + $0x5] ss:$8 sm:$0xf]   ;;  %v74_v16 = vsel %vm4_vm0, %v180_v13, %v179_v12  ;;  %v182_v20 = vld [vmem:[%s388_s0 + $0x4] ss:$8 sm:$0xf]   ;;  %v95_v22 = vsel %vm4_vm0, %v185_v19, %v184_v18 }
   0x8   :  { %54 = vrot.lane.b32.xlu1 %v53_v8, %s209_s14  ;;  %v178_v15 = vld [vmem:[%s388_s0 + $0x5] ss:$8 sm:$0xf0]   ;;  %33 = vrot.lane.b32.xlu0 %v32_v11, %s210_s19  ;;  %v183_v21 = vld [vmem:[%s388_s0 + $0x4] ss:$8 sm:$0xf0]  }
   0x9   :  { %v64_v17 = vsel %vm4_vm0, %v178_v15, %v177_v14  ;;  %s211_s11 = smov 80   ;;  %v85_v23 = vsel %vm4_vm0, %v183_v21, %v182_v20  ;;  %v189_v24 = vld [vmem:[%s388_s0 + $0x43] ss:$8 sm:$0xf]   ;;  %s212_s20 = smov 64   ;;  %vm67_vm4 = vcmask 786048  }
   0xa   :  { %v190_v25 = vld [vmem:[%s388_s0 + $0x43] ss:$8 sm:$0xf0]   ;;  %v194_v28 = vld [vmem:[%s388_s0 + $0x42] ss:$8 sm:$0xf]  }
   0xb   :  { %v187_v26 = vld [vmem:[%s388_s0 + $0x3] ss:$8 sm:$0xf]   ;;  %v195_v29 = vld [vmem:[%s388_s0 + $0x42] ss:$8 sm:$0xf0]   ;;  %v116_v30 = vsel %vm4_vm0, %v190_v25, %v189_v24 }
   0xc   :  { %75 = vrot.lane.b32.xlu1 %v74_v16, %s211_s11  ;;  %65 = vrot.lane.b32.xlu0 %v64_v17, %s211_s11  ;;  %v188_v27 = vld [vmem:[%s388_s0 + $0x3] ss:$8 sm:$0xf0]   ;;  %v192_v31 = vld [vmem:[%s388_s0 + $0x2] ss:$8 sm:$0xf]   ;;  %v137_v40 = vsel %vm4_vm0, %v195_v29, %v194_v28 }
   0xd   :  { %v2_v32 = vld [vmem:[%s388_s0] ss:$8 sm:$0xf]   ;;  %v106_v33 = vsel %vm4_vm0, %v188_v27, %v187_v26  ;;  %v193_v36 = vld [vmem:[%s388_s0 + $0x2] ss:$8 sm:$0xf0]  }
   0xe   :  { %v3_v34 = vld [vmem:[%s388_s0] ss:$8 sm:$0xf0]   ;;  %s213_s8 = smov 48   ;;  %v127_v41 = vsel %vm4_vm0, %v193_v36, %v192_v31  ;;  %s215_s21 = smov 16   ;;  %vm88_vm5 = vcmask 654848  }
   0xf   :  { %v164_v35 = vld [vmem:[%s388_s0 + $0x40] ss:$8 sm:$0xf]   ;;  %v5_v37 = vsel %vm4_vm0, %v3_v34, %v2_v32  ;;  %v199_v42 = vld [vmem:[%s388_s0 + $0x41] ss:$8 sm:$0xf]  }
  0x10   :  { %96 = vrot.lane.b32.xlu1 %v95_v22, %s212_s20  ;;  %86 = vrot.lane.b32.xlu0 %v85_v23, %s212_s20  ;;  %v165_v38 = vld [vmem:[%s388_s0 + $0x40] ss:$8 sm:$0xf0]   ;;  %7 = vst.msk [vmem:[%s389_s1] sm:$0xff] %vm6_vm1, %v5_v37   ;;  %vm109_vm6 = vcmask 523648   ;;  %vm130_vm7 = vcmask 392448  }
  0x11   :  { %v13_v39 = vsel %vm4_vm0, %v165_v38, %v164_v35  ;;  %v200_v43 = vld [vmem:[%s388_s0 + $0x41] ss:$8 sm:$0xf0]   ;;  %vm151_vm8 = vcmask 261248  }
  0x12   :  { %166 = vst.msk [vmem:[%s389_s1 + $0x8] sm:$0xff] %vm6_vm1, %v13_v39   ;;  %v197_v44 = vld [vmem:[%s388_s0 + $0x1] ss:$8 sm:$0xf]   ;;  %v158_v46 = vsel %vm4_vm0, %v200_v43, %v199_v42 }
  0x13   :  { %v198_v45 = vld [vmem:[%s388_s0 + $0x1] ss:$8 sm:$0xf0]   ;;  %s214_s0 = smov 32  }
  0x14   :  { %117 = vrot.lane.b32.xlu1 %v116_v30, %s213_s8  ;;  %107 = vrot.lane.b32.xlu0 %v106_v33, %s213_s8  ;;  %v148_v47 = vsel %vm4_vm0, %v198_v45, %v197_v44 }
  0x18   :  { %138 = vrot.lane.b32.xlu1 %v137_v40, %s214_s0  ;;  %128 = vrot.lane.b32.xlu0 %v127_v41, %s214_s0 }
  0x1c   :  { %159 = vrot.lane.b32.xlu1 %v158_v46, %s215_s21  ;;  %149 = vrot.lane.b32.xlu0 %v148_v47, %s215_s21 }
  0x76   :  { %v45_v48 = vpop.permute.xlu1 %44   ;;  %v24_v49 = vpop.permute.xlu0 %23  }
  0x77   :  { %26 = vst.msk [vmem:[%s389_s1] sm:$0xff] %vm25_vm2, %v24_v49  }
  0x78   :  { %47 = vst.msk [vmem:[%s389_s1] sm:$0xff] %vm46_vm3, %v45_v48  }
  0x7a   :  { %v55_v50 = vpop.permute.xlu1 %54   ;;  %v34_v51 = vpop.permute.xlu0 %33  }
  0x7b   :  { %171 = vst.msk [vmem:[%s389_s1 + $0x8] sm:$0xff] %vm25_vm2, %v34_v51  }
  0x7c   :  { %176 = vst.msk [vmem:[%s389_s1 + $0x8] sm:$0xff] %vm46_vm3, %v55_v50  }
  0x7e   :  { %v76_v52 = vpop.permute.xlu1 %75   ;;  %v66_v53 = vpop.permute.xlu0 %65  }
  0x7f   :  { %181 = vst.msk [vmem:[%s389_s1 + $0x8] sm:$0xff] %vm67_vm4, %v76_v52   ;;  %68 = vst.msk [vmem:[%s389_s1] sm:$0xff] %vm67_vm4, %v66_v53  }
  0x82   :  { %v97_v54 = vpop.permute.xlu1 %96   ;;  %v87_v55 = vpop.permute.xlu0 %86  }
  0x83   :  { %186 = vst.msk [vmem:[%s389_s1 + $0x8] sm:$0xff] %vm88_vm5, %v97_v54   ;;  %89 = vst.msk [vmem:[%s389_s1] sm:$0xff] %vm88_vm5, %v87_v55  }
  0x86   :  { %v118_v56 = vpop.permute.xlu1 %117   ;;  %v108_v57 = vpop.permute.xlu0 %107  }
  0x87   :  { %191 = vst.msk [vmem:[%s389_s1 + $0x8] sm:$0xff] %vm109_vm6, %v118_v56   ;;  %110 = vst.msk [vmem:[%s389_s1] sm:$0xff] %vm109_vm6, %v108_v57  }
  0x8a   :  { %v139_v58 = vpop.permute.xlu1 %138   ;;  %v129_v59 = vpop.permute.xlu0 %128  }
  0x8b   :  { %196 = vst.msk [vmem:[%s389_s1 + $0x8] sm:$0xff] %vm130_vm7, %v139_v58   ;;  %131 = vst.msk [vmem:[%s389_s1] sm:$0xff] %vm130_vm7, %v129_v59  }
  0x8e   :  { %v160_v60 = vpop.permute.xlu1 %159   ;;  %v150_v61 = vpop.permute.xlu0 %149  }
  0x8f   :  { %201 = vst.msk [vmem:[%s389_s1 + $0x8] sm:$0xff] %vm151_vm8, %v160_v60   ;;  %152 = vst.msk [vmem:[%s389_s1] sm:$0xff] %vm151_vm8, %v150_v61  }

// kernel: decoder_chat_forward.1
= control target key start
LH: loop header
LB: loop body
LE: loop exit
PB: predicated region body
PF: predicated region fallthrough
CT: control target
= control target key end

     0   :  { %s7267_s0 = inlined_call_operand.vmem [shape: s32[16,1], index: 0, kind: input, shape index: {}]   ;;  %s7268_s1 = inlined_call_operand.vmem [shape: f32[128,32], index: 1, kind: input, shape index: {}]   ;;  %s7269_s2 = inlined_call_operand.vmem [shape: f32[128,32], index: 2, kind: input, shape index: {}]   ;;  %s7270_s3 = inlined_call_operand.vmem [shape: f32[16,32], index: 3, kind: input, shape index: {}]   ;;  %s7271_s4 = inlined_call_operand.vmem [shape: f32[16,128], index: 4, kind: input, shape index: {}]   ;;  %s7272_s5 = inlined_call_operand.vmem [shape: f32[16,128], index: 5, kind: input, shape index: {}]   ;;  %s7273_s6 = inlined_call_operand.vmem [shape: f32[128,16], index: 6, kind: input, shape index: {}, may-alias: {6,9}]   ;;  %s7274_s7 = inlined_call_operand.vmem [shape: f32[128,128], index: 7, kind: input, shape index: {}, may-alias: {7,10}]   ;;  %s7275_s8 = inlined_call_operand.vmem [shape: f32[128,64], index: 8, kind: input, shape index: {}, may-alias: {8,11}]   ;;  %s7276_s9 = inlined_call_operand.vmem [shape: f32[128,16], index: 9, kind: input, shape index: {}, may-alias: {6,9}]   ;;  %s7277_s10 = inlined_call_operand.vmem [shape: f32[128,128], index: 10, kind: input, shape index: {}, may-alias: {7,10}]   ;;  %s7278_s11 = inlined_call_operand.vmem [shape: f32[128,64], index: 11, kind: input, shape index: {}, may-alias: {8,11}]   ;;  %s7279_s12 = inlined_call_operand.vmem [shape: f32[2,32,96], index: 12, kind: input, shape index: {}]   ;;  %s7280_s13 = inlined_call_operand.vmem [shape: f32[2,1,96], index: 13, kind: input, shape index: {}]   ;;  %s7281_s14 = inlined_call_operand.vmem [shape: f32[2,32,32], index: 14, kind: input, shape index: {}]   ;;  %s7282_s15 = inlined_call_operand.vmem [shape: f32[2,1,32], index: 15, kind: input, shape index: {}]   ;;  %s7283_s16 = inlined_call_operand.vmem [shape: f32[2,32,32], index: 16, kind: input, shape index: {}]   ;;  %s7284_s17 = inlined_call_operand.vmem [shape: f32[2,1,32], index: 17, kind: input, shape index: {}]   ;;  %s7285_s18 = inlined_call_operand.vmem [shape: f32[2,32,64], index: 18, kind: input, shape index: {}]   ;;  %s7286_s19 = inlined_call_operand.vmem [shape: f32[2,1,64], index: 19, kind: input, shape index: {}]   ;;  %s7287_s20 = inlined_call_operand.vmem [shape: f32[2,32,32], index: 20, kind: input, shape index: {}]   ;;  %s7288_s21 = inlined_call_operand.vmem [shape: f32[2,1,32], index: 21, kind: input, shape index: {}]   ;;  %s7289_s22 = inlined_call_operand.vmem [shape: f32[2,3,32], index: 22, kind: input, shape index: {}]   ;;  %s7290_s23 = inlined_call_operand.vmem [shape: f32[2,3,32], index: 23, kind: input, shape index: {}]   ;;  %s7291_s24 = inlined_call_operand.vmem [shape: f32[2,32,64], index: 24, kind: input, shape index: {}]   ;;  %s7292_s25 = inlined_call_operand.vmem [shape: f32[2,1,64], index: 25, kind: input, shape index: {}]   ;;  %s7293_s26 = inlined_call_operand.vmem [shape: f32[2,64,32], index: 26, kind: input, shape index: {}]   ;;  %s7294_s27 = inlined_call_operand.vmem [shape: f32[2,1,32], index: 27, kind: input, shape index: {}]   ;;  %s7295_s28 = inlined_call_operand.hbm [shape: f32[16,32], index: 28, kind: output, shape index: {}]  }
   0x1   :  { %7314 = sst [smem:[#allocation5_spill]] %s7267_s0 }
   0x2   :  { %7315 = sst [smem:[#allocation6_spill]] %s7268_s1 }
   0x3   :  { %7316 = sst [smem:[#allocation7_spill]] %s7269_s2 }
   0x4   :  { %7317 = sst [smem:[#allocation8_spill]] %s7270_s3 }
   0x5   :  { %7318 = sst [smem:[#allocation9_spill]] %s7271_s4 }
   0x6   :  { %7319 = sst [smem:[#allocation10_spill]] %s7272_s5 }
   0x7   :  { %7320 = sst [smem:[#allocation11_spill]] %s7273_s6 }
   0x8   :  { %7321 = sst [smem:[#allocation12_spill]] %s7274_s7 }
   0x9   :  { %7322 = sst [smem:[#allocation13_spill]] %s7275_s8 }
   0xa   :  { %7323 = sst [smem:[#allocation14_spill]] %s7276_s9 }
   0xb   :  { %7324 = sst [smem:[#allocation15_spill]] %s7277_s10 }
   0xc   :  { %7325 = sst [smem:[#allocation16_spill]] %s7278_s11 }
   0xd   :  { %7326 = sst [smem:[#allocation17_spill]] %s7279_s12 }
   0xe   :  { %7327 = sst [smem:[#allocation18_spill]] %s7287_s20 }
   0xf   :  { %7328 = sst [smem:[#allocation19_spill]] %s7288_s21 }
  0x10   :  { %7329 = sst [smem:[#allocation20_spill]] %s7295_s28 }
  0x11   :  { %s7330_s9 = sld [smem:[#allocation5_spill]]  ;;  %v5541_v2 = vmov 0  }
  0x12   :  { %s7331_s21 = sld [smem:[#allocation6_spill]]  ;;  %5360 = vset.pattern.permute.xlu0 %v5541_v2 }
  0x17   :  { %v92_v0 = vld [vmem:[%s7330_s9] sm:$0xff]  ;;  %v93_v5 = vld [vmem:[%s7330_s9 + $0x8] sm:$0xff] }
  0x18   :  { %v121_v1 = vld [vmem:[%s7331_s21 + $0x78] sm:$0xff]  ;;  %v120_v3 = vld [vmem:[%s7331_s21 + $0x70] sm:$0xff]  ;;  %95 = vperm.xlu0 %5360, %v92_v0   ;;  %v119_v4 = vld [vmem:[%s7331_s21 + $0x68] sm:$0xff] }
  0x19   :  { %4617 = vmatprep.subr.mxu0 %v121_v1  ;;  %v118_v6 = vld [vmem:[%s7331_s21 + $0x60] sm:$0xff]  ;;  %v117_v7 = vld [vmem:[%s7331_s21 + $0x58] sm:$0xff] }
  0x1a   :  { %4618 = vmatpush3.msra.mxu0 %v121_v1 }
  0x1b   :  { %4619 = vmatprep.subr.mxu0 %v120_v3 }
  0x1c   :  { %4620 = vmatpush3.msra.mxu0 %v120_v3  ;;  %98 = vperm.xlu0 %5360, %v93_v5  }
  0x1d   :  { %4621 = vmatprep.subr.mxu0 %v119_v4 }
  0x1e   :  { %4622 = vmatpush3.msra.mxu0 %v119_v4 }
  0x1f   :  { %33 = vsyncpa [#allocation3], 0  ;;  %4623 = vmatprep.subr.mxu0 %v118_v6  ;;  %v116_v8 = vld [vmem:[%s7331_s21 + $0x50] sm:$0xff]  ;;  %v115_v9 = vld [vmem:[%s7331_s21 + $0x48] sm:$0xff]  ;;  %v90_v19 = vlaneseq  ;;  %v5542_v22 = vmov 1.0   ;;  %s7332_s29 = sld [smem:[#allocation17_spill]] }
  0x20   :  { %4624 = vmatpush3.msra.mxu0 %v118_v6  ;;  %v114_v10 = vld [vmem:[%s7331_s21 + $0x40] sm:$0xff]  ;;  %v113_v11 = vld [vmem:[%s7331_s21 + $0x38] sm:$0xff]  ;;  %v112_v12 = vld [vmem:[%s7331_s21 + $0x30] sm:$0xff]  ;;  %s7333_s9 = sld [smem:[#allocation7_spill]]  ;;  %vm317_vm2 = vcmask 261120   ;;  %vm412_vm3 = vcmask 130048  }
  0x21   :  { %4625 = vmatprep.subr.mxu0 %v117_v7  ;;  %v111_v13 = vld [vmem:[%s7331_s21 + $0x28] sm:$0xff]  ;;  %v110_v14 = vld [vmem:[%s7331_s21 + $0x20] sm:$0xff]  ;;  %v109_v15 = vld [vmem:[%s7331_s21 + $0x18] sm:$0xff]  ;;  %v91_v20 = vand.u32 127, %v90_v19  ;;  %s7334_s6 = sld [smem:[#allocation11_spill]]  ;;  %s7309_s11 = smov 96  }
  0x22   :  { %4626 = vmatpush3.msra.mxu0 %v117_v7  ;;  %v108_v16 = vld [vmem:[%s7331_s21 + $0x10] sm:$0xff]  ;;  %v107_v17 = vld [vmem:[%s7331_s21 + $0x8] sm:$0xff]  ;;  %v106_v18 = vld [vmem:[%s7331_s21] sm:$0xff]  ;;  %s7335_s8 = sld [smem:[#allocation13_spill]]  ;;  %s7343_s30 = smov 96   ;;  %vm2064_vm4 = vcmask 523264  }
  0x23   :  { %4627 = vmatprep.subr.mxu0 %v116_v8  ;;  %v4000_v36 = vld [vmem:[%s7280_s13] ss:$0 sm:$0xff]  ;;  %s7336_s7 = sld [smem:[#allocation12_spill]] }
  0x24   :  { %4628 = vmatpush3.msra.mxu0 %v116_v8  ;;  %s7338_s21 = sld [smem:[#allocation8_spill]] }
  0x25   :  { %4629 = vmatprep.subr.mxu0 %v115_v9  ;;  %v309_v24 = vld [vmem:[%s7332_s29 + $0x18] sm:$0xff]  ;;  %v308_v25 = vld [vmem:[%s7332_s29 + $0x10] sm:$0xff]  ;;  %v307_v26 = vld [vmem:[%s7332_s29 + $0x8] sm:$0xff]  ;;  %s7339_s12 = sld [smem:[#allocation14_spill]] }
  0x26   :  { %4630 = vmatpush3.msra.mxu0 %v115_v9  ;;  %4652 = vmatprep.subr.mxu1 %v309_v24  ;;  %v306_v27 = vld [vmem:[%s7332_s29] sm:$0xff]  ;;  %s7340_s3 = sld [smem:[#allocation16_spill]] }
  0x27   :  { %4631 = vmatprep.subr.mxu0 %v114_v10  ;;  %4653 = vmatpush3.msra.mxu1 %v309_v24  ;;  %v199_v31 = vld [vmem:[%s7333_s9] sm:$0xff]  ;;  %v209_v43 = vld [vmem:[%s7334_s6 + $0x8] sm:$0xff]  ;;  %v210_v44 = vld [vmem:[%s7334_s6 + $0x10] sm:$0xff]  ;;  %s7337_s9 = sld [smem:[#allocation9_spill]] }
  0x28   :  { %4632 = vmatpush3.msra.mxu0 %v114_v10  ;;  %4654 = vmatprep.subr.mxu1 %v308_v25  ;;  %v208_v35 = vld [vmem:[%s7334_s6] sm:$0xff]  ;;  %v211_v45 = vld [vmem:[%s7334_s6 + $0x18] sm:$0xff]  ;;  %v213_v47 = vld [vmem:[%s7334_s6 + $0x28] sm:$0xff]  ;;  %s7341_s4 = sld [smem:[#allocation15_spill]] }
  0x29   :  { %4633 = vmatprep.subr.mxu0 %v113_v11  ;;  %4655 = vmatpush3.msra.mxu1 %v308_v25  ;;  %v212_v46 = vld [vmem:[%s7334_s6 + $0x20] sm:$0xff]  ;;  %v214_v48 = vld [vmem:[%s7334_s6 + $0x30] sm:$0xff]  ;;  %v215_v49 = vld [vmem:[%s7334_s6 + $0x38] sm:$0xff]  ;;  %s7342_s10 = sld [smem:[#allocation10_spill]] }
  0x2a   :  { %4634 = vmatpush3.msra.mxu0 %v113_v11  ;;  %4656 = vmatprep.subr.mxu1 %v307_v26  ;;  %v216_v50 = vld [vmem:[%s7334_s6 + $0x40] sm:$0xff]  ;;  %v217_v51 = vld [vmem:[%s7334_s6 + $0x48] sm:$0xff]  ;;  %v218_v52 = vld [vmem:[%s7334_s6 + $0x50] sm:$0xff]  ;;  %s7344_s2 = sld [smem:[#allocation19_spill]] }
  0x2b   :  { %4635 = vmatprep.subr.mxu0 %v112_v12  ;;  %4657 = vmatpush3.msra.mxu1 %v307_v26  ;;  %v219_v53 = vld [vmem:[%s7334_s6 + $0x58] sm:$0xff]  ;;  %v220_v54 = vld [vmem:[%s7334_s6 + $0x60] sm:$0xff]  ;;  %v221_v55 = vld [vmem:[%s7334_s6 + $0x68] sm:$0xff]  ;;  %s7345_s28 = sld [smem:[#allocation16_spill]] }
  0x2c   :  { %4636 = vmatpush3.msra.mxu0 %v112_v12  ;;  %4658 = vmatprep.subr.mxu1 %v306_v27  ;;  %v222_v56 = vld [vmem:[%s7334_s6 + $0x70] sm:$0xff]  ;;  %v223_v57 = vld [vmem:[%s7334_s6 + $0x78] sm:$0xff]  ;;  %v248_v25 = vld [vmem:[%s7335_s8 + $0x40] sm:$0xff]  ;;  %s7347_s0 = sld [smem:[#allocation19_spill]] }
  0x2d   :  { %4637 = vmatprep.subr.mxu0 %v111_v13  ;;  %4659 = vmatpush3.msra.mxu1 %v306_v27  ;;  %v255_v8 = vld [vmem:[%s7335_s8 + $0x78] sm:$0xff]  ;;  %v254_v10 = vld [vmem:[%s7335_s8 + $0x70] sm:$0xff] }
  0x2e   :  { %4638 = vmatpush3.msra.mxu0 %v111_v13  ;;  %v247_v27 = vld [vmem:[%s7335_s8 + $0x38] sm:$0xff] }
  0x2f   :  { %4639 = vmatprep.subr.mxu0 %v110_v14 }
  0x30   :  { %4640 = vmatpush3.msra.mxu0 %v110_v14  ;;  %v253_v14 = vld [vmem:[%s7335_s8 + $0x68] sm:$0xff] }
  0x31   :  { %4641 = vmatprep.subr.mxu0 %v109_v15 }
  0x32   :  { %4642 = vmatpush3.msra.mxu0 %v109_v15 }
  0x33   :  { %4643 = vmatprep.subr.mxu0 %v108_v16 }
  0x34   :  { %4644 = vmatpush3.msra.mxu0 %v108_v16  ;;  %v252_v16 = vld [vmem:[%s7335_s8 + $0x60] sm:$0xff] }
  0x35   :  { %4645 = vmatprep.subr.mxu0 %v107_v17 }
  0x36   :  { %4646 = vmatpush3.msra.mxu0 %v107_v17 }
  0x37   :  { %4647 = vmatprep.subr.mxu0 %v106_v18 }
  0x38   :  { %4648 = vmatpush3.msra.mxu0 %v106_v18  ;;  %v251_v18 = vld [vmem:[%s7335_s8 + $0x58] sm:$0xff] }
  0x93   :  { %v96_v21 = vpop.permute.xlu0 %95 }
  0x94   :  { %vm100_vm0 = vcmp.eq.s32.totalorder %v91_v20, %v96_v21  ;;  %v250_v21 = vld [vmem:[%s7335_s8 + $0x50] sm:$0xff] }
  0x95   :  { %4649 = vmatprep.mubr.msk.f32.mxu0 %vm100_vm0, %v5542_v22 }
  0x97   :  { %v99_v23 = vpop.permute.xlu0 %98 }
  0x98   :  { %vm101_vm1 = vcmp.eq.s32.totalorder %v91_v20, %v99_v23  ;;  %v249_v23 = vld [vmem:[%s7335_s8 + $0x48] sm:$0xff] }
  0x99   :  { %4650 = vmatmul.mubr.msk.f32.vlgmr.msra.gmra.mxu0 %vm101_vm1, %v5542_v22 }
 0x159   :  { %v4651_v28 = vpop.f32.mrf.mxu0 }
 0x15a   :  { %v198_v29 = vmul.f32 5.656854, %v4651_v28 }
 0x15b   :  { %v188_v30 = vpop.f32.mrf.mxu0 }
 0x15c   :  { %v197_v32 = vmul.f32 5.656854, %v188_v30  ;;  %v5764_v34 = vadd.f32 %v199_v31, %v198_v29  ;;  %v246_v29 = vld [vmem:[%s7335_s8 + $0x30] sm:$0xff] }
 0x15e   :  { %v5762_v33 = vadd.f32 %v199_v31, %v197_v32  ;;  %v245_v31 = vld [vmem:[%s7335_s8 + $0x28] sm:$0xff] }
 0x160   :  { %4660 = vmatprep.mubr.msk.f32.mxu1 %vm317_vm2, %v5762_v33 }
 0x161   :  { %4661 = vmatmul.mubr.msk.f32.vlgmr.msra.gmra.mxu1 %vm317_vm2, %v5764_v34 }
 0x162   :  { %4667 = vmatprep.mubr.msk.f32.mxu1 %vm412_vm3, %v208_v35  ;;  %v244_v35 = vld [vmem:[%s7335_s8 + $0x20] sm:$0xff] }
 0x221   :  { %v4662_v37 = vpop.f32.mrf.mxu1 }
 0x222   :  { %v5777_v38 = vadd.f32 %v4662_v37, %v4000_v36  ;;  %v243_v37 = vld [vmem:[%s7335_s8 + $0x18] sm:$0xff] }
 0x223   :  { %v390_v39 = vpop.f32.mrf.mxu1 }
 0x224   :  { %408 = vrot.lane.b32.xlu1 %v5777_v38, %s7309_s11  ;;  %v391_v40 = vadd.f32 %v4000_v36, %v390_v39 }
 0x228   :  { %406 = vrot.lane.b32.xlu1 %v391_v40, %s7309_s11 }
 0x296   :  { %v409_v41 = vpop.permute.xlu1 %408 }
 0x297   :  { %4663 = vmatprep.subr.mxu1 %v409_v41 }
 0x298   :  { %4664 = vmatpush3.msra.mxu1 %v409_v41 }
 0x29a   :  { %v407_v42 = vpop.permute.xlu1 %406 }
 0x29b   :  { %4665 = vmatprep.subr.mxu1 %v407_v42 }
 0x29c   :  { %4666 = vmatpush3.msra.mxu1 %v407_v42  ;;  %v241_v42 = vld [vmem:[%s7335_s8 + $0x8] sm:$0xff] }
 0x29d   :  { %4668 = vmatmul.mubr.msk.f32.vlgmr.msra.gmra.mxu1 %vm412_vm3, %v209_v43 }
 0x29e   :  { %4670 = vmatprep.mubr.msk.f32.mxu1 %vm412_vm3, %v210_v44  ;;  %v240_v44 = vld [vmem:[%s7335_s8] sm:$0xff] }
 0x2a1   :  { %4671 = vmatmul.mubr.msk.f32.gmra.mxu1 %vm412_vm3, %v211_v45 }
 0x2a2   :  { %4673 = vmatprep.mubr.msk.f32.mxu1 %vm412_vm3, %v212_v46  ;;  %v239_v46 = vld [vmem:[%s7336_s7 + $0x78] sm:$0xff] }
 0x2a3   :  { %4726 = vmatprep.subr.mxu0 %v239_v46 }
 0x2a4   :  { %4727 = vmatpush3.msra.mxu0 %v239_v46 }
 0x2a5   :  { %4674 = vmatmul.mubr.msk.f32.gmra.mxu1 %vm412_vm3, %v213_v47  ;;  %v238_v47 = vld [vmem:[%s7336_s7 + $0x70] sm:$0xff] }
 0x2a6   :  { %4676 = vmatprep.mubr.msk.f32.mxu1 %vm412_vm3, %v214_v48  ;;  %v237_v48 = vld [vmem:[%s7336_s7 + $0x68] sm:$0xff]  ;;  %4728 = vmatprep.subr.mxu0 %v238_v47 }
 0x2a7   :  { %4729 = vmatpush3.msra.mxu0 %v238_v47 }
 0x2a8   :  { %4730 = vmatprep.subr.mxu0 %v237_v48 }
 0x2a9   :  { %4677 = vmatmul.mubr.msk.f32.gmra.mxu1 %vm412_vm3, %v215_v49  ;;  %4731 = vmatpush3.msra.mxu0 %v237_v48  ;;  %v235_v49 = vld [vmem:[%s7336_s7 + $0x58] sm:$0xff] }
 0x2aa   :  { %4679 = vmatprep.mubr.msk.f32.mxu1 %vm412_vm3, %v216_v50  ;;  %v234_v50 = vld [vmem:[%s7336_s7 + $0x50] sm:$0xff] }
 0x2ad   :  { %4680 = vmatmul.mubr.msk.f32.gmra.mxu1 %vm412_vm3, %v217_v51  ;;  %v233_v51 = vld [vmem:[%s7336_s7 + $0x48] sm:$0xff] }
 0x2ae   :  { %4682 = vmatprep.mubr.msk.f32.mxu1 %vm412_vm3, %v218_v52  ;;  %v232_v52 = vld [vmem:[%s7336_s7 + $0x40] sm:$0xff] }
 0x2b1   :  { %4683 = vmatmul.mubr.msk.f32.gmra.mxu1 %vm412_vm3, %v219_v53  ;;  %v231_v53 = vld [vmem:[%s7336_s7 + $0x38] sm:$0xff] }
 0x2b2   :  { %4685 = vmatprep.mubr.msk.f32.mxu1 %vm412_vm3, %v220_v54  ;;  %v230_v54 = vld [vmem:[%s7336_s7 + $0x30] sm:$0xff] }
 0x2b5   :  { %4686 = vmatmul.mubr.msk.f32.gmra.mxu1 %vm412_vm3, %v221_v55  ;;  %v229_v55 = vld [vmem:[%s7336_s7 + $0x28] sm:$0xff] }
 0x2b6   :  { %4688 = vmatprep.mubr.msk.f32.mxu1 %vm412_vm3, %v222_v56  ;;  %v228_v56 = vld [vmem:[%s7336_s7 + $0x20] sm:$0xff] }
 0x2b9   :  { %4689 = vmatmul.mubr.msk.f32.gmra.mxu1 %vm412_vm3, %v223_v57  ;;  %v227_v57 = vld [vmem:[%s7336_s7 + $0x18] sm:$0xff] }
 0x2ba   :  { %4723 = vmatprep.mubr.msk.f32.mxu1 %vm317_vm2, %v391_v40  ;;  %v242_v40 = vld [vmem:[%s7335_s8 + $0x10] sm:$0xff] }
 0x35d   :  { %v5843_v58 = vpop.f32.mrf.mxu1 }
 0x35e   :  { %v5978_v43 = vmul.f32 %v5843_v58, %v241_v42  ;;  %v205_v58 = vld [vmem:[%s7337_s9 + $0x8] sm:$0xff] }
 0x35f   :  { %v5845_v59 = vpop.f32.mrf.mxu1 }
 0x360   :  { %v5988_v45 = vmul.f32 %v5845_v59, %v240_v44 }
 0x361   :  { %v4672_v60 = vpop.f32.mrf.mxu1 }
 0x362   :  { %v5958_v39 = vmul.f32 %v4672_v60, %v243_v37  ;;  %v204_v60 = vld [vmem:[%s7337_s9] sm:$0xff] }
 0x363   :  { %v5847_v61 = vpop.f32.mrf.mxu1 }
 0x364   :  { %v5968_v41 = vmul.f32 %v5847_v61, %v242_v40  ;;  %v399_v40 = vld [vmem:[%s7281_s14] sm:$0xff] }
 0x365   :  { %v4675_v62 = vpop.f32.mrf.mxu1 }
 0x366   :  { %v5940_v32 = vmul.f32 %v4675_v62, %v245_v31 }
 0x367   :  { %v547_v63 = vpop.f32.mrf.mxu1 }
 0x368   :  { %v5949_v36 = vmul.f32 %v547_v63, %v244_v35 }
 0x369   :  { %v4678_v0 = vpop.f32.mrf.mxu1 }
 0x36a   :  { %v5922_v28 = vmul.f32 %v4678_v0, %v247_v27  ;;  %v226_v0 = vld [vmem:[%s7336_s7 + $0x10] sm:$0xff] }
 0x36b   :  { %v557_v1 = vpop.f32.mrf.mxu1 }
 0x36c   :  { %v5931_v30 = vmul.f32 %v557_v1, %v246_v29  ;;  %v225_v1 = vld [vmem:[%s7336_s7 + $0x8] sm:$0xff]  ;;  %v401_v29 = vld [vmem:[%s7281_s14 + $0x10] sm:$0xff] }
 0x36d   :  { %v4681_v2 = vpop.f32.mrf.mxu1 }
 0x36e   :  { %v5904_v24 = vmul.f32 %v4681_v2, %v249_v23  ;;  %v224_v2 = vld [vmem:[%s7336_s7] sm:$0xff] }
 0x36f   :  { %v567_v3 = vpop.f32.mrf.mxu1 }
 0x370   :  { %v5913_v26 = vmul.f32 %v567_v3, %v248_v25 }
 0x371   :  { %v4684_v4 = vpop.f32.mrf.mxu1 }
 0x372   :  { %v5886_v20 = vmul.f32 %v4684_v4, %v251_v18 }
 0x373   :  { %v577_v5 = vpop.f32.mrf.mxu1 }
 0x374   :  { %v5895_v22 = vmul.f32 %v577_v5, %v250_v21 }
 0x375   :  { %v4687_v6 = vpop.f32.mrf.mxu1 }
 0x376   :  { %v5868_v15 = vmul.f32 %v4687_v6, %v253_v14 }
 0x377   :  { %v587_v7 = vpop.f32.mrf.mxu1 }
 0x378   :  { %v5877_v17 = vmul.f32 %v587_v7, %v252_v16 }
 0x379   :  { %v4690_v9 = vpop.f32.mrf.mxu1 }
 0x37a   :  { %v5855_v11 = vmul.f32 %v4690_v9, %v255_v8 }
 0x37b   :  { %v597_v12 = vpop.f32.mrf.mxu1 }
 0x37c   :  { %v5857_v13 = vmul.f32 %v597_v12, %v254_v10  ;;  %4691 = vmatprep.subr.msk.mxu1 %vm317_vm2, %v5855_v11 }
 0x37d   :  { %4692 = vmatpush3.xpose.msk.msra.mxu1 %vm317_vm2, %v5855_v11 }
 0x37e   :  { %4693 = vmatprep.subr.msk.mxu1 %vm317_vm2, %v5857_v13 }
 0x381   :  { %4694 = vmatpush3.xpose.msk.msra.mxu1 %vm317_vm2, %v5857_v13 }
 0x382   :  { %4695 = vmatprep.subr.msk.mxu1 %vm317_vm2, %v5868_v15 }
 0x385   :  { %4696 = vmatpush3.xpose.msk.msra.mxu1 %vm317_vm2, %v5868_v15 }
 0x386   :  { %4697 = vmatprep.subr.msk.mxu1 %vm317_vm2, %v5877_v17 }
 0x389   :  { %4698 = vmatpush3.xpose.msk.msra.mxu1 %vm317_vm2, %v5877_v17 }
 0x38a   :  { %4699 = vmatprep.subr.msk.mxu1 %vm317_vm2, %v5886_v20 }
 0x38d   :  { %4700 = vmatpush3.xpose.msk.msra.mxu1 %vm317_vm2, %v5886_v20 }
 0x38e   :  { %4701 = vmatprep.subr.msk.mxu1 %vm317_vm2, %v5895_v22 }
 0x391   :  { %4702 = vmatpush3.xpose.msk.msra.mxu1 %vm317_vm2, %v5895_v22 }
 0x392   :  { %4703 = vmatprep.subr.msk.mxu1 %vm317_vm2, %v5904_v24 }
 0x395   :  { %4704 = vmatpush3.xpose.msk.msra.mxu1 %vm317_vm2, %v5904_v24 }
 0x396   :  { %4705 = vmatprep.subr.msk.mxu1 %vm317_vm2, %v5913_v26 }
 0x399   :  { %4706 = vmatpush3.xpose.msk.msra.mxu1 %vm317_vm2, %v5913_v26 }
 0x39a   :  { %4707 = vmatprep.subr.msk.mxu1 %vm317_vm2, %v5922_v28 }
 0x39d   :  { %4708 = vmatpush3.xpose.msk.msra.mxu1 %vm317_vm2, %v5922_v28 }
 0x39e   :  { %4709 = vmatprep.subr.msk.mxu1 %vm317_vm2, %v5931_v30 }
 0x3a1   :  { %4710 = vmatpush3.xpose.msk.msra.mxu1 %vm317_vm2, %v5931_v30 }
 0x3a2   :  { %4711 = vmatprep.subr.msk.mxu1 %vm317_vm2, %v5940_v32 }
 0x3a5   :  { %4712 = vmatpush3.xpose.msk.msra.mxu1 %vm317_vm2, %v5940_v32 }
 0x3a6   :  { %4713 = vmatprep.subr.msk.mxu1 %vm317_vm2, %v5949_v36 }
 0x3a9   :  { %4714 = vmatpush3.xpose.msk.msra.mxu1 %vm317_vm2, %v5949_v36 }
 0x3aa   :  { %4715 = vmatprep.subr.msk.mxu1 %vm317_vm2, %v5958_v39 }
 0x3ad   :  { %4716 = vmatpush3.xpose.msk.msra.mxu1 %vm317_vm2, %v5958_v39 }
 0x3ae   :  { %4717 = vmatprep.subr.msk.mxu1 %vm317_vm2, %v5968_v41 }
 0x3b1   :  { %4718 = vmatpush3.xpose.msk.msra.mxu1 %vm317_vm2, %v5968_v41 }
 0x3b2   :  { %4719 = vmatprep.subr.msk.mxu1 %vm317_vm2, %v5978_v43 }
 0x3b5   :  { %4720 = vmatpush3.xpose.msk.msra.mxu1 %vm317_vm2, %v5978_v43 }
 0x3b6   :  { %4721 = vmatprep.subr.msk.mxu1 %vm317_vm2, %v5988_v45 }
 0x3b9   :  { %4722 = vmatpush3.xpose.msk.msra.mxu1 %vm317_vm2, %v5988_v45 }
 0x3bc   :  { %4724 = vmatmul.mubr.msk.f32.vlgmr.msra.gmra.mxu1 %vm317_vm2, %v5777_v38  ;;  %v236_v38 = vld [vmem:[%s7336_s7 + $0x60] sm:$0xff] }
 0x3bd   :  { %4732 = vmatprep.subr.mxu0 %v236_v38 }
 0x3be   :  { %4733 = vmatpush3.msra.mxu0 %v236_v38 }
 0x3bf   :  { %4734 = vmatprep.subr.mxu0 %v235_v49 }
 0x3c0   :  { %4735 = vmatpush3.msra.mxu0 %v235_v49 }
 0x3c1   :  { %4736 = vmatprep.subr.mxu0 %v234_v50 }
 0x3c2   :  { %4737 = vmatpush3.msra.mxu0 %v234_v50 }
 0x3c3   :  { %4738 = vmatprep.subr.mxu0 %v233_v51 }
 0x3c4   :  { %4739 = vmatpush3.msra.mxu0 %v233_v51 }
 0x3c5   :  { %4740 = vmatprep.subr.mxu0 %v232_v52 }
 0x3c6   :  { %4741 = vmatpush3.msra.mxu0 %v232_v52 }
 0x3c7   :  { %4742 = vmatprep.subr.mxu0 %v231_v53 }
 0x3c8   :  { %4743 = vmatpush3.msra.mxu0 %v231_v53 }
 0x3c9   :  { %4744 = vmatprep.subr.mxu0 %v230_v54 }
 0x3ca   :  { %4745 = vmatpush3.msra.mxu0 %v230_v54 }
 0x3cb   :  { %4746 = vmatprep.subr.mxu0 %v229_v55 }
 0x3cc   :  { %4747 = vmatpush3.msra.mxu0 %v229_v55 }
 0x3cd   :  { %4748 = vmatprep.subr.mxu0 %v228_v56 }
 0x3ce   :  { %4749 = vmatpush3.msra.mxu0 %v228_v56 }
 0x3cf   :  { %4750 = vmatprep.subr.mxu0 %v227_v57 }
 0x3d0   :  { %4751 = vmatpush3.msra.mxu0 %v227_v57 }
 0x3d1   :  { %4752 = vmatprep.subr.mxu0 %v226_v0 }
 0x3d2   :  { %4753 = vmatpush3.msra.mxu0 %v226_v0 }
 0x3d3   :  { %4754 = vmatprep.subr.mxu0 %v225_v1 }
 0x3d4   :  { %4755 = vmatpush3.msra.mxu0 %v225_v1 }
 0x3d5   :  { %4756 = vmatprep.subr.mxu0 %v224_v2 }
 0x3d6   :  { %4757 = vmatpush3.msra.mxu0 %v224_v2 }
 0x47c   :  { %v4725_v59 = vpop.f32.mrf.mxu1 }
 0x47d   :  { %v746_v61 = vadd.f32 %v4725_v59, %v205_v58 }
 0x47e   :  { %v740_v62 = vpop.f32.mrf.mxu1 }
 0x47f   :  { %v741_v63 = vadd.f32 %v740_v62, %v204_v60  ;;  %751 = vmax.xlane.f32.xlu1 %v746_v61  ;;  %v1091_v60 = vld [vmem:[%s7283_s16 + $0x10] sm:$0xff]  ;;  %v1089_v62 = vld [vmem:[%s7283_s16] sm:$0xff] }
 0x481   :  { %749 = vmax.xlane.f32.xlu0 %v741_v63 }
 0x490   :  { %866 = vrot.lane.b32.xlu1 %v5857_v13, %s7309_s11 }
 0x494   :  { %862 = vrot.lane.b32.xlu1 %v5877_v17, %s7309_s11 }
 0x497   :  { %868 = vrot.lane.b32.xlu0 %v5855_v11, %s7309_s11 }
 0x498   :  { %858 = vrot.lane.b32.xlu1 %v5895_v22, %s7309_s11 }
 0x49b   :  { %864 = vrot.lane.b32.xlu0 %v5868_v15, %s7309_s11 }
 0x49c   :  { %854 = vrot.lane.b32.xlu1 %v5913_v26, %s7309_s11 }
 0x49f   :  { %860 = vrot.lane.b32.xlu0 %v5886_v20, %s7309_s11 }
 0x4a0   :  { %850 = vrot.lane.b32.xlu1 %v5931_v30, %s7309_s11 }
 0x4a3   :  { %856 = vrot.lane.b32.xlu0 %v5904_v24, %s7309_s11 }
 0x4a4   :  { %846 = vrot.lane.b32.xlu1 %v5949_v36, %s7309_s11 }
 0x4a7   :  { %852 = vrot.lane.b32.xlu0 %v5922_v28, %s7309_s11  ;;  %v402_v28 = vld [vmem:[%s7281_s14 + $0x18] sm:$0xff] }
 0x4a8   :  { %842 = vrot.lane.b32.xlu1 %v5968_v41, %s7309_s11  ;;  %4796 = vmatprep.subr.mxu1 %v402_v28 }
 0x4a9   :  { %4797 = vmatpush3.msra.mxu1 %v402_v28 }
 0x4aa   :  { %4798 = vmatprep.subr.mxu1 %v401_v29 }
 0x4ab   :  { %848 = vrot.lane.b32.xlu0 %v5940_v32, %s7309_s11  ;;  %4799 = vmatpush3.msra.mxu1 %v401_v29 }
 0x4ac   :  { %838 = vrot.lane.b32.xlu1 %v5988_v45, %s7309_s11 }
 0x4af   :  { %844 = vrot.lane.b32.xlu0 %v5958_v39, %s7309_s11  ;;  %v400_v39 = vld [vmem:[%s7281_s14 + $0x8] sm:$0xff] }
 0x4b0   :  { %4800 = vmatprep.subr.mxu1 %v400_v39 }
 0x4b1   :  { %4801 = vmatpush3.msra.mxu1 %v400_v39  ;;  %v258_v39 = vld [vmem:[%s7339_s12 + $0x10] sm:$0xff] }
 0x4b2   :  { %4802 = vmatprep.subr.mxu1 %v399_v40 }
 0x4b3   :  { %840 = vrot.lane.b32.xlu0 %v5978_v43, %s7309_s11  ;;  %4803 = vmatpush3.msra.mxu1 %v399_v40  ;;  %v4037_v43 = vld [vmem:[%s7282_s15] ss:$0 sm:$0xff]  ;;  %v259_v40 = vld [vmem:[%s7339_s12 + $0x18] sm:$0xff] }
 0x508   :  { %v752_v3 = vpop.xlane.xlu1 %751 }
 0x509   :  { %v754_v4 = vsub.f32 %v746_v61, %v752_v3  ;;  %v1090_v61 = vld [vmem:[%s7283_s16 + $0x8] sm:$0xff] }
 0x50a   :  { %v750_v5 = vpop.xlane.xlu0 %749 }
 0x50b   :  { %v753_v6 = vsub.f32 %v741_v63, %v750_v5  ;;  %v757_v7 = vmul.f32 1.442695, %v754_v4  ;;  %v1184_v63 = vld [vmem:[%s7285_s18 + $0x18] sm:$0xff] }
 0x50c   :  { %v867_v10 = vpop.permute.xlu1 %866 }
 0x50d   :  { %v755_v8 = vmul.f32 1.442695, %v753_v6  ;;  %v6123_v6 = vshrl.u32 %v90_v19, 7 }
 0x50e   :  { %v869_v9 = vpop.permute.xlu0 %868 }
 0x50f   :  { %5361 = vpow2.f32 %v755_v8  ;;  %4761 = vmatprep.subr.mxu0 %v869_v9  ;;  %v6131_v8 = vld [vmem:[%s7289_s22] sm:$0x7] }
 0x510   :  { %5363 = vpow2.f32 %v757_v7  ;;  %v863_v12 = vpop.permute.xlu1 %862  ;;  %v6126_v7 = vsub.s32 0, %v6123_v6 }
 0x512   :  { %v865_v11 = vpop.permute.xlu0 %864 }
 0x514   :  { %v859_v16 = vpop.permute.xlu1 %858 }
 0x516   :  { %v861_v13 = vpop.permute.xlu0 %860 }
 0x518   :  { %v855_v18 = vpop.permute.xlu1 %854 }
 0x51a   :  { %v857_v17 = vpop.permute.xlu0 %856 }
 0x51c   :  { %v5362_v14 = vpop.eup %5361  ;;  %v851_v21 = vpop.permute.xlu1 %850 }
 0x51d   :  { %v5364_v15 = vpop.eup %5363  ;;  %4758 = vmatprep.mubr.f32.mxu0 %v5362_v14 }
 0x51e   :  { %4759 = vmatmul.mubr.f32.vlgmr.msra.gmra.mxu0 %v5364_v15  ;;  %v853_v20 = vpop.permute.xlu0 %852 }
 0x51f   :  { %4762 = vmatpush3.msra.mxu0 %v869_v9  ;;  %v6136_v9 = vld [vmem:[%s7290_s23] sm:$0x7] }
 0x520   :  { %4763 = vmatprep.subr.mxu0 %v867_v10  ;;  %v847_v23 = vpop.permute.xlu1 %846 }
 0x521   :  { %4764 = vmatpush3.msra.mxu0 %v867_v10  ;;  %v1080_v10 = vrot.slane %v6131_v8, %v6126_v7 }
 0x522   :  { %4765 = vmatprep.subr.mxu0 %v865_v11  ;;  %v849_v22 = vpop.permute.xlu0 %848 }
 0x523   :  { %4766 = vmatpush3.msra.mxu0 %v865_v11 }
 0x524   :  { %4767 = vmatprep.subr.mxu0 %v863_v12  ;;  %v843_v25 = vpop.permute.xlu1 %842 }
 0x525   :  { %4768 = vmatpush3.msra.mxu0 %v863_v12  ;;  %v1086_v12 = vrot.slane %v6136_v9, %v6126_v7 }
 0x526   :  { %4769 = vmatprep.subr.mxu0 %v861_v13  ;;  %v845_v24 = vpop.permute.xlu0 %844 }
 0x527   :  { %4770 = vmatpush3.msra.mxu0 %v861_v13 }
 0x528   :  { %4771 = vmatprep.subr.mxu0 %v859_v16  ;;  %v839_v27 = vpop.permute.xlu1 %838 }
 0x529   :  { %4772 = vmatpush3.msra.mxu0 %v859_v16 }
 0x52a   :  { %4773 = vmatprep.subr.mxu0 %v857_v17  ;;  %v841_v26 = vpop.permute.xlu0 %840 }
 0x52b   :  { %4774 = vmatpush3.msra.mxu0 %v857_v17 }
 0x52c   :  { %4775 = vmatprep.subr.mxu0 %v855_v18 }
 0x52d   :  { %4776 = vmatpush3.msra.mxu0 %v855_v18 }
 0x52e   :  { %4777 = vmatprep.subr.mxu0 %v853_v20 }
 0x52f   :  { %4778 = vmatpush3.msra.mxu0 %v853_v20  ;;  %v202_v20 = vld [vmem:[%s7338_s21] sm:$0xff] }
 0x530   :  { %4779 = vmatprep.subr.mxu0 %v851_v21 }
 0x531   :  { %4780 = vmatpush3.msra.mxu0 %v851_v21  ;;  %v1183_v21 = vld [vmem:[%s7285_s18 + $0x10] sm:$0xff] }
 0x532   :  { %4781 = vmatprep.subr.mxu0 %v849_v22 }
 0x533   :  { %4782 = vmatpush3.msra.mxu0 %v849_v22  ;;  %v1182_v22 = vld [vmem:[%s7285_s18 + $0x8] sm:$0xff] }
 0x534   :  { %4783 = vmatprep.subr.mxu0 %v847_v23 }
 0x535   :  { %4784 = vmatpush3.msra.mxu0 %v847_v23  ;;  %v1181_v23 = vld [vmem:[%s7285_s18] sm:$0xff] }
 0x536   :  { %4785 = vmatprep.subr.mxu0 %v845_v24 }
 0x537   :  { %4786 = vmatpush3.msra.mxu0 %v845_v24  ;;  %v203_v24 = vld [vmem:[%s7338_s21 + $0x8] sm:$0xff] }
 0x538   :  { %4787 = vmatprep.subr.mxu0 %v843_v25 }
 0x539   :  { %4788 = vmatpush3.msra.mxu0 %v843_v25  ;;  %v256_v25 = vld [vmem:[%s7339_s12] sm:$0xff] }
 0x53a   :  { %4789 = vmatprep.subr.mxu0 %v841_v26 }
 0x53b   :  { %4790 = vmatpush3.msra.mxu0 %v841_v26  ;;  %v4040_v26 = vld [vmem:[%s7284_s17] ss:$0 sm:$0xff] }
 0x53c   :  { %4791 = vmatprep.subr.mxu0 %v839_v27 }
 0x53d   :  { %4792 = vmatpush3.msra.mxu0 %v839_v27 }
 0x5de   :  { %v4760_v30 = vpop.f32.mrf.mxu0 }
 0x5df   :  { %5365 = vrcp.f32 %v4760_v30  ;;  %v4043_v30 = vld [vmem:[%s7286_s19] ss:$0 sm:$0xff] }
 0x5e0   :  { %v825_v31 = vpop.f32.mrf.mxu0 }
 0x5e1   :  { %5367 = vrcp.f32 %v825_v31 }
 0x5ec   :  { %v5366_v32 = vpop.eup %5365 }
 0x5ed   :  { %v837_v37 = vmul.f32 %v5366_v32, %v5364_v15 }
 0x5ee   :  { %v5368_v35 = vpop.eup %5367 }
 0x5ef   :  { %v836_v36 = vmul.f32 %v5368_v35, %v5362_v14 }
 0x5f1   :  { %4793 = vmatprep.mubr.f32.mxu0 %v836_v36 }
 0x5f2   :  { %4794 = vmatmul.mubr.f32.vlgmr.msra.gmra.mxu0 %v837_v37  ;;  %v257_v37 = vld [vmem:[%s7339_s12 + $0x8] sm:$0xff] }
 0x5f3   :  { %4833 = vmatprep.mubr.msk.f32.mxu0 %vm412_vm3, %v256_v25  ;;  %v295_v25 = vld [vmem:[%s7340_s3 + $0x38] sm:$0xff] }
 0x6b2   :  { %v4795_v41 = vpop.f32.mrf.mxu0 }
 0x6b4   :  { %v952_v42 = vpop.f32.mrf.mxu0 }
 0x6b5   :  { %4804 = vmatprep.mubr.msk.f32.mxu1 %vm317_vm2, %v952_v42  ;;  %v261_v42 = vld [vmem:[%s7339_s12 + $0x28] sm:$0xff] }
 0x6b6   :  { %4805 = vmatmul.mubr.msk.f32.vlgmr.msra.gmra.mxu1 %vm317_vm2, %v4795_v41  ;;  %v260_v41 = vld [vmem:[%s7339_s12 + $0x20] sm:$0xff] }
 0x776   :  { %v4806_v44 = vpop.f32.mrf.mxu1 }
 0x777   :  { %v1045_v45 = vadd.f32 %v4806_v44, %v4037_v43  ;;  %v263_v44 = vld [vmem:[%s7339_s12 + $0x38] sm:$0xff] }
 0x778   :  { %v1039_v46 = vpop.f32.mrf.mxu1 }
 0x779   :  { %v1040_v47 = vadd.f32 %v4037_v43, %v1039_v46  ;;  %v1049_v48 = vadd.f32 %v1045_v45, %v5764_v34  ;;  %v262_v43 = vld [vmem:[%s7339_s12 + $0x30] sm:$0xff]  ;;  %v264_v45 = vld [vmem:[%s7339_s12 + $0x40] sm:$0xff]  ;;  %v265_v46 = vld [vmem:[%s7339_s12 + $0x48] sm:$0xff] }
 0x77b   :  { %v1053_v38 = vsel %vm317_vm2, %v1049_v48, 0.0  ;;  %v1048_v49 = vadd.f32 %v1040_v47, %v5762_v33  ;;  %v1092_v33 = vld [vmem:[%s7283_s16 + $0x18] sm:$0xff]  ;;  %v266_v47 = vld [vmem:[%s7339_s12 + $0x50] sm:$0xff] }
 0x77c   :  { %1054 = vadd.xlane.f32.xlu1 %v1053_v38  ;;  %4807 = vmatprep.subr.mxu1 %v1092_v33  ;;  %v268_v38 = vld [vmem:[%s7339_s12 + $0x60] sm:$0xff] }
 0x77d   :  { %v1050_v50 = vsel %vm317_vm2, %v1048_v49, 0.0  ;;  %4808 = vmatpush3.msra.mxu1 %v1092_v33 }
 0x77e   :  { %1051 = vadd.xlane.f32.xlu0 %v1050_v50  ;;  %4809 = vmatprep.subr.mxu1 %v1091_v60  ;;  %v270_v50 = vld [vmem:[%s7339_s12 + $0x70] sm:$0xff] }
 0x77f   :  { %4810 = vmatpush3.msra.mxu1 %v1091_v60 }
 0x780   :  { %4811 = vmatprep.subr.mxu1 %v1090_v61 }
 0x781   :  { %4812 = vmatpush3.msra.mxu1 %v1090_v61 }
 0x782   :  { %4813 = vmatprep.subr.mxu1 %v1089_v62 }
 0x783   :  { %4814 = vmatpush3.msra.mxu1 %v1089_v62 }
 0x784   :  { %4818 = vmatprep.subr.mxu1 %v1184_v63 }
 0x805   :  { %v1055_v51 = vpop.xlane.xlu1 %1054 }
 0x806   :  { %v1058_v52 = vmul.f32 0.03125, %v1055_v51  ;;  %v271_v51 = vld [vmem:[%s7339_s12 + $0x78] sm:$0xff] }
 0x807   :  { %v1052_v53 = vpop.xlane.xlu0 %1051 }
 0x808   :  { %v1057_v54 = vmul.f32 0.03125, %v1052_v53  ;;  %v1060_v55 = vsub.f32 %v1049_v48, %v1058_v52  ;;  %v267_v48 = vld [vmem:[%s7339_s12 + $0x58] sm:$0xff] }
 0x80a   :  { %v1059_v56 = vsub.f32 %v1048_v49, %v1057_v54  ;;  %v1062_v59 = vmul.f32 %v1060_v55, %v1060_v55  ;;  %v269_v49 = vld [vmem:[%s7339_s12 + $0x68] sm:$0xff] }
 0x80c   :  { %v1061_v57 = vmul.f32 %v1059_v56, %v1059_v56  ;;  %v1066_v34 = vsel %vm317_vm2, %v1062_v59, 0.0 }
 0x80e   :  { %v1063_v58 = vsel %vm317_vm2, %v1061_v57, 0.0 }
 0x80f   :  { %1064 = vadd.xlane.f32.xlu0 %v1063_v58 }
 0x813   :  { %1067 = vadd.xlane.f32.xlu0 %v1066_v34 }
 0x898   :  { %v1065_v0 = vpop.xlane.xlu0 %1064 }
 0x899   :  { %v1069_v1 = vmul.f32 0.03125, %v1065_v0 }
 0x89b   :  { %v1071_v2 = vadd.f32 1e-06, %v1069_v1  ;;  %v303_v1 = vld [vmem:[%s7340_s3 + $0x78] sm:$0xff] }
 0x89c   :  { %v1068_v3 = vpop.xlane.xlu0 %1067 }
 0x89d   :  { %5369 = vrsqrt.f32 %v1071_v2  ;;  %v1070_v4 = vmul.f32 0.03125, %v1068_v3  ;;  %v302_v3 = vld [vmem:[%s7340_s3 + $0x70] sm:$0xff] }
 0x89f   :  { %v1072_v5 = vadd.f32 1e-06, %v1070_v4 }
 0x8a1   :  { %5371 = vrsqrt.f32 %v1072_v5 }
 0x8aa   :  { %v5370_v11 = vpop.eup %5369 }
 0x8ab   :  { %v1075_v19 = vmul.f32 %v5370_v11, %v1059_v56  ;;  %v301_v11 = vld [vmem:[%s7340_s3 + $0x68] sm:$0xff] }
 0x8ad   :  { %v1081_v13 = vmul.f32 %v1080_v10, %v1075_v19 }
 0x8ae   :  { %v5372_v14 = vpop.eup %5371 }
 0x8af   :  { %v1076_v15 = vmul.f32 %v5372_v14, %v1060_v55  ;;  %v6142_v16 = vadd.f32 %v1086_v12, %v1081_v13  ;;  %v299_v14 = vld [vmem:[%s7340_s3 + $0x58] sm:$0xff] }
 0x8b1   :  { %v1082_v17 = vmul.f32 %v1080_v10, %v1076_v15  ;;  %4815 = vmatprep.mubr.msk.f32.mxu1 %vm317_vm2, %v6142_v16 }
 0x8b3   :  { %v6146_v18 = vadd.f32 %v1086_v12, %v1082_v17  ;;  %v300_v12 = vld [vmem:[%s7340_s3 + $0x60] sm:$0xff]  ;;  %v298_v17 = vld [vmem:[%s7340_s3 + $0x50] sm:$0xff] }
 0x8b5   :  { %4816 = vmatmul.mubr.msk.f32.vlgmr.msra.gmra.mxu1 %vm317_vm2, %v6146_v18 }
 0x8b6   :  { %4819 = vmatpush3.msra.mxu1 %v1184_v63  ;;  %4826 = vmatprep.mubr.msk.f32.mxu1 %vm317_vm2, %v202_v20 }
 0x8b7   :  { %4820 = vmatprep.subr.mxu1 %v1183_v21 }
 0x8b8   :  { %4821 = vmatpush3.msra.mxu1 %v1183_v21  ;;  %v297_v21 = vld [vmem:[%s7340_s3 + $0x48] sm:$0xff] }
 0x8b9   :  { %4822 = vmatprep.subr.mxu1 %v1182_v22 }
 0x8ba   :  { %4823 = vmatpush3.msra.mxu1 %v1182_v22 }
 0x8bb   :  { %4824 = vmatprep.subr.mxu1 %v1181_v23 }
 0x8bc   :  { %4825 = vmatpush3.msra.mxu1 %v1181_v23  ;;  %v296_v23 = vld [vmem:[%s7340_s3 + $0x40] sm:$0xff] }
 0x8bd   :  { %4827 = vmatmul.mubr.msk.f32.vlgmr.msra.gmra.mxu1 %vm317_vm2, %v203_v24 }
 0x975   :  { %v4817_v27 = vpop.f32.mrf.mxu1 }
 0x976   :  { %v6174_v28 = vadd.f32 %v4817_v27, %v4040_v26  ;;  %v294_v27 = vld [vmem:[%s7340_s3 + $0x30] sm:$0xff] }
 0x977   :  { %v1172_v29 = vpop.f32.mrf.mxu1 }
 0x978   :  { %v1173_v52 = vadd.f32 %v4040_v26, %v1172_v29 }
 0x97d   :  { %v4828_v31 = vpop.f32.mrf.mxu1 }
 0x97e   :  { %v1270_v32 = vadd.f32 %v4828_v31, %v4043_v30 }
 0x97f   :  { %v1264_v35 = vpop.f32.mrf.mxu1 }
 0x980   :  { %v1265_v36 = vadd.f32 %v4043_v30, %v1264_v35  ;;  %4829 = vmatprep.subr.mxu0 %v1270_v32  ;;  %v293_v30 = vld [vmem:[%s7340_s3 + $0x28] sm:$0xff] }
 0x981   :  { %4830 = vmatpush3.msra.mxu0 %v1270_v32  ;;  %v292_v32 = vld [vmem:[%s7340_s3 + $0x20] sm:$0xff] }
 0x982   :  { %4831 = vmatprep.subr.mxu0 %v1265_v36 }
 0x983   :  { %4832 = vmatpush3.msra.mxu0 %v1265_v36  ;;  %v291_v36 = vld [vmem:[%s7340_s3 + $0x18] sm:$0xff] }
 0x984   :  { %4834 = vmatmul.mubr.msk.f32.vlgmr.msra.gmra.mxu0 %vm412_vm3, %v257_v37 }
 0x985   :  { %4836 = vmatprep.mubr.msk.f32.mxu0 %vm412_vm3, %v258_v39  ;;  %v290_v39 = vld [vmem:[%s7340_s3 + $0x10] sm:$0xff] }
 0x988   :  { %4837 = vmatmul.mubr.msk.f32.gmra.mxu0 %vm412_vm3, %v259_v40 }
 0x989   :  { %4839 = vmatprep.mubr.msk.f32.mxu0 %vm412_vm3, %v260_v41  ;;  %v289_v41 = vld [vmem:[%s7340_s3 + $0x8] sm:$0xff] }
 0x98c   :  { %4840 = vmatmul.mubr.msk.f32.gmra.mxu0 %vm412_vm3, %v261_v42 }
 0x98d   :  { %4842 = vmatprep.mubr.msk.f32.mxu0 %vm412_vm3, %v262_v43  ;;  %v288_v43 = vld [vmem:[%s7340_s3] sm:$0xff] }
 0x990   :  { %4843 = vmatmul.mubr.msk.f32.gmra.mxu0 %vm412_vm3, %v263_v44 }
 0x991   :  { %4845 = vmatprep.mubr.msk.f32.mxu0 %vm412_vm3, %v264_v45  ;;  %v287_v45 = vld [vmem:[%s7341_s4 + $0x78] sm:$0xff] }
 0x992   :  { %4892 = vmatprep.subr.mxu1 %v287_v45 }
 0x993   :  { %4893 = vmatpush3.msra.mxu1 %v287_v45  ;;  %v4080_v45 = vld [vmem:[%s7344_s2] ss:$0 sm:$0xff] }
 0x994   :  { %4846 = vmatmul.mubr.msk.f32.gmra.mxu0 %vm412_vm3, %v265_v46  ;;  %v286_v46 = vld [vmem:[%s7341_s4 + $0x70] sm:$0xff] }
 0x995   :  { %4848 = vmatprep.mubr.msk.f32.mxu0 %vm412_vm3, %v266_v47  ;;  %v285_v47 = vld [vmem:[%s7341_s4 + $0x68] sm:$0xff]  ;;  %4894 = vmatprep.subr.mxu1 %v286_v46 }
 0x996   :  { %4895 = vmatpush3.msra.mxu1 %v286_v46 }
 0x997   :  { %4896 = vmatprep.subr.mxu1 %v285_v47 }
 0x998   :  { %4849 = vmatmul.mubr.msk.f32.gmra.mxu0 %vm412_vm3, %v267_v48  ;;  %4897 = vmatpush3.msra.mxu1 %v285_v47  ;;  %v283_v48 = vld [vmem:[%s7341_s4 + $0x58] sm:$0xff] }
 0x999   :  { %4851 = vmatprep.mubr.msk.f32.mxu0 %vm412_vm3, %v268_v38  ;;  %v282_v38 = vld [vmem:[%s7341_s4 + $0x50] sm:$0xff] }
 0x99c   :  { %4852 = vmatmul.mubr.msk.f32.gmra.mxu0 %vm412_vm3, %v269_v49  ;;  %v281_v49 = vld [vmem:[%s7341_s4 + $0x48] sm:$0xff] }
 0x99d   :  { %4854 = vmatprep.mubr.msk.f32.mxu0 %vm412_vm3, %v270_v50  ;;  %v280_v50 = vld [vmem:[%s7341_s4 + $0x40] sm:$0xff] }
 0x9a0   :  { %4855 = vmatmul.mubr.msk.f32.gmra.mxu0 %vm412_vm3, %v271_v51  ;;  %v279_v51 = vld [vmem:[%s7341_s4 + $0x38] sm:$0xff] }
 0x9a1   :  { %4889 = vmatprep.mubr.msk.f32.mxu0 %vm317_vm2, %v1173_v52  ;;  %v278_v52 = vld [vmem:[%s7341_s4 + $0x30] sm:$0xff] }
 0xa44   :  { %v6240_v53 = vpop.f32.mrf.mxu0 }
 0xa45   :  { %v6375_v42 = vmul.f32 %v6240_v53, %v289_v41  ;;  %v277_v53 = vld [vmem:[%s7341_s4 + $0x28] sm:$0xff] }
 0xa46   :  { %v6242_v54 = vpop.f32.mrf.mxu0  ;;  %v1274_v41 = vld [vmem:[%s7287_s20 + $0x8] sm:$0xff] }
 0xa47   :  { %v6385_v44 = vmul.f32 %v6242_v54, %v288_v43  ;;  %v276_v54 = vld [vmem:[%s7341_s4 + $0x20] sm:$0xff] }
 0xa48   :  { %v4838_v55 = vpop.f32.mrf.mxu0 }
 0xa49   :  { %v6355_v37 = vmul.f32 %v4838_v55, %v291_v36  ;;  %v275_v55 = vld [vmem:[%s7341_s4 + $0x18] sm:$0xff] }
 0xa4a   :  { %v6244_v56 = vpop.f32.mrf.mxu0 }
 0xa4b   :  { %v6365_v40 = vmul.f32 %v6244_v56, %v290_v39  ;;  %v207_v56 = vld [vmem:[%s7342_s10 + $0x8] sm:$0xff] }
 0xa4c   :  { %v4841_v57 = vpop.f32.mrf.mxu0 }
 0xa4d   :  { %v6337_v31 = vmul.f32 %v4841_v57, %v293_v30  ;;  %v1276_v30 = vld [vmem:[%s7287_s20 + $0x18] sm:$0xff] }
 0xa4e   :  { %v1412_v58 = vpop.f32.mrf.mxu0 }
 0xa4f   :  { %v6346_v35 = vmul.f32 %v1412_v58, %v292_v32  ;;  %v206_v58 = vld [vmem:[%s7342_s10] sm:$0xff] }
 0xa50   :  { %v4844_v59 = vpop.f32.mrf.mxu0 }
 0xa51   :  { %v6319_v26 = vmul.f32 %v4844_v59, %v295_v25 }
 0xa52   :  { %v1422_v34 = vpop.f32.mrf.mxu0 }
 0xa53   :  { %v6328_v29 = vmul.f32 %v1422_v34, %v294_v27 }
 0xa54   :  { %v4847_v33 = vpop.f32.mrf.mxu0 }
 0xa55   :  { %v6301_v22 = vmul.f32 %v4847_v33, %v297_v21 }
 0xa56   :  { %v1432_v60 = vpop.f32.mrf.mxu0 }
 0xa57   :  { %v6310_v24 = vmul.f32 %v1432_v60, %v296_v23  ;;  %v274_v60 = vld [vmem:[%s7341_s4 + $0x10] sm:$0xff] }
 0xa58   :  { %v4850_v61 = vpop.f32.mrf.mxu0 }
 0xa59   :  { %v6283_v15 = vmul.f32 %v4850_v61, %v299_v14  ;;  %v273_v61 = vld [vmem:[%s7341_s4 + $0x8] sm:$0xff] }
 0xa5a   :  { %v1442_v62 = vpop.f32.mrf.mxu0 }
 0xa5b   :  { %v6292_v20 = vmul.f32 %v1442_v62, %v298_v17  ;;  %v272_v62 = vld [vmem:[%s7341_s4] sm:$0xff] }
 0xa5c   :  { %v4853_v63 = vpop.f32.mrf.mxu0 }
 0xa5d   :  { %v6265_v19 = vmul.f32 %v4853_v63, %v301_v11 }
 0xa5e   :  { %v1452_v0 = vpop.f32.mrf.mxu0 }
 0xa5f   :  { %v6274_v13 = vmul.f32 %v1452_v0, %v300_v12 }
 0xa60   :  { %v4856_v2 = vpop.f32.mrf.mxu0 }
 0xa61   :  { %v6252_v4 = vmul.f32 %v4856_v2, %v303_v1 }
 0xa62   :  { %v1462_v5 = vpop.f32.mrf.mxu0 }
 0xa63   :  { %v6254_v10 = vmul.f32 %v1462_v5, %v302_v3  ;;  %4857 = vmatprep.subr.msk.mxu0 %vm317_vm2, %v6252_v4 }
 0xa64   :  { %4858 = vmatpush3.xpose.msk.msra.mxu0 %vm317_vm2, %v6252_v4 }
 0xa65   :  { %4859 = vmatprep.subr.msk.mxu0 %vm317_vm2, %v6254_v10 }
 0xa68   :  { %4860 = vmatpush3.xpose.msk.msra.mxu0 %vm317_vm2, %v6254_v10 }
 0xa69   :  { %4861 = vmatprep.subr.msk.mxu0 %vm317_vm2, %v6265_v19 }
 0xa6c   :  { %4862 = vmatpush3.xpose.msk.msra.mxu0 %vm317_vm2, %v6265_v19 }
 0xa6d   :  { %4863 = vmatprep.subr.msk.mxu0 %vm317_vm2, %v6274_v13 }
 0xa70   :  { %4864 = vmatpush3.xpose.msk.msra.mxu0 %vm317_vm2, %v6274_v13 }
 0xa71   :  { %4865 = vmatprep.subr.msk.mxu0 %vm317_vm2, %v6283_v15 }
 0xa74   :  { %4866 = vmatpush3.xpose.msk.msra.mxu0 %vm317_vm2, %v6283_v15 }
 0xa75   :  { %4867 = vmatprep.subr.msk.mxu0 %vm317_vm2, %v6292_v20 }
 0xa78   :  { %4868 = vmatpush3.xpose.msk.msra.mxu0 %vm317_vm2, %v6292_v20 }
 0xa79   :  { %4869 = vmatprep.subr.msk.mxu0 %vm317_vm2, %v6301_v22 }
 0xa7c   :  { %4870 = vmatpush3.xpose.msk.msra.mxu0 %vm317_vm2, %v6301_v22 }
 0xa7d   :  { %4871 = vmatprep.subr.msk.mxu0 %vm317_vm2, %v6310_v24 }
 0xa80   :  { %4872 = vmatpush3.xpose.msk.msra.mxu0 %vm317_vm2, %v6310_v24 }
 0xa81   :  { %4873 = vmatprep.subr.msk.mxu0 %vm317_vm2, %v6319_v26 }
 0xa84   :  { %4874 = vmatpush3.xpose.msk.msra.mxu0 %vm317_vm2, %v6319_v26 }
 0xa85   :  { %4875 = vmatprep.subr.msk.mxu0 %vm317_vm2, %v6328_v29 }
 0xa88   :  { %4876 = vmatpush3.xpose.msk.msra.mxu0 %vm317_vm2, %v6328_v29 }
 0xa89   :  { %4877 = vmatprep.subr.msk.mxu0 %vm317_vm2, %v6337_v31 }
 0xa8c   :  { %4878 = vmatpush3.xpose.msk.msra.mxu0 %vm317_vm2, %v6337_v31 }
 0xa8d   :  { %4879 = vmatprep.subr.msk.mxu0 %vm317_vm2, %v6346_v35 }
 0xa90   :  { %4880 = vmatpush3.xpose.msk.msra.mxu0 %vm317_vm2, %v6346_v35 }
 0xa91   :  { %4881 = vmatprep.subr.msk.mxu0 %vm317_vm2, %v6355_v37 }
 0xa94   :  { %4882 = vmatpush3.xpose.msk.msra.mxu0 %vm317_vm2, %v6355_v37 }
 0xa95   :  { %4883 = vmatprep.subr.msk.mxu0 %vm317_vm2, %v6365_v40 }
 0xa98   :  { %4884 = vmatpush3.xpose.msk.msra.mxu0 %vm317_vm2, %v6365_v40 }
 0xa99   :  { %4885 = vmatprep.subr.msk.mxu0 %vm317_vm2, %v6375_v42 }
 0xa9c   :  { %4886 = vmatpush3.xpose.msk.msra.mxu0 %vm317_vm2, %v6375_v42 }
 0xa9d   :  { %4887 = vmatprep.subr.msk.mxu0 %vm317_vm2, %v6385_v44 }
 0xaa0   :  { %4888 = vmatpush3.xpose.msk.msra.mxu0 %vm317_vm2, %v6385_v44 }
 0xaa3   :  { %4890 = vmatmul.mubr.msk.f32.vlgmr.msra.gmra.mxu0 %vm317_vm2, %v6174_v28  ;;  %v284_v28 = vld [vmem:[%s7341_s4 + $0x60] sm:$0xff] }
 0xaa4   :  { %4898 = vmatprep.subr.mxu1 %v284_v28 }
 0xaa5   :  { %4899 = vmatpush3.msra.mxu1 %v284_v28 }
 0xaa6   :  { %4900 = vmatprep.subr.mxu1 %v283_v48 }
 0xaa7   :  { %4901 = vmatpush3.msra.mxu1 %v283_v48 }
 0xaa8   :  { %4902 = vmatprep.subr.mxu1 %v282_v38 }
 0xaa9   :  { %4903 = vmatpush3.msra.mxu1 %v282_v38 }
 0xaaa   :  { %4904 = vmatprep.subr.mxu1 %v281_v49 }
 0xaab   :  { %4905 = vmatpush3.msra.mxu1 %v281_v49 }
 0xaac   :  { %4906 = vmatprep.subr.mxu1 %v280_v50 }
 0xaad   :  { %4907 = vmatpush3.msra.mxu1 %v280_v50 }
 0xaae   :  { %4908 = vmatprep.subr.mxu1 %v279_v51 }
 0xaaf   :  { %4909 = vmatpush3.msra.mxu1 %v279_v51 }
 0xab0   :  { %4910 = vmatprep.subr.mxu1 %v278_v52 }
 0xab1   :  { %4911 = vmatpush3.msra.mxu1 %v278_v52 }
 0xab2   :  { %4912 = vmatprep.subr.mxu1 %v277_v53 }
 0xab3   :  { %4913 = vmatpush3.msra.mxu1 %v277_v53 }
 0xab4   :  { %4914 = vmatprep.subr.mxu1 %v276_v54 }
 0xab5   :  { %4915 = vmatpush3.msra.mxu1 %v276_v54 }
 0xab6   :  { %4916 = vmatprep.subr.mxu1 %v275_v55 }
 0xab7   :  { %4917 = vmatpush3.msra.mxu1 %v275_v55 }
 0xab8   :  { %4918 = vmatprep.subr.mxu1 %v274_v60 }
 0xab9   :  { %4919 = vmatpush3.msra.mxu1 %v274_v60  ;;  %v1956_v60 = vld [vmem:[%s7291_s24 + $0x8] sm:$0xff] }
 0xaba   :  { %4920 = vmatprep.subr.mxu1 %v273_v61 }
 0xabb   :  { %4921 = vmatpush3.msra.mxu1 %v273_v61  ;;  %v1955_v61 = vld [vmem:[%s7291_s24] sm:$0xff] }
 0xabc   :  { %4922 = vmatprep.subr.mxu1 %v272_v62 }
 0xabd   :  { %4923 = vmatpush3.msra.mxu1 %v272_v62  ;;  %v2056_v62 = vld [vmem:[%s7293_s26 + $0x38] sm:$0xff] }
 0xabe   :  { %4984 = vmatprep.subr.mxu0 %v2056_v62 }
 0xabf   :  { %4985 = vmatpush3.msra.mxu0 %v2056_v62 }
 0xb63   :  { %v4891_v57 = vpop.f32.mrf.mxu0 }
 0xb64   :  { %v1613_v59 = vadd.f32 %v4891_v57, %v207_v56 }
 0xb65   :  { %v1607_v34 = vpop.f32.mrf.mxu0 }
 0xb66   :  { %v1608_v33 = vadd.f32 %v1607_v34, %v206_v58  ;;  %1618 = vmax.xlane.f32.xlu0 %v1613_v59 }
 0xb68   :  { %1616 = vmax.xlane.f32.xlu1 %v1608_v33 }
 0xb79   :  { %1735 = vrot.lane.b32.xlu1 %v6252_v4, %s7343_s30 }
 0xb7c   :  { %1733 = vrot.lane.b32.xlu0 %v6254_v10, %s7343_s30 }
 0xb7d   :  { %1731 = vrot.lane.b32.xlu1 %v6265_v19, %s7343_s30 }
 0xb80   :  { %1727 = vrot.lane.b32.xlu0 %v6283_v15, %s7343_s30 }
 0xb81   :  { %1729 = vrot.lane.b32.xlu1 %v6274_v13, %s7343_s30 }
 0xb84   :  { %1723 = vrot.lane.b32.xlu0 %v6301_v22, %s7343_s30 }
 0xb85   :  { %1725 = vrot.lane.b32.xlu1 %v6292_v20, %s7343_s30 }
 0xb88   :  { %1719 = vrot.lane.b32.xlu0 %v6319_v26, %s7343_s30 }
 0xb89   :  { %1721 = vrot.lane.b32.xlu1 %v6310_v24, %s7343_s30 }
 0xb8c   :  { %1715 = vrot.lane.b32.xlu0 %v6337_v31, %s7343_s30 }
 0xb8d   :  { %1717 = vrot.lane.b32.xlu1 %v6328_v29, %s7343_s30 }
 0xb90   :  { %1711 = vrot.lane.b32.xlu0 %v6355_v37, %s7343_s30 }
 0xb91   :  { %1713 = vrot.lane.b32.xlu1 %v6346_v35, %s7343_s30 }
 0xb94   :  { %1707 = vrot.lane.b32.xlu0 %v6375_v42, %s7343_s30  ;;  %v1273_v42 = vld [vmem:[%s7287_s20] sm:$0xff] }
 0xb95   :  { %1709 = vrot.lane.b32.xlu1 %v6365_v40, %s7343_s30  ;;  %v1275_v40 = vld [vmem:[%s7287_s20 + $0x10] sm:$0xff] }
 0xb99   :  { %1705 = vrot.lane.b32.xlu1 %v6385_v44, %s7343_s30 }
 0xbef   :  { %v1619_v63 = vpop.xlane.xlu0 %1618 }
 0xbf0   :  { %v1621_v0 = vsub.f32 %v1613_v59, %v1619_v63  ;;  %v2055_v63 = vld [vmem:[%s7293_s26 + $0x30] sm:$0xff] }
 0xbf1   :  { %v1617_v1 = vpop.xlane.xlu1 %1616  ;;  %4986 = vmatprep.subr.mxu0 %v2055_v63 }
 0xbf2   :  { %v1620_v2 = vsub.f32 %v1608_v33, %v1617_v1  ;;  %v1624_v3 = vmul.f32 1.442695, %v1621_v0  ;;  %v1957_v33 = vld [vmem:[%s7291_s24 + $0x10] sm:$0xff]  ;;  %v2054_v0 = vld [vmem:[%s7293_s26 + $0x28] sm:$0xff]  ;;  %4987 = vmatpush3.msra.mxu0 %v2055_v63  ;;  %v2053_v1 = vld [vmem:[%s7293_s26 + $0x20] sm:$0xff] }
 0xbf3   :  { %v1734_v11 = vpop.permute.xlu0 %1733  ;;  %4988 = vmatprep.subr.mxu0 %v2054_v0 }
 0xbf4   :  { %v1622_v4 = vmul.f32 1.442695, %v1620_v2  ;;  %4989 = vmatpush3.msra.mxu0 %v2054_v0 }
 0xbf5   :  { %v1736_v5 = vpop.permute.xlu1 %1735  ;;  %4990 = vmatprep.subr.mxu0 %v2053_v1 }
 0xbf6   :  { %5373 = vpow2.f32 %v1622_v4  ;;  %4927 = vmatprep.subr.mxu1 %v1736_v5  ;;  %4991 = vmatpush3.msra.mxu0 %v2053_v1 }
 0xbf7   :  { %5375 = vpow2.f32 %v1624_v3  ;;  %v1728_v12 = vpop.permute.xlu0 %1727 }
 0xbf9   :  { %v1732_v10 = vpop.permute.xlu1 %1731 }
 0xbfb   :  { %v1724_v17 = vpop.permute.xlu0 %1723 }
 0xbfd   :  { %v1730_v19 = vpop.permute.xlu1 %1729 }
 0xbff   :  { %v1720_v21 = vpop.permute.xlu0 %1719 }
 0xc01   :  { %v1726_v15 = vpop.permute.xlu1 %1725 }
 0xc03   :  { %v5374_v13 = vpop.eup %5373  ;;  %v1716_v23 = vpop.permute.xlu0 %1715 }
 0xc04   :  { %v5376_v14 = vpop.eup %5375  ;;  %4924 = vmatprep.mubr.f32.mxu1 %v5374_v13 }
 0xc05   :  { %4925 = vmatmul.mubr.f32.vlgmr.msra.gmra.mxu1 %v5376_v14  ;;  %v1722_v20 = vpop.permute.xlu1 %1721 }
 0xc06   :  { %4928 = vmatpush3.msra.mxu1 %v1736_v5 }
 0xc07   :  { %4929 = vmatprep.subr.mxu1 %v1734_v11  ;;  %v1712_v25 = vpop.permute.xlu0 %1711 }
 0xc08   :  { %4930 = vmatpush3.msra.mxu1 %v1734_v11 }
 0xc09   :  { %4931 = vmatprep.subr.mxu1 %v1732_v10  ;;  %v1718_v22 = vpop.permute.xlu1 %1717 }
 0xc0a   :  { %4932 = vmatpush3.msra.mxu1 %v1732_v10 }
 0xc0b   :  { %4933 = vmatprep.subr.mxu1 %v1730_v19  ;;  %v1708_v27 = vpop.permute.xlu0 %1707 }
 0xc0c   :  { %4934 = vmatpush3.msra.mxu1 %v1730_v19  ;;  %v6529_v19 = vsub.s32 1, %v6123_v6 }
 0xc0d   :  { %4935 = vmatprep.subr.mxu1 %v1728_v12  ;;  %v1714_v24 = vpop.permute.xlu1 %1713 }
 0xc0e   :  { %4936 = vmatpush3.msra.mxu1 %v1728_v12  ;;  %v1946_v12 = vrot.slane %v6131_v8, %v6529_v19 }
 0xc0f   :  { %4937 = vmatprep.subr.mxu1 %v1726_v15 }
 0xc10   :  { %4938 = vmatpush3.msra.mxu1 %v1726_v15  ;;  %v1952_v15 = vrot.slane %v6136_v9, %v6529_v19 }
 0xc11   :  { %4939 = vmatprep.subr.mxu1 %v1724_v17  ;;  %v1710_v26 = vpop.permute.xlu1 %1709 }
 0xc12   :  { %4940 = vmatpush3.msra.mxu1 %v1724_v17 }
 0xc13   :  { %4941 = vmatprep.subr.mxu1 %v1722_v20 }
 0xc14   :  { %4942 = vmatpush3.msra.mxu1 %v1722_v20 }
 0xc15   :  { %4943 = vmatprep.subr.mxu1 %v1720_v21  ;;  %v1706_v29 = vpop.permute.xlu1 %1705 }
 0xc16   :  { %4944 = vmatpush3.msra.mxu1 %v1720_v21 }
 0xc17   :  { %4945 = vmatprep.subr.mxu1 %v1718_v22 }
 0xc18   :  { %4946 = vmatpush3.msra.mxu1 %v1718_v22 }
 0xc19   :  { %4947 = vmatprep.subr.mxu1 %v1716_v23 }
 0xc1a   :  { %4948 = vmatpush3.msra.mxu1 %v1716_v23 }
 0xc1b   :  { %4949 = vmatprep.subr.mxu1 %v1714_v24 }
 0xc1c   :  { %4950 = vmatpush3.msra.mxu1 %v1714_v24 }
 0xc1d   :  { %4951 = vmatprep.subr.mxu1 %v1712_v25 }
 0xc1e   :  { %4952 = vmatpush3.msra.mxu1 %v1712_v25  ;;  %v2052_v25 = vld [vmem:[%s7293_s26 + $0x18] sm:$0xff] }
 0xc1f   :  { %4953 = vmatprep.subr.mxu1 %v1710_v26  ;;  %4992 = vmatprep.subr.mxu0 %v2052_v25 }
 0xc20   :  { %4954 = vmatpush3.msra.mxu1 %v1710_v26  ;;  %4993 = vmatpush3.msra.mxu0 %v2052_v25  ;;  %v2051_v26 = vld [vmem:[%s7293_s26 + $0x10] sm:$0xff] }
 0xc21   :  { %4955 = vmatprep.subr.mxu1 %v1708_v27  ;;  %4994 = vmatprep.subr.mxu0 %v2051_v26 }
 0xc22   :  { %4956 = vmatpush3.msra.mxu1 %v1708_v27  ;;  %4995 = vmatpush3.msra.mxu0 %v2051_v26  ;;  %v2050_v27 = vld [vmem:[%s7293_s26 + $0x8] sm:$0xff] }
 0xc23   :  { %4957 = vmatprep.subr.mxu1 %v1706_v29  ;;  %4996 = vmatprep.subr.mxu0 %v2050_v27 }
 0xc24   :  { %4958 = vmatpush3.msra.mxu1 %v1706_v29  ;;  %v2049_v29 = vld [vmem:[%s7293_s26] sm:$0xff]  ;;  %4997 = vmatpush3.msra.mxu0 %v2050_v27 }
 0xc25   :  { %4962 = vmatprep.subr.mxu1 %v1276_v30  ;;  %4998 = vmatprep.subr.mxu0 %v2049_v29 }
 0xc26   :  { %4999 = vmatpush3.msra.mxu0 %v2049_v29 }
 0xcc5   :  { %v4926_v31 = vpop.f32.mrf.mxu1 }
 0xcc6   :  { %5377 = vrcp.f32 %v4926_v31  ;;  %v4083_v31 = vld [vmem:[%s7292_s25] ss:$0 sm:$0xff] }
 0xcc7   :  { %v1692_v32 = vpop.f32.mrf.mxu1 }
 0xcc8   :  { %5379 = vrcp.f32 %v1692_v32 }
 0xcd3   :  { %v5378_v35 = vpop.eup %5377 }
 0xcd4   :  { %v1704_v39 = vmul.f32 %v5378_v35, %v5376_v14 }
 0xcd5   :  { %v5380_v36 = vpop.eup %5379 }
 0xcd6   :  { %v1703_v37 = vmul.f32 %v5380_v36, %v5374_v13 }
 0xcd8   :  { %4959 = vmatprep.mubr.f32.mxu1 %v1703_v37 }
 0xcd9   :  { %4960 = vmatmul.mubr.f32.vlgmr.msra.gmra.mxu1 %v1704_v39 }
 0xcda   :  { %4963 = vmatpush3.msra.mxu1 %v1276_v30  ;;  %v5417_v30 = vld [vmem:[%s7336_s7 + $0x78] sm:$0xff] }
 0xcdb   :  { %4964 = vmatprep.subr.mxu1 %v1275_v40  ;;  %5077 = vmatprep.subr.mxu0 %v5417_v30 }
 0xcdc   :  { %4965 = vmatpush3.msra.mxu1 %v1275_v40 }
 0xcdd   :  { %4966 = vmatprep.subr.mxu1 %v1274_v41 }
 0xcde   :  { %4967 = vmatpush3.msra.mxu1 %v1274_v41  ;;  %v5418_v41 = vld [vmem:[%s7336_s7 + $0x70] sm:$0xff] }
 0xcdf   :  { %4968 = vmatprep.subr.mxu1 %v1273_v42 }
 0xce0   :  { %4969 = vmatpush3.msra.mxu1 %v1273_v42  ;;  %v5419_v42 = vld [vmem:[%s7336_s7 + $0x68] sm:$0xff] }
 0xd99   :  { %v4961_v43 = vpop.f32.mrf.mxu1 }
 0xd9b   :  { %v1819_v44 = vpop.f32.mrf.mxu1 }
 0xd9c   :  { %4970 = vmatprep.mubr.msk.f32.mxu1 %vm317_vm2, %v1819_v44  ;;  %v5421_v44 = vld [vmem:[%s7336_s7 + $0x58] sm:$0xff] }
 0xd9d   :  { %4971 = vmatmul.mubr.msk.f32.vlgmr.msra.gmra.mxu1 %vm317_vm2, %v4961_v43  ;;  %v5420_v43 = vld [vmem:[%s7336_s7 + $0x60] sm:$0xff] }
 0xe5d   :  { %v4972_v46 = vpop.f32.mrf.mxu1 }
 0xe5e   :  { %v1912_v47 = vadd.f32 %v4972_v46, %v4080_v45  ;;  %v5423_v46 = vld [vmem:[%s7336_s7 + $0x48] sm:$0xff] }
 0xe5f   :  { %v1906_v28 = vpop.f32.mrf.mxu1 }
 0xe60   :  { %v1907_v48 = vadd.f32 %v4080_v45, %v1906_v28  ;;  %v1916_v38 = vadd.f32 %v1912_v47, %v6146_v18  ;;  %v5422_v45 = vld [vmem:[%s7336_s7 + $0x50] sm:$0xff]  ;;  %v5424_v47 = vld [vmem:[%s7336_s7 + $0x40] sm:$0xff]  ;;  %v5425_v28 = vld [vmem:[%s7336_s7 + $0x38] sm:$0xff] }
 0xe62   :  { %v1920_v49 = vsel %vm317_vm2, %v1916_v38, 0.0  ;;  %v1915_v50 = vadd.f32 %v1907_v48, %v6142_v16  ;;  %v1958_v16 = vld [vmem:[%s7291_s24 + $0x18] sm:$0xff]  ;;  %v5426_v48 = vld [vmem:[%s7336_s7 + $0x30] sm:$0xff] }
 0xe63   :  { %1921 = vadd.xlane.f32.xlu1 %v1920_v49  ;;  %4973 = vmatprep.subr.mxu1 %v1958_v16  ;;  %v5428_v49 = vld [vmem:[%s7336_s7 + $0x20] sm:$0xff] }
 0xe64   :  { %v1917_v51 = vsel %vm317_vm2, %v1915_v50, 0.0  ;;  %4974 = vmatpush3.msra.mxu1 %v1958_v16 }
 0xe65   :  { %1918 = vadd.xlane.f32.xlu0 %v1917_v51  ;;  %4975 = vmatprep.subr.mxu1 %v1957_v33  ;;  %v5430_v51 = vld [vmem:[%s7336_s7 + $0x10] sm:$0xff] }
 0xe66   :  { %4976 = vmatpush3.msra.mxu1 %v1957_v33 }
 0xe67   :  { %4977 = vmatprep.subr.mxu1 %v1956_v60 }
 0xe68   :  { %4978 = vmatpush3.msra.mxu1 %v1956_v60 }
 0xe69   :  { %4979 = vmatprep.subr.mxu1 %v1955_v61 }
 0xe6a   :  { %4980 = vmatpush3.msra.mxu1 %v1955_v61 }
 0xeec   :  { %v1922_v52 = vpop.xlane.xlu1 %1921 }
 0xeed   :  { %v1924_v53 = vmul.f32 0.03125, %v1922_v52  ;;  %v5431_v52 = vld [vmem:[%s7336_s7 + $0x8] sm:$0xff] }
 0xeee   :  { %v1919_v54 = vpop.xlane.xlu0 %1918 }
 0xeef   :  { %v1923_v55 = vmul.f32 0.03125, %v1919_v54  ;;  %v1926_v56 = vsub.f32 %v1916_v38, %v1924_v53  ;;  %v5427_v38 = vld [vmem:[%s7336_s7 + $0x28] sm:$0xff]  ;;  %v5432_v53 = vld [vmem:[%s7336_s7] sm:$0xff] }
 0xef0   :  { %v4086_v54 = vld [vmem:[%s7294_s27] ss:$0 sm:$0xff] }
 0xef1   :  { %v1925_v57 = vsub.f32 %v1915_v50, %v1923_v55  ;;  %v1928_v34 = vmul.f32 %v1926_v56, %v1926_v56  ;;  %v5429_v50 = vld [vmem:[%s7336_s7 + $0x18] sm:$0xff] }
 0xef3   :  { %v1927_v58 = vmul.f32 %v1925_v57, %v1925_v57  ;;  %v1932_v18 = vsel %vm317_vm2, %v1928_v34, 0.0 }
 0xef5   :  { %v1929_v59 = vsel %vm317_vm2, %v1927_v58, 0.0 }
 0xef6   :  { %1930 = vadd.xlane.f32.xlu0 %v1929_v59 }
 0xefa   :  { %1933 = vadd.xlane.f32.xlu0 %v1932_v18 }
 0xf7f   :  { %v1931_v2 = vpop.xlane.xlu0 %1930 }
 0xf80   :  { %v1935_v3 = vmul.f32 0.03125, %v1931_v2 }
 0xf82   :  { %v1937_v4 = vadd.f32 1e-06, %v1935_v3 }
 0xf83   :  { %v1934_v5 = vpop.xlane.xlu0 %1933 }
 0xf84   :  { %5381 = vrsqrt.f32 %v1937_v4  ;;  %v1936_v10 = vmul.f32 0.03125, %v1934_v5  ;;  %v4094_v5 = vld [vmem:[%s7332_s29 + $0x38] sm:$0xff] }
 0xf85   :  { %5003 = vmatprep.subr.mxu1 %v4094_v5 }
 0xf86   :  { %v1938_v11 = vadd.f32 1e-06, %v1936_v10  ;;  %v4093_v10 = vld [vmem:[%s7332_s29 + $0x30] sm:$0xff] }
 0xf88   :  { %5383 = vrsqrt.f32 %v1938_v11  ;;  %v4092_v11 = vld [vmem:[%s7332_s29 + $0x28] sm:$0xff] }
 0xf91   :  { %v5382_v13 = vpop.eup %5381 }
 0xf92   :  { %v1941_v14 = vmul.f32 %v5382_v13, %v1925_v57 }
 0xf94   :  { %v1947_v17 = vmul.f32 %v1946_v12, %v1941_v14 }
 0xf95   :  { %v5384_v20 = vpop.eup %5383 }
 0xf96   :  { %v1942_v21 = vmul.f32 %v5384_v20, %v1926_v56  ;;  %v6535_v22 = vadd.f32 %v1952_v15, %v1947_v17 }
 0xf98   :  { %v1948_v23 = vmul.f32 %v1946_v12, %v1942_v21  ;;  %4981 = vmatprep.mubr.msk.f32.mxu1 %vm317_vm2, %v6535_v22  ;;  %v4091_v12 = vld [vmem:[%s7332_s29 + $0x20] sm:$0xff] }
 0xf9a   :  { %v6539_v24 = vadd.f32 %v1952_v15, %v1948_v23 }
 0xf9c   :  { %4982 = vmatmul.mubr.msk.f32.vlgmr.msra.gmra.mxu1 %vm317_vm2, %v6539_v24 }
 0xf9d   :  { %5004 = vmatpush3.msra.mxu1 %v4094_v5  ;;  %v5450_v5 = vld [vmem:[%s7335_s8 + $0x70] sm:$0xff] }
 0xf9e   :  { %5005 = vmatprep.subr.mxu1 %v4093_v10 }
 0xf9f   :  { %5006 = vmatpush3.msra.mxu1 %v4093_v10 }
 0xfa0   :  { %5007 = vmatprep.subr.mxu1 %v4092_v11 }
 0xfa1   :  { %5008 = vmatpush3.msra.mxu1 %v4092_v11  ;;  %v5451_v11 = vld [vmem:[%s7335_s8 + $0x68] sm:$0xff] }
 0xfa2   :  { %5009 = vmatprep.subr.mxu1 %v4091_v12 }
 0xfa3   :  { %5010 = vmatpush3.msra.mxu1 %v4091_v12 }
0x105c   :  { %v4983_v32 = vpop.f32.mrf.mxu1 }
0x105d   :  { %v2044_v35 = vadd.f32 %v4983_v32, %v4083_v31 }
0x105e   :  { %v2038_v36 = vpop.f32.mrf.mxu1 }
0x105f   :  { %v2039_v37 = vadd.f32 %v4083_v31, %v2038_v36  ;;  %v2048_v40 = vmax.f32 %v2044_v35, 0.0 }
0x1061   :  { %v2047_v39 = vmax.f32 %v2039_v37, 0.0 }
0x1063   :  { %5000 = vmatprep.mubr.msk.f32.mxu0 %vm2064_vm4, %v2047_v39 }
0x1064   :  { %5001 = vmatmul.mubr.msk.f32.vlgmr.msra.gmra.mxu0 %vm2064_vm4, %v2048_v40 }
0x1065   :  { %5078 = vmatpush3.msra.mxu0 %v5417_v30 }
0x1066   :  { %5079 = vmatprep.subr.mxu0 %v5418_v41 }
0x1067   :  { %5080 = vmatpush3.msra.mxu0 %v5418_v41 }
0x1068   :  { %5081 = vmatprep.subr.mxu0 %v5419_v42 }
0x1069   :  { %5082 = vmatpush3.msra.mxu0 %v5419_v42  ;;  %v5434_v42 = vld [vmem:[%s7334_s6 + $0x8] sm:$0xff] }
0x106a   :  { %5083 = vmatprep.subr.mxu0 %v5420_v43 }
0x106b   :  { %5084 = vmatpush3.msra.mxu0 %v5420_v43  ;;  %v5435_v43 = vld [vmem:[%s7334_s6 + $0x10] sm:$0xff] }
0x106c   :  { %5085 = vmatprep.subr.mxu0 %v5421_v44 }
0x106d   :  { %5086 = vmatpush3.msra.mxu0 %v5421_v44  ;;  %v5436_v44 = vld [vmem:[%s7334_s6 + $0x18] sm:$0xff] }
0x106e   :  { %5087 = vmatprep.subr.mxu0 %v5422_v45 }
0x106f   :  { %5088 = vmatpush3.msra.mxu0 %v5422_v45  ;;  %v5437_v45 = vld [vmem:[%s7334_s6 + $0x20] sm:$0xff] }
0x1070   :  { %5089 = vmatprep.subr.mxu0 %v5423_v46 }
0x1071   :  { %5090 = vmatpush3.msra.mxu0 %v5423_v46  ;;  %v5438_v46 = vld [vmem:[%s7334_s6 + $0x28] sm:$0xff] }
0x1072   :  { %5091 = vmatprep.subr.mxu0 %v5424_v47 }
0x1073   :  { %5092 = vmatpush3.msra.mxu0 %v5424_v47  ;;  %v5439_v47 = vld [vmem:[%s7334_s6 + $0x30] sm:$0xff] }
0x1074   :  { %5093 = vmatprep.subr.mxu0 %v5425_v28 }
0x1075   :  { %5094 = vmatpush3.msra.mxu0 %v5425_v28  ;;  %v5440_v28 = vld [vmem:[%s7334_s6 + $0x38] sm:$0xff] }
0x1076   :  { %5095 = vmatprep.subr.mxu0 %v5426_v48 }
0x1077   :  { %5096 = vmatpush3.msra.mxu0 %v5426_v48  ;;  %v5441_v48 = vld [vmem:[%s7334_s6 + $0x40] sm:$0xff] }
0x1078   :  { %5097 = vmatprep.subr.mxu0 %v5427_v38 }
0x1079   :  { %5098 = vmatpush3.msra.mxu0 %v5427_v38  ;;  %v5442_v38 = vld [vmem:[%s7334_s6 + $0x48] sm:$0xff] }
0x107a   :  { %5099 = vmatprep.subr.mxu0 %v5428_v49 }
0x107b   :  { %5100 = vmatpush3.msra.mxu0 %v5428_v49  ;;  %v5443_v49 = vld [vmem:[%s7334_s6 + $0x50] sm:$0xff] }
0x107c   :  { %5101 = vmatprep.subr.mxu0 %v5429_v50 }
0x107d   :  { %5102 = vmatpush3.msra.mxu0 %v5429_v50  ;;  %v5444_v50 = vld [vmem:[%s7334_s6 + $0x58] sm:$0xff] }
0x107e   :  { %5103 = vmatprep.subr.mxu0 %v5430_v51 }
0x107f   :  { %5104 = vmatpush3.msra.mxu0 %v5430_v51  ;;  %v5445_v51 = vld [vmem:[%s7334_s6 + $0x60] sm:$0xff] }
0x1080   :  { %5105 = vmatprep.subr.mxu0 %v5431_v52 }
0x1081   :  { %5106 = vmatpush3.msra.mxu0 %v5431_v52  ;;  %v5446_v52 = vld [vmem:[%s7334_s6 + $0x68] sm:$0xff] }
0x1082   :  { %5107 = vmatprep.subr.mxu0 %v5432_v53 }
0x1083   :  { %5108 = vmatpush3.msra.mxu0 %v5432_v53  ;;  %v5447_v53 = vld [vmem:[%s7334_s6 + $0x70] sm:$0xff] }
0x1124   :  { %v5002_v55 = vpop.f32.mrf.mxu0 }
0x1125   :  { %v2143_v56 = vadd.f32 %v5002_v55, %v4086_v54 }
0x1126   :  { %v2137_v57 = vpop.f32.mrf.mxu0 }
0x1127   :  { %v2138_v58 = vadd.f32 %v4086_v54, %v2137_v57  ;;  %v2147_v59 = vadd.f32 %v2143_v56, %v6539_v24  ;;  %v5448_v54 = vld [vmem:[%s7334_s6 + $0x78] sm:$0xff] }
0x1129   :  { %v2151_v34 = vsel %vm317_vm2, %v2147_v59, 0.0  ;;  %v2146_v18 = vadd.f32 %v2138_v58, %v6535_v22  ;;  %v6630_v22 = vsub.s32 2, %v6123_v6  ;;  %v5433_v6 = vld [vmem:[%s7334_s6] sm:$0xff] }
0x112a   :  { %2152 = vadd.xlane.f32.xlu0 %v2151_v34 }
0x112b   :  { %v2148_v16 = vsel %vm317_vm2, %v2146_v18, 0.0  ;;  %v2177_v24 = vrot.slane %v6131_v8, %v6630_v22  ;;  %v2183_v30 = vrot.slane %v6136_v9, %v6630_v22  ;;  %v4096_v8 = vld [vmem:[%s7280_s13 + $0x1] ss:$0 sm:$0xff] }
0x112c   :  { %2149 = vadd.xlane.f32.xlu1 %v2148_v16 }
0x11b3   :  { %v2153_v33 = vpop.xlane.xlu0 %2152 }
0x11b4   :  { %v2155_v60 = vmul.f32 0.03125, %v2153_v33 }
0x11b5   :  { %v2150_v61 = vpop.xlane.xlu1 %2149 }
0x11b6   :  { %v2157_v62 = vsub.f32 %v2147_v59, %v2155_v60  ;;  %v2154_v63 = vmul.f32 0.03125, %v2150_v61 }
0x11b8   :  { %v2156_v0 = vsub.f32 %v2146_v18, %v2154_v63  ;;  %v2159_v1 = vmul.f32 %v2157_v62, %v2157_v62 }
0x11ba   :  { %v2163_v2 = vsel %vm317_vm2, %v2159_v1, 0.0  ;;  %v2158_v3 = vmul.f32 %v2156_v0, %v2156_v0 }
0x11bb   :  { %2164 = vadd.xlane.f32.xlu0 %v2163_v2  ;;  %v5449_v2 = vld [vmem:[%s7335_s8 + $0x78] sm:$0xff] }
0x11bc   :  { %v2160_v4 = vsel %vm317_vm2, %v2158_v3, 0.0 }
0x11bd   :  { %2161 = vadd.xlane.f32.xlu1 %v2160_v4 }
0x1244   :  { %v2165_v13 = vpop.xlane.xlu0 %2164 }
0x1245   :  { %v2167_v14 = vmul.f32 0.03125, %v2165_v13  ;;  %v5452_v13 = vld [vmem:[%s7335_s8 + $0x60] sm:$0xff] }
0x1246   :  { %v2162_v15 = vpop.xlane.xlu1 %2161 }
0x1247   :  { %v2169_v17 = vadd.f32 1e-06, %v2167_v14  ;;  %v2166_v20 = vmul.f32 0.03125, %v2162_v15  ;;  %v5453_v15 = vld [vmem:[%s7335_s8 + $0x58] sm:$0xff] }
0x1249   :  { %5385 = vrsqrt.f32 %v2169_v17  ;;  %v2168_v21 = vadd.f32 1e-06, %v2166_v20  ;;  %v5454_v20 = vld [vmem:[%s7335_s8 + $0x50] sm:$0xff] }
0x124b   :  { %5387 = vrsqrt.f32 %v2168_v21 }
0x1256   :  { %v5386_v23 = vpop.eup %5385 }
0x1257   :  { %v2173_v25 = vmul.f32 %v5386_v23, %v2157_v62  ;;  %v5455_v23 = vld [vmem:[%s7335_s8 + $0x48] sm:$0xff] }
0x1258   :  { %v5388_v26 = vpop.eup %5387 }
0x1259   :  { %v2172_v27 = vmul.f32 %v5388_v26, %v2156_v0  ;;  %v2179_v29 = vmul.f32 %v2177_v24, %v2173_v25  ;;  %v5456_v25 = vld [vmem:[%s7335_s8 + $0x40] sm:$0xff] }
0x125b   :  { %v2178_v31 = vmul.f32 %v2177_v24, %v2172_v27  ;;  %v6638_v35 = vadd.f32 %v2183_v30, %v2179_v29  ;;  %v5457_v27 = vld [vmem:[%s7335_s8 + $0x38] sm:$0xff] }
0x125d   :  { %v6636_v32 = vadd.f32 %v2183_v30, %v2178_v31  ;;  %v5458_v30 = vld [vmem:[%s7335_s8 + $0x30] sm:$0xff] }
0x125f   :  { %5011 = vmatprep.mubr.msk.f32.mxu1 %vm317_vm2, %v6636_v32 }
0x1260   :  { %5012 = vmatmul.mubr.msk.f32.vlgmr.msra.gmra.mxu1 %vm317_vm2, %v6638_v35 }
0x1261   :  { %5018 = vmatprep.mubr.msk.f32.mxu1 %vm412_vm3, %v5433_v6  ;;  %v5459_v6 = vld [vmem:[%s7335_s8 + $0x28] sm:$0xff] }
0x1320   :  { %v5013_v9 = vpop.f32.mrf.mxu1 }
0x1321   :  { %v6651_v36 = vadd.f32 %v5013_v9, %v4096_v8  ;;  %v5460_v9 = vld [vmem:[%s7335_s8 + $0x20] sm:$0xff] }
0x1322   :  { %v2275_v37 = vpop.f32.mrf.mxu1 }
0x1323   :  { %v2276_v39 = vadd.f32 %v4096_v8, %v2275_v37  ;;  %2295 = vrot.lane.b32.xlu1 %v6651_v36, %s7343_s30 }
0x1325   :  { %2293 = vrot.lane.b32.xlu0 %v2276_v39, %s7343_s30 }
0x1395   :  { %v2296_v40 = vpop.permute.xlu1 %2295 }
0x1396   :  { %5014 = vmatprep.subr.mxu1 %v2296_v40 }
0x1397   :  { %5015 = vmatpush3.msra.mxu1 %v2296_v40  ;;  %v2294_v41 = vpop.permute.xlu0 %2293 }
0x1398   :  { %5016 = vmatprep.subr.mxu1 %v2294_v41 }
0x1399   :  { %5017 = vmatpush3.msra.mxu1 %v2294_v41  ;;  %v5462_v41 = vld [vmem:[%s7335_s8 + $0x10] sm:$0xff] }
0x139a   :  { %5019 = vmatmul.mubr.msk.f32.vlgmr.msra.gmra.mxu1 %vm412_vm3, %v5434_v42 }
0x139b   :  { %5021 = vmatprep.mubr.msk.f32.mxu1 %vm412_vm3, %v5435_v43  ;;  %v5463_v43 = vld [vmem:[%s7335_s8 + $0x8] sm:$0xff] }
0x139e   :  { %5022 = vmatmul.mubr.msk.f32.gmra.mxu1 %vm412_vm3, %v5436_v44 }
0x139f   :  { %5024 = vmatprep.mubr.msk.f32.mxu1 %vm412_vm3, %v5437_v45  ;;  %v5464_v45 = vld [vmem:[%s7335_s8] sm:$0xff] }
0x13a2   :  { %5025 = vmatmul.mubr.msk.f32.gmra.mxu1 %vm412_vm3, %v5438_v46 }
0x13a3   :  { %5027 = vmatprep.mubr.msk.f32.mxu1 %vm412_vm3, %v5439_v47 }
0x13a6   :  { %5028 = vmatmul.mubr.msk.f32.gmra.mxu1 %vm412_vm3, %v5440_v28  ;;  %v5465_v28 = vld [vmem:[%s7337_s9 + $0x8] sm:$0xff] }
0x13a7   :  { %5030 = vmatprep.mubr.msk.f32.mxu1 %vm412_vm3, %v5441_v48 }
0x13aa   :  { %5031 = vmatmul.mubr.msk.f32.gmra.mxu1 %vm412_vm3, %v5442_v38 }
0x13ab   :  { %5033 = vmatprep.mubr.msk.f32.mxu1 %vm412_vm3, %v5443_v49  ;;  %v5466_v49 = vld [vmem:[%s7337_s9] sm:$0xff] }
0x13ae   :  { %5034 = vmatmul.mubr.msk.f32.gmra.mxu1 %vm412_vm3, %v5444_v50 }
0x13af   :  { %5036 = vmatprep.mubr.msk.f32.mxu1 %vm412_vm3, %v5445_v51 }
0x13b2   :  { %5037 = vmatmul.mubr.msk.f32.gmra.mxu1 %vm412_vm3, %v5446_v52 }
0x13b3   :  { %5039 = vmatprep.mubr.msk.f32.mxu1 %vm412_vm3, %v5447_v53 }
0x13b6   :  { %5040 = vmatmul.mubr.msk.f32.gmra.mxu1 %vm412_vm3, %v5448_v54 }
0x13b7   :  { %5074 = vmatprep.mubr.msk.f32.mxu1 %vm317_vm2, %v2276_v39  ;;  %v5461_v39 = vld [vmem:[%s7335_s8 + $0x18] sm:$0xff] }
0x145a   :  { %v6717_v55 = vpop.f32.mrf.mxu1 }
0x145b   :  { %v2445_v44 = vmul.f32 %v5463_v43, %v6717_v55  ;;  %v5476_v43 = vld [vmem:[%s7341_s4 + $0x40] sm:$0xff] }
0x145c   :  { %v6719_v56 = vpop.f32.mrf.mxu1 }
0x145d   :  { %v2444_v46 = vmul.f32 %v5464_v45, %v6719_v56  ;;  %v5478_v45 = vld [vmem:[%s7341_s4 + $0x30] sm:$0xff] }
0x145e   :  { %v5023_v57 = vpop.f32.mrf.mxu1 }
0x145f   :  { %v2447_v40 = vmul.f32 %v5461_v39, %v5023_v57  ;;  %v5472_v39 = vld [vmem:[%s7341_s4 + $0x60] sm:$0xff] }
0x1460   :  { %v6721_v58 = vpop.f32.mrf.mxu1 }
0x1461   :  { %v2446_v42 = vmul.f32 %v5462_v41, %v6721_v58  ;;  %v5474_v41 = vld [vmem:[%s7341_s4 + $0x50] sm:$0xff] }
0x1462   :  { %v5026_v59 = vpop.f32.mrf.mxu1 }
0x1463   :  { %v2449_v8 = vmul.f32 %v5459_v6, %v5026_v59  ;;  %v5468_v6 = vld [vmem:[%s7338_s21 + $0x8] sm:$0xff] }
0x1464   :  { %v2385_v34 = vpop.f32.mrf.mxu1 }
0x1465   :  { %v2448_v37 = vmul.f32 %v5460_v9, %v2385_v34  ;;  %v5470_v9 = vld [vmem:[%s7341_s4 + $0x70] sm:$0xff] }
0x1466   :  { %v5029_v18 = vpop.f32.mrf.mxu1 }
0x1467   :  { %v2451_v29 = vmul.f32 %v5457_v27, %v5029_v18  ;;  %v4152_v27 = vld [vmem:[%s7285_s18 + $0x38] sm:$0xff] }
0x1468   :  { %v2395_v16 = vpop.f32.mrf.mxu1 }
0x1469   :  { %v2450_v31 = vmul.f32 %v5458_v30, %v2395_v16  ;;  %v4150_v30 = vld [vmem:[%s7285_s18 + $0x28] sm:$0xff] }
0x146a   :  { %v5032_v33 = vpop.f32.mrf.mxu1 }
0x146b   :  { %v2453_v24 = vmul.f32 %v5455_v23, %v5032_v33  ;;  %v4099_v23 = vld [vmem:[%s7281_s14 + $0x20] sm:$0xff] }
0x146c   :  { %v2405_v60 = vpop.f32.mrf.mxu1 }
0x146d   :  { %v2452_v26 = vmul.f32 %v5456_v25, %v2405_v60 }
0x146e   :  { %v5035_v61 = vpop.f32.mrf.mxu1 }
0x146f   :  { %v2455_v17 = vmul.f32 %v5453_v15, %v5035_v61 }
0x1470   :  { %v2415_v62 = vpop.f32.mrf.mxu1 }
0x1471   :  { %v2454_v21 = vmul.f32 %v5454_v20, %v2415_v62 }
0x1472   :  { %v5038_v63 = vpop.f32.mrf.mxu1 }
0x1473   :  { %v6742_v12 = vmul.f32 %v5451_v11, %v5038_v63  ;;  %v4101_v11 = vld [vmem:[%s7281_s14 + $0x30] sm:$0xff] }
0x1474   :  { %v2425_v0 = vpop.f32.mrf.mxu1 }
0x1475   :  { %v6751_v14 = vmul.f32 %v5452_v13, %v2425_v0 }
0x1476   :  { %v5041_v1 = vpop.f32.mrf.mxu1 }
0x1477   :  { %v6726_v3 = vmul.f32 %v5449_v2, %v5041_v1 }
0x1478   :  { %v2435_v4 = vpop.f32.mrf.mxu1 }
0x1479   :  { %v6731_v10 = vmul.f32 %v5450_v5, %v2435_v4  ;;  %5042 = vmatprep.subr.msk.mxu1 %vm317_vm2, %v6726_v3 }
0x147a   :  { %5043 = vmatpush3.xpose.msk.msra.mxu1 %vm317_vm2, %v6726_v3 }
0x147b   :  { %5044 = vmatprep.subr.msk.mxu1 %vm317_vm2, %v6731_v10 }
0x147e   :  { %5045 = vmatpush3.xpose.msk.msra.mxu1 %vm317_vm2, %v6731_v10 }
0x147f   :  { %5046 = vmatprep.subr.msk.mxu1 %vm317_vm2, %v6742_v12 }
0x1482   :  { %5047 = vmatpush3.xpose.msk.msra.mxu1 %vm317_vm2, %v6742_v12 }
0x1483   :  { %5048 = vmatprep.subr.msk.mxu1 %vm317_vm2, %v6751_v14 }
0x1486   :  { %5049 = vmatpush3.xpose.msk.msra.mxu1 %vm317_vm2, %v6751_v14 }
0x1487   :  { %5050 = vmatprep.subr.msk.mxu1 %vm317_vm2, %v2455_v17 }
0x148a   :  { %5051 = vmatpush3.xpose.msk.msra.mxu1 %vm317_vm2, %v2455_v17 }
0x148b   :  { %5052 = vmatprep.subr.msk.mxu1 %vm317_vm2, %v2454_v21 }
0x148e   :  { %5053 = vmatpush3.xpose.msk.msra.mxu1 %vm317_vm2, %v2454_v21 }
0x148f   :  { %5054 = vmatprep.subr.msk.mxu1 %vm317_vm2, %v2453_v24 }
0x1492   :  { %5055 = vmatpush3.xpose.msk.msra.mxu1 %vm317_vm2, %v2453_v24 }
0x1493   :  { %5056 = vmatprep.subr.msk.mxu1 %vm317_vm2, %v2452_v26 }
0x1496   :  { %5057 = vmatpush3.xpose.msk.msra.mxu1 %vm317_vm2, %v2452_v26 }
0x1497   :  { %5058 = vmatprep.subr.msk.mxu1 %vm317_vm2, %v2451_v29 }
0x149a   :  { %5059 = vmatpush3.xpose.msk.msra.mxu1 %vm317_vm2, %v2451_v29 }
0x149b   :  { %5060 = vmatprep.subr.msk.mxu1 %vm317_vm2, %v2450_v31 }
0x149e   :  { %5061 = vmatpush3.xpose.msk.msra.mxu1 %vm317_vm2, %v2450_v31 }
0x149f   :  { %5062 = vmatprep.subr.msk.mxu1 %vm317_vm2, %v2449_v8 }
0x14a2   :  { %5063 = vmatpush3.xpose.msk.msra.mxu1 %vm317_vm2, %v2449_v8 }
0x14a3   :  { %5064 = vmatprep.subr.msk.mxu1 %vm317_vm2, %v2448_v37 }
0x14a6   :  { %5065 = vmatpush3.xpose.msk.msra.mxu1 %vm317_vm2, %v2448_v37 }
0x14a7   :  { %5066 = vmatprep.subr.msk.mxu1 %vm317_vm2, %v2447_v40 }
0x14aa   :  { %5067 = vmatpush3.xpose.msk.msra.mxu1 %vm317_vm2, %v2447_v40 }
0x14ab   :  { %5068 = vmatprep.subr.msk.mxu1 %vm317_vm2, %v2446_v42 }
0x14ae   :  { %5069 = vmatpush3.xpose.msk.msra.mxu1 %vm317_vm2, %v2446_v42 }
0x14af   :  { %5070 = vmatprep.subr.msk.mxu1 %vm317_vm2, %v2445_v44 }
0x14b2   :  { %5071 = vmatpush3.xpose.msk.msra.mxu1 %vm317_vm2, %v2445_v44 }
0x14b3   :  { %5072 = vmatprep.subr.msk.mxu1 %vm317_vm2, %v2444_v46 }
0x14b6   :  { %5073 = vmatpush3.xpose.msk.msra.mxu1 %vm317_vm2, %v2444_v46 }
0x14b9   :  { %5075 = vmatmul.mubr.msk.f32.vlgmr.msra.gmra.mxu1 %vm317_vm2, %v6651_v36 }
0x1579   :  { %v5076_v47 = vpop.f32.mrf.mxu1 }
0x157a   :  { %v2584_v48 = vadd.f32 %v5465_v28, %v5076_v47  ;;  %v5480_v47 = vld [vmem:[%s7341_s4 + $0x20] sm:$0xff]  ;;  %v5481_v28 = vld [vmem:[%s7341_s4 + $0x18] sm:$0xff] }
0x157b   :  { %v2578_v38 = vpop.f32.mrf.mxu1 }
0x157c   :  { %v2579_v50 = vadd.f32 %v5466_v49, %v2578_v38  ;;  %2589 = vmax.xlane.f32.xlu0 %v2584_v48  ;;  %v5483_v38 = vld [vmem:[%s7341_s4 + $0x8] sm:$0xff]  ;;  %v5484_v49 = vld [vmem:[%s7341_s4] sm:$0xff] }
0x157e   :  { %2587 = vmax.xlane.f32.xlu1 %v2579_v50 }
0x158f   :  { %2706 = vrot.lane.b32.xlu1 %v6726_v3, %s7343_s30 }
0x1592   :  { %2704 = vrot.lane.b32.xlu0 %v6731_v10, %s7343_s30  ;;  %v4102_v10 = vld [vmem:[%s7281_s14 + $0x38] sm:$0xff] }
0x1593   :  { %2702 = vrot.lane.b32.xlu1 %v6742_v12, %s7343_s30  ;;  %5147 = vmatprep.subr.mxu1 %v4102_v10 }
0x1594   :  { %5148 = vmatpush3.msra.mxu1 %v4102_v10 }
0x1595   :  { %5149 = vmatprep.subr.mxu1 %v4101_v11 }
0x1596   :  { %2698 = vrot.lane.b32.xlu0 %v2455_v17, %s7343_s30  ;;  %5150 = vmatpush3.msra.mxu1 %v4101_v11 }
0x1597   :  { %2700 = vrot.lane.b32.xlu1 %v6751_v14, %s7343_s30 }
0x159a   :  { %2694 = vrot.lane.b32.xlu0 %v2453_v24, %s7343_s30 }
0x159b   :  { %2696 = vrot.lane.b32.xlu1 %v2454_v21, %s7343_s30  ;;  %v4100_v21 = vld [vmem:[%s7281_s14 + $0x28] sm:$0xff] }
0x159c   :  { %5151 = vmatprep.subr.mxu1 %v4100_v21 }
0x159d   :  { %5152 = vmatpush3.msra.mxu1 %v4100_v21 }
0x159e   :  { %2690 = vrot.lane.b32.xlu0 %v2451_v29, %s7343_s30  ;;  %5153 = vmatprep.subr.mxu1 %v4099_v23  ;;  %v4151_v29 = vld [vmem:[%s7285_s18 + $0x30] sm:$0xff] }
0x159f   :  { %2692 = vrot.lane.b32.xlu1 %v2452_v26, %s7343_s30  ;;  %5154 = vmatpush3.msra.mxu1 %v4099_v23  ;;  %v5467_v26 = vld [vmem:[%s7338_s21] sm:$0xff] }
0x15a0   :  { %5169 = vmatprep.subr.mxu1 %v4152_v27 }
0x15a2   :  { %2686 = vrot.lane.b32.xlu0 %v2449_v8, %s7343_s30  ;;  %v5469_v8 = vld [vmem:[%s7341_s4 + $0x78] sm:$0xff] }
0x15a3   :  { %2688 = vrot.lane.b32.xlu1 %v2450_v31, %s7343_s30  ;;  %v4149_v31 = vld [vmem:[%s7285_s18 + $0x20] sm:$0xff] }
0x15a6   :  { %2682 = vrot.lane.b32.xlu0 %v2447_v40, %s7343_s30  ;;  %v5473_v40 = vld [vmem:[%s7341_s4 + $0x58] sm:$0xff] }
0x15a7   :  { %2684 = vrot.lane.b32.xlu1 %v2448_v37, %s7343_s30  ;;  %v5471_v37 = vld [vmem:[%s7341_s4 + $0x68] sm:$0xff] }
0x15aa   :  { %2678 = vrot.lane.b32.xlu0 %v2445_v44, %s7343_s30  ;;  %v5477_v44 = vld [vmem:[%s7341_s4 + $0x38] sm:$0xff] }
0x15ab   :  { %2680 = vrot.lane.b32.xlu1 %v2446_v42, %s7343_s30  ;;  %v5475_v42 = vld [vmem:[%s7341_s4 + $0x48] sm:$0xff] }
0x15af   :  { %2676 = vrot.lane.b32.xlu1 %v2444_v46, %s7343_s30  ;;  %v5479_v46 = vld [vmem:[%s7341_s4 + $0x28] sm:$0xff] }
0x1605   :  { %v2590_v36 = vpop.xlane.xlu0 %2589 }
0x1606   :  { %v2592_v51 = vsub.f32 %v2584_v48, %v2590_v36  ;;  %v5482_v48 = vld [vmem:[%s7341_s4 + $0x10] sm:$0xff] }
0x1607   :  { %v2588_v52 = vpop.xlane.xlu1 %2587 }
0x1608   :  { %v2591_v53 = vsub.f32 %v2579_v50, %v2588_v52  ;;  %v2595_v54 = vmul.f32 1.442695, %v2592_v51  ;;  %v4138_v50 = vld [vmem:[%s7282_s15 + $0x1] ss:$0 sm:$0xff] }
0x1609   :  { %v2705_v58 = vpop.permute.xlu0 %2704 }
0x160a   :  { %v2593_v55 = vmul.f32 1.442695, %v2591_v53 }
0x160b   :  { %v2707_v56 = vpop.permute.xlu1 %2706 }
0x160c   :  { %5389 = vpow2.f32 %v2593_v55  ;;  %5112 = vmatprep.subr.mxu0 %v2707_v56 }
0x160d   :  { %5391 = vpow2.f32 %v2595_v54  ;;  %v2699_v34 = vpop.permute.xlu0 %2698 }
0x160f   :  { %v2703_v57 = vpop.permute.xlu1 %2702 }
0x1611   :  { %v2695_v60 = vpop.permute.xlu0 %2694 }
0x1613   :  { %v2701_v59 = vpop.permute.xlu1 %2700 }
0x1615   :  { %v2691_v62 = vpop.permute.xlu0 %2690 }
0x1617   :  { %v2697_v33 = vpop.permute.xlu1 %2696 }
0x1619   :  { %v5390_v18 = vpop.eup %5389  ;;  %v2687_v0 = vpop.permute.xlu0 %2686 }
0x161a   :  { %v5392_v16 = vpop.eup %5391  ;;  %5109 = vmatprep.mubr.f32.mxu0 %v5390_v18 }
0x161b   :  { %5110 = vmatmul.mubr.f32.vlgmr.msra.gmra.mxu0 %v5392_v16  ;;  %v2693_v61 = vpop.permute.xlu1 %2692 }
0x161c   :  { %5113 = vmatpush3.msra.mxu0 %v2707_v56 }
0x161d   :  { %5114 = vmatprep.subr.mxu0 %v2705_v58  ;;  %v2683_v2 = vpop.permute.xlu0 %2682 }
0x161e   :  { %5115 = vmatpush3.msra.mxu0 %v2705_v58 }
0x161f   :  { %5116 = vmatprep.subr.mxu0 %v2703_v57  ;;  %v2689_v63 = vpop.permute.xlu1 %2688 }
0x1620   :  { %5117 = vmatpush3.msra.mxu0 %v2703_v57 }
0x1621   :  { %5118 = vmatprep.subr.mxu0 %v2701_v59  ;;  %v2679_v4 = vpop.permute.xlu0 %2678 }
0x1622   :  { %5119 = vmatpush3.msra.mxu0 %v2701_v59 }
0x1623   :  { %5120 = vmatprep.subr.mxu0 %v2699_v34  ;;  %v2685_v1 = vpop.permute.xlu1 %2684 }
0x1624   :  { %5121 = vmatpush3.msra.mxu0 %v2699_v34 }
0x1625   :  { %5122 = vmatprep.subr.mxu0 %v2697_v33 }
0x1626   :  { %5123 = vmatpush3.msra.mxu0 %v2697_v33 }
0x1627   :  { %5124 = vmatprep.subr.mxu0 %v2695_v60  ;;  %v2681_v3 = vpop.permute.xlu1 %2680 }
0x1628   :  { %5125 = vmatpush3.msra.mxu0 %v2695_v60 }
0x1629   :  { %5126 = vmatprep.subr.mxu0 %v2693_v61 }
0x162a   :  { %5127 = vmatpush3.msra.mxu0 %v2693_v61 }
0x162b   :  { %5128 = vmatprep.subr.mxu0 %v2691_v62  ;;  %v2677_v5 = vpop.permute.xlu1 %2676 }
0x162c   :  { %5129 = vmatpush3.msra.mxu0 %v2691_v62 }
0x162d   :  { %5130 = vmatprep.subr.mxu0 %v2689_v63 }
0x162e   :  { %5131 = vmatpush3.msra.mxu0 %v2689_v63  ;;  %v4143_v63 = vld [vmem:[%s7283_s16 + $0x30] sm:$0xff] }
0x162f   :  { %5132 = vmatprep.subr.mxu0 %v2687_v0 }
0x1630   :  { %5133 = vmatpush3.msra.mxu0 %v2687_v0  ;;  %v4142_v0 = vld [vmem:[%s7283_s16 + $0x28] sm:$0xff] }
0x1631   :  { %5134 = vmatprep.subr.mxu0 %v2685_v1 }
0x1632   :  { %5135 = vmatpush3.msra.mxu0 %v2685_v1 }
0x1633   :  { %5136 = vmatprep.subr.mxu0 %v2683_v2 }
0x1634   :  { %5137 = vmatpush3.msra.mxu0 %v2683_v2  ;;  %v4154_v2 = vld [vmem:[%s7286_s19 + $0x1] ss:$0 sm:$0xff]  ;;  %s7346_s19 = sld [smem:[#allocation18_spill]] }
0x1635   :  { %5138 = vmatprep.subr.mxu0 %v2681_v3 }
0x1636   :  { %5139 = vmatpush3.msra.mxu0 %v2681_v3 }
0x1637   :  { %5140 = vmatprep.subr.mxu0 %v2679_v4 }
0x1638   :  { %5141 = vmatpush3.msra.mxu0 %v2679_v4  ;;  %v4141_v4 = vld [vmem:[%s7283_s16 + $0x20] sm:$0xff] }
0x1639   :  { %5142 = vmatprep.subr.mxu0 %v2677_v5 }
0x163a   :  { %5143 = vmatpush3.msra.mxu0 %v2677_v5 }
0x16db   :  { %v5111_v12 = vpop.f32.mrf.mxu0 }
0x16dc   :  { %5393 = vrcp.f32 %v5111_v12 }
0x16dd   :  { %v2663_v13 = vpop.f32.mrf.mxu0 }
0x16de   :  { %5395 = vrcp.f32 %v2663_v13 }
0x16e9   :  { %v5394_v14 = vpop.eup %5393 }
0x16ea   :  { %v2675_v20 = vmul.f32 %v5394_v14, %v5392_v16 }
0x16eb   :  { %v5396_v15 = vpop.eup %5395 }
0x16ec   :  { %v2674_v17 = vmul.f32 %v5396_v15, %v5390_v18  ;;  %v6959_v15 = vld [vmem:[%s7289_s22 + $0x4] sm:$0x7] }
0x16ee   :  { %5144 = vmatprep.mubr.f32.mxu0 %v2674_v17  ;;  %v6964_v17 = vld [vmem:[%s7290_s23 + $0x4] sm:$0x7] }
0x16ef   :  { %5145 = vmatmul.mubr.f32.vlgmr.msra.gmra.mxu0 %v2675_v20  ;;  %v2917_v20 = vrot.slane %v6959_v15, %v6126_v7 }
0x17af   :  { %v5146_v24 = vpop.f32.mrf.mxu0 }
0x17b1   :  { %v2790_v25 = vpop.f32.mrf.mxu0 }
0x17b2   :  { %5155 = vmatprep.mubr.msk.f32.mxu1 %vm317_vm2, %v2790_v25 }
0x17b3   :  { %5156 = vmatmul.mubr.msk.f32.vlgmr.msra.gmra.mxu1 %vm317_vm2, %v5146_v24  ;;  %v2923_v24 = vrot.slane %v6964_v17, %v6126_v7  ;;  %v5485_v7 = vld [vmem:[%s7339_s12] sm:$0xff] }
0x17b4   :  { %5177 = vmatprep.mubr.msk.f32.mxu1 %vm317_vm2, %v5467_v26  ;;  %5170 = vmatpush3.msra.mxu1 %v4152_v27 }
0x17b5   :  { %5171 = vmatprep.subr.mxu1 %v4151_v29 }
0x17b6   :  { %5172 = vmatpush3.msra.mxu1 %v4151_v29 }
0x17b7   :  { %5173 = vmatprep.subr.mxu1 %v4150_v30 }
0x17b8   :  { %5174 = vmatpush3.msra.mxu1 %v4150_v30 }
0x17b9   :  { %5175 = vmatprep.subr.mxu1 %v4149_v31 }
0x17ba   :  { %5176 = vmatpush3.msra.mxu1 %v4149_v31 }
0x17bb   :  { %5178 = vmatmul.mubr.msk.f32.vlgmr.msra.gmra.mxu1 %vm317_vm2, %v5468_v6  ;;  %5243 = vmatprep.subr.mxu1 %v5469_v8 }
0x17bc   :  { %5244 = vmatpush3.msra.mxu1 %v5469_v8 }
0x17bd   :  { %5245 = vmatprep.subr.mxu1 %v5470_v9 }
0x17be   :  { %5246 = vmatpush3.msra.mxu1 %v5470_v9  ;;  %v5486_v9 = vld [vmem:[%s7339_s12 + $0x8] sm:$0xff] }
0x17bf   :  { %5247 = vmatprep.subr.mxu1 %v5471_v37 }
0x17c0   :  { %5248 = vmatpush3.msra.mxu1 %v5471_v37  ;;  %v5487_v37 = vld [vmem:[%s7339_s12 + $0x10] sm:$0xff] }
0x17c1   :  { %5249 = vmatprep.subr.mxu1 %v5472_v39 }
0x17c2   :  { %5250 = vmatpush3.msra.mxu1 %v5472_v39  ;;  %v5488_v39 = vld [vmem:[%s7339_s12 + $0x18] sm:$0xff] }
0x17c3   :  { %5251 = vmatprep.subr.mxu1 %v5473_v40 }
0x17c4   :  { %5252 = vmatpush3.msra.mxu1 %v5473_v40  ;;  %v5489_v40 = vld [vmem:[%s7339_s12 + $0x20] sm:$0xff] }
0x17c5   :  { %5253 = vmatprep.subr.mxu1 %v5474_v41 }
0x17c6   :  { %5254 = vmatpush3.msra.mxu1 %v5474_v41  ;;  %v5490_v41 = vld [vmem:[%s7339_s12 + $0x28] sm:$0xff] }
0x17c7   :  { %5255 = vmatprep.subr.mxu1 %v5475_v42 }
0x17c8   :  { %5256 = vmatpush3.msra.mxu1 %v5475_v42  ;;  %v5491_v42 = vld [vmem:[%s7339_s12 + $0x30] sm:$0xff] }
0x17c9   :  { %5257 = vmatprep.subr.mxu1 %v5476_v43 }
0x17ca   :  { %5258 = vmatpush3.msra.mxu1 %v5476_v43  ;;  %v5492_v43 = vld [vmem:[%s7339_s12 + $0x38] sm:$0xff] }
0x17cb   :  { %5259 = vmatprep.subr.mxu1 %v5477_v44 }
0x17cc   :  { %5260 = vmatpush3.msra.mxu1 %v5477_v44  ;;  %v5493_v44 = vld [vmem:[%s7339_s12 + $0x40] sm:$0xff] }
0x17cd   :  { %5261 = vmatprep.subr.mxu1 %v5478_v45 }
0x17ce   :  { %5262 = vmatpush3.msra.mxu1 %v5478_v45  ;;  %v5494_v45 = vld [vmem:[%s7339_s12 + $0x48] sm:$0xff] }
0x17cf   :  { %5263 = vmatprep.subr.mxu1 %v5479_v46 }
0x17d0   :  { %5264 = vmatpush3.msra.mxu1 %v5479_v46  ;;  %v5495_v46 = vld [vmem:[%s7339_s12 + $0x50] sm:$0xff] }
0x17d1   :  { %5265 = vmatprep.subr.mxu1 %v5480_v47 }
0x17d2   :  { %5266 = vmatpush3.msra.mxu1 %v5480_v47  ;;  %v5496_v47 = vld [vmem:[%s7339_s12 + $0x58] sm:$0xff] }
0x17d3   :  { %5267 = vmatprep.subr.mxu1 %v5481_v28 }
0x17d4   :  { %5268 = vmatpush3.msra.mxu1 %v5481_v28  ;;  %v5497_v28 = vld [vmem:[%s7339_s12 + $0x60] sm:$0xff] }
0x17d5   :  { %5269 = vmatprep.subr.mxu1 %v5482_v48 }
0x17d6   :  { %5270 = vmatpush3.msra.mxu1 %v5482_v48  ;;  %v5498_v48 = vld [vmem:[%s7339_s12 + $0x68] sm:$0xff] }
0x17d7   :  { %5271 = vmatprep.subr.mxu1 %v5483_v38 }
0x17d8   :  { %5272 = vmatpush3.msra.mxu1 %v5483_v38  ;;  %v5499_v38 = vld [vmem:[%s7339_s12 + $0x70] sm:$0xff] }
0x17d9   :  { %5273 = vmatprep.subr.mxu1 %v5484_v49 }
0x17da   :  { %5274 = vmatpush3.msra.mxu1 %v5484_v49  ;;  %v5500_v49 = vld [vmem:[%s7339_s12 + $0x78] sm:$0xff] }
0x1873   :  { %v5157_v36 = vpop.f32.mrf.mxu1 }
0x1874   :  { %v2883_v51 = vadd.f32 %v5157_v36, %v4138_v50 }
0x1875   :  { %v2877_v52 = vpop.f32.mrf.mxu1 }
0x1876   :  { %v2878_v53 = vadd.f32 %v4138_v50, %v2877_v52  ;;  %v2887_v54 = vadd.f32 %v2883_v51, %v6638_v35  ;;  %v4146_v50 = vld [vmem:[%s7284_s17 + $0x1] ss:$0 sm:$0xff] }
0x1878   :  { %v2891_v55 = vsel %vm317_vm2, %v2887_v54, 0.0  ;;  %v2886_v56 = vadd.f32 %v2878_v53, %v6636_v32  ;;  %v4144_v32 = vld [vmem:[%s7283_s16 + $0x38] sm:$0xff] }
0x1879   :  { %2892 = vadd.xlane.f32.xlu1 %v2891_v55  ;;  %5158 = vmatprep.subr.mxu0 %v4144_v32 }
0x187a   :  { %v2888_v57 = vsel %vm317_vm2, %v2886_v56, 0.0  ;;  %5159 = vmatpush3.msra.mxu0 %v4144_v32 }
0x187b   :  { %2889 = vadd.xlane.f32.xlu0 %v2888_v57  ;;  %5160 = vmatprep.subr.mxu0 %v4143_v63  ;;  %v5179_v1 = vpop.f32.mrf.mxu1 }
0x187c   :  { %5161 = vmatpush3.msra.mxu0 %v4143_v63  ;;  %v3105_v3 = vadd.f32 %v5179_v1, %v4154_v2  ;;  %v5501_v63 = vld [vmem:[%s7345_s28 + $0x78] sm:$0xff] }
0x187d   :  { %5162 = vmatprep.subr.mxu0 %v4142_v0  ;;  %v3099_v30 = vpop.f32.mrf.mxu1 }
0x187e   :  { %5163 = vmatpush3.msra.mxu0 %v4142_v0  ;;  %v3100_v8 = vadd.f32 %v4154_v2, %v3099_v30  ;;  %v5502_v2 = vld [vmem:[%s7345_s28 + $0x70] sm:$0xff] }
0x187f   :  { %5164 = vmatprep.subr.mxu0 %v4141_v4  ;;  %v5510_v30 = vld [vmem:[%s7345_s28 + $0x30] sm:$0xff] }
0x1880   :  { %5165 = vmatpush3.msra.mxu0 %v4141_v4  ;;  %v5503_v4 = vld [vmem:[%s7345_s28 + $0x68] sm:$0xff] }
0x1881   :  { %5180 = vmatprep.subr.mxu0 %v3105_v3 }
0x1902   :  { %v2893_v58 = vpop.xlane.xlu1 %2892 }
0x1903   :  { %v2895_v59 = vmul.f32 0.03125, %v2893_v58 }
0x1904   :  { %v2890_v34 = vpop.xlane.xlu0 %2889 }
0x1905   :  { %v2894_v18 = vmul.f32 0.03125, %v2890_v34  ;;  %v2897_v16 = vsub.f32 %v2887_v54, %v2895_v59 }
0x1907   :  { %v2896_v33 = vsub.f32 %v2886_v56, %v2894_v18  ;;  %v2899_v62 = vmul.f32 %v2897_v16, %v2897_v16 }
0x1909   :  { %v2898_v60 = vmul.f32 %v2896_v33, %v2896_v33  ;;  %v2903_v35 = vsel %vm317_vm2, %v2899_v62, 0.0 }
0x190b   :  { %v2900_v61 = vsel %vm317_vm2, %v2898_v60, 0.0 }
0x190c   :  { %2901 = vadd.xlane.f32.xlu0 %v2900_v61 }
0x1910   :  { %2904 = vadd.xlane.f32.xlu0 %v2903_v35 }
0x1995   :  { %v2902_v5 = vpop.xlane.xlu0 %2901 }
0x1996   :  { %v2906_v10 = vmul.f32 0.03125, %v2902_v5 }
0x1998   :  { %v2908_v11 = vadd.f32 1e-06, %v2906_v10  ;;  %v5504_v10 = vld [vmem:[%s7345_s28 + $0x60] sm:$0xff] }
0x1999   :  { %v2905_v12 = vpop.xlane.xlu0 %2904 }
0x199a   :  { %5397 = vrsqrt.f32 %v2908_v11  ;;  %v2907_v13 = vmul.f32 0.03125, %v2905_v12  ;;  %v5505_v12 = vld [vmem:[%s7345_s28 + $0x58] sm:$0xff] }
0x199c   :  { %v2909_v14 = vadd.f32 1e-06, %v2907_v13 }
0x199e   :  { %5399 = vrsqrt.f32 %v2909_v14  ;;  %v5506_v14 = vld [vmem:[%s7345_s28 + $0x50] sm:$0xff] }
0x19a7   :  { %v5398_v21 = vpop.eup %5397 }
0x19a8   :  { %v2912_v23 = vmul.f32 %v5398_v21, %v2896_v33  ;;  %v5507_v21 = vld [vmem:[%s7345_s28 + $0x48] sm:$0xff] }
0x19aa   :  { %v2918_v25 = vmul.f32 %v2917_v20, %v2912_v23 }
0x19ab   :  { %v5400_v26 = vpop.eup %5399 }
0x19ac   :  { %v2913_v27 = vmul.f32 %v5400_v26, %v2897_v16  ;;  %v6970_v29 = vadd.f32 %v2923_v24, %v2918_v25  ;;  %v5509_v26 = vld [vmem:[%s7345_s28 + $0x38] sm:$0xff] }
0x19ae   :  { %v2919_v31 = vmul.f32 %v2917_v20, %v2913_v27  ;;  %5166 = vmatprep.mubr.msk.f32.mxu0 %vm317_vm2, %v6970_v29 }
0x19b0   :  { %v6974_v6 = vadd.f32 %v2923_v24, %v2919_v31  ;;  %v5508_v24 = vld [vmem:[%s7345_s28 + $0x40] sm:$0xff] }
0x19b2   :  { %5167 = vmatmul.mubr.msk.f32.vlgmr.msra.gmra.mxu0 %vm317_vm2, %v6974_v6 }
0x19b3   :  { %5181 = vmatpush3.msra.mxu0 %v3105_v3  ;;  %5184 = vmatprep.mubr.msk.f32.mxu0 %vm412_vm3, %v5485_v7 }
0x19b4   :  { %5182 = vmatprep.subr.mxu0 %v3100_v8 }
0x19b5   :  { %5183 = vmatpush3.msra.mxu0 %v3100_v8  ;;  %v5511_v8 = vld [vmem:[%s7345_s28 + $0x28] sm:$0xff] }
0x19b6   :  { %5185 = vmatmul.mubr.msk.f32.vlgmr.msra.gmra.mxu0 %vm412_vm3, %v5486_v9  ;;  %v5512_v9 = vld [vmem:[%s7345_s28 + $0x20] sm:$0xff] }
0x19b7   :  { %5187 = vmatprep.mubr.msk.f32.mxu0 %vm412_vm3, %v5487_v37 }
0x19ba   :  { %5188 = vmatmul.mubr.msk.f32.gmra.mxu0 %vm412_vm3, %v5488_v39  ;;  %v5513_v39 = vld [vmem:[%s7345_s28 + $0x18] sm:$0xff] }
0x19bb   :  { %5190 = vmatprep.mubr.msk.f32.mxu0 %vm412_vm3, %v5489_v40 }
0x19be   :  { %5191 = vmatmul.mubr.msk.f32.gmra.mxu0 %vm412_vm3, %v5490_v41  ;;  %v5514_v41 = vld [vmem:[%s7345_s28 + $0x10] sm:$0xff] }
0x19bf   :  { %5193 = vmatprep.mubr.msk.f32.mxu0 %vm412_vm3, %v5491_v42 }
0x19c2   :  { %5194 = vmatmul.mubr.msk.f32.gmra.mxu0 %vm412_vm3, %v5492_v43  ;;  %v5515_v43 = vld [vmem:[%s7345_s28 + $0x8] sm:$0xff] }
0x19c3   :  { %5196 = vmatprep.mubr.msk.f32.mxu0 %vm412_vm3, %v5493_v44 }
0x19c6   :  { %5197 = vmatmul.mubr.msk.f32.gmra.mxu0 %vm412_vm3, %v5494_v45  ;;  %v5516_v45 = vld [vmem:[%s7345_s28] sm:$0xff] }
0x19c7   :  { %5199 = vmatprep.mubr.msk.f32.mxu0 %vm412_vm3, %v5495_v46 }
0x19ca   :  { %5200 = vmatmul.mubr.msk.f32.gmra.mxu0 %vm412_vm3, %v5496_v47 }
0x19cb   :  { %5202 = vmatprep.mubr.msk.f32.mxu0 %vm412_vm3, %v5497_v28  ;;  %v5517_v28 = vld [vmem:[%s7342_s10 + $0x8] sm:$0xff] }
0x19ce   :  { %5203 = vmatmul.mubr.msk.f32.gmra.mxu0 %vm412_vm3, %v5498_v48 }
0x19cf   :  { %5205 = vmatprep.mubr.msk.f32.mxu0 %vm412_vm3, %v5499_v38 }
0x19d2   :  { %5206 = vmatmul.mubr.msk.f32.gmra.mxu0 %vm412_vm3, %v5500_v49  ;;  %v5518_v49 = vld [vmem:[%s7342_s10] sm:$0xff] }
0x1a72   :  { %v5168_v36 = vpop.f32.mrf.mxu0 }
0x1a73   :  { %v7045_v51 = vadd.f32 %v5168_v36, %v4146_v50 }
0x1a74   :  { %v3011_v52 = vpop.f32.mrf.mxu0 }
0x1a75   :  { %v3012_v53 = vadd.f32 %v4146_v50, %v3011_v52 }
0x1a76   :  { %v7047_v54 = vpop.f32.mrf.mxu0 }
0x1a77   :  { %5240 = vmatprep.mubr.msk.f32.mxu0 %vm317_vm2, %v3012_v53  ;;  %v3261_v44 = vmul.f32 %v5515_v43, %v7047_v54 }
0x1a78   :  { %v7050_v55 = vpop.f32.mrf.mxu0 }
0x1a79   :  { %v3260_v46 = vmul.f32 %v5516_v45, %v7050_v55 }
0x1a7a   :  { %v5189_v56 = vpop.f32.mrf.mxu0 }
0x1a7b   :  { %v3263_v40 = vmul.f32 %v5513_v39, %v5189_v56 }
0x1a7c   :  { %v7052_v57 = vpop.f32.mrf.mxu0 }
0x1a7d   :  { %v3262_v42 = vmul.f32 %v5514_v41, %v7052_v57 }
0x1a7e   :  { %v5192_v58 = vpop.f32.mrf.mxu0 }
0x1a7f   :  { %v3265_v7 = vmul.f32 %v5511_v8, %v5192_v58 }
0x1a80   :  { %v3201_v59 = vpop.f32.mrf.mxu0 }
0x1a81   :  { %v3264_v37 = vmul.f32 %v5512_v9, %v3201_v59 }
0x1a82   :  { %v5195_v34 = vpop.f32.mrf.mxu0 }
0x1a83   :  { %v3267_v27 = vmul.f32 %v5509_v26, %v5195_v34  ;;  %v4196_v26 = vld [vmem:[%s7347_s0 + $0x1] ss:$0 sm:$0xff] }
0x1a84   :  { %v3211_v18 = vpop.f32.mrf.mxu0 }
0x1a85   :  { %v3266_v31 = vmul.f32 %v5510_v30, %v3211_v18 }
0x1a86   :  { %v5198_v16 = vpop.f32.mrf.mxu0 }
0x1a87   :  { %v3269_v23 = vmul.f32 %v5507_v21, %v5198_v16  ;;  %v4158_v21 = vld [vmem:[%s7346_s19 + $0x28] sm:$0xff] }
0x1a88   :  { %v3221_v33 = vpop.f32.mrf.mxu0 }
0x1a89   :  { %v3268_v25 = vmul.f32 %v5508_v24, %v3221_v33 }
0x1a8a   :  { %v5201_v60 = vpop.f32.mrf.mxu0 }
0x1a8b   :  { %v3271_v13 = vmul.f32 %v5505_v12, %v5201_v60 }
0x1a8c   :  { %v3231_v61 = vpop.f32.mrf.mxu0 }
0x1a8d   :  { %v3270_v20 = vmul.f32 %v5506_v14, %v3231_v61 }
0x1a8e   :  { %v5204_v62 = vpop.f32.mrf.mxu0 }
0x1a8f   :  { %v7073_v5 = vmul.f32 %v5503_v4, %v5204_v62  ;;  %v4160_v4 = vld [vmem:[%s7346_s19 + $0x38] sm:$0xff] }
0x1a90   :  { %v3241_v35 = vpop.f32.mrf.mxu0 }
0x1a91   :  { %v7082_v11 = vmul.f32 %v5504_v10, %v3241_v35 }
0x1a92   :  { %v5207_v32 = vpop.f32.mrf.mxu0 }
0x1a93   :  { %v7057_v0 = vmul.f32 %v5501_v63, %v5207_v32 }
0x1a94   :  { %v3251_v1 = vpop.f32.mrf.mxu0 }
0x1a95   :  { %v7062_v3 = vmul.f32 %v5502_v2, %v3251_v1  ;;  %5208 = vmatprep.subr.msk.mxu0 %vm317_vm2, %v7057_v0 }
0x1a96   :  { %5209 = vmatpush3.xpose.msk.msra.mxu0 %vm317_vm2, %v7057_v0 }
0x1a97   :  { %5210 = vmatprep.subr.msk.mxu0 %vm317_vm2, %v7062_v3 }
0x1a9a   :  { %5211 = vmatpush3.xpose.msk.msra.mxu0 %vm317_vm2, %v7062_v3 }
0x1a9b   :  { %5212 = vmatprep.subr.msk.mxu0 %vm317_vm2, %v7073_v5 }
0x1a9e   :  { %5213 = vmatpush3.xpose.msk.msra.mxu0 %vm317_vm2, %v7073_v5 }
0x1a9f   :  { %5214 = vmatprep.subr.msk.mxu0 %vm317_vm2, %v7082_v11 }
0x1aa2   :  { %5215 = vmatpush3.xpose.msk.msra.mxu0 %vm317_vm2, %v7082_v11 }
0x1aa3   :  { %5216 = vmatprep.subr.msk.mxu0 %vm317_vm2, %v3271_v13 }
0x1aa6   :  { %5217 = vmatpush3.xpose.msk.msra.mxu0 %vm317_vm2, %v3271_v13 }
0x1aa7   :  { %5218 = vmatprep.subr.msk.mxu0 %vm317_vm2, %v3270_v20 }
0x1aaa   :  { %5219 = vmatpush3.xpose.msk.msra.mxu0 %vm317_vm2, %v3270_v20 }
0x1aab   :  { %5220 = vmatprep.subr.msk.mxu0 %vm317_vm2, %v3269_v23 }
0x1aae   :  { %5221 = vmatpush3.xpose.msk.msra.mxu0 %vm317_vm2, %v3269_v23 }
0x1aaf   :  { %5222 = vmatprep.subr.msk.mxu0 %vm317_vm2, %v3268_v25 }
0x1ab2   :  { %5223 = vmatpush3.xpose.msk.msra.mxu0 %vm317_vm2, %v3268_v25 }
0x1ab3   :  { %5224 = vmatprep.subr.msk.mxu0 %vm317_vm2, %v3267_v27 }
0x1ab6   :  { %5225 = vmatpush3.xpose.msk.msra.mxu0 %vm317_vm2, %v3267_v27 }
0x1ab7   :  { %5226 = vmatprep.subr.msk.mxu0 %vm317_vm2, %v3266_v31 }
0x1aba   :  { %5227 = vmatpush3.xpose.msk.msra.mxu0 %vm317_vm2, %v3266_v31 }
0x1abb   :  { %5228 = vmatprep.subr.msk.mxu0 %vm317_vm2, %v3265_v7 }
0x1abe   :  { %5229 = vmatpush3.xpose.msk.msra.mxu0 %vm317_vm2, %v3265_v7 }
0x1abf   :  { %5230 = vmatprep.subr.msk.mxu0 %vm317_vm2, %v3264_v37 }
0x1ac2   :  { %5231 = vmatpush3.xpose.msk.msra.mxu0 %vm317_vm2, %v3264_v37 }
0x1ac3   :  { %5232 = vmatprep.subr.msk.mxu0 %vm317_vm2, %v3263_v40 }
0x1ac6   :  { %5233 = vmatpush3.xpose.msk.msra.mxu0 %vm317_vm2, %v3263_v40 }
0x1ac7   :  { %5234 = vmatprep.subr.msk.mxu0 %vm317_vm2, %v3262_v42 }
0x1aca   :  { %5235 = vmatpush3.xpose.msk.msra.mxu0 %vm317_vm2, %v3262_v42 }
0x1acb   :  { %5236 = vmatprep.subr.msk.mxu0 %vm317_vm2, %v3261_v44 }
0x1ace   :  { %5237 = vmatpush3.xpose.msk.msra.mxu0 %vm317_vm2, %v3261_v44 }
0x1acf   :  { %5238 = vmatprep.subr.msk.mxu0 %vm317_vm2, %v3260_v46 }
0x1ad2   :  { %5239 = vmatpush3.xpose.msk.msra.mxu0 %vm317_vm2, %v3260_v46 }
0x1ad3   :  { %5313 = vmatprep.subr.mxu0 %v4160_v4 }
0x1ad5   :  { %5241 = vmatmul.mubr.msk.f32.vlgmr.msra.gmra.mxu0 %vm317_vm2, %v7045_v51 }
0x1ad6   :  { %5314 = vmatpush3.msra.mxu0 %v4160_v4 }
0x1b95   :  { %v5242_v47 = vpop.f32.mrf.mxu0 }
0x1b96   :  { %v3402_v48 = vadd.f32 %v5517_v28, %v5242_v47 }
0x1b97   :  { %v3396_v38 = vpop.f32.mrf.mxu0 }
0x1b98   :  { %v3397_v50 = vadd.f32 %v5518_v49, %v3396_v38  ;;  %3407 = vmax.xlane.f32.xlu0 %v3402_v48  ;;  %v4200_v38 = vld [vmem:[%s7291_s24 + $0x28] sm:$0xff]  ;;  %v4199_v49 = vld [vmem:[%s7291_s24 + $0x20] sm:$0xff] }
0x1b9a   :  { %3405 = vmax.xlane.f32.xlu1 %v3397_v50 }
0x1bab   :  { %3524 = vrot.lane.b32.xlu1 %v7057_v0, %s7343_s30 }
0x1bae   :  { %3522 = vrot.lane.b32.xlu0 %v7062_v3, %s7343_s30 }
0x1baf   :  { %3520 = vrot.lane.b32.xlu1 %v7073_v5, %s7343_s30  ;;  %v4159_v5 = vld [vmem:[%s7346_s19 + $0x30] sm:$0xff] }
0x1bb0   :  { %5315 = vmatprep.subr.mxu0 %v4159_v5 }
0x1bb1   :  { %5316 = vmatpush3.msra.mxu0 %v4159_v5 }
0x1bb2   :  { %3516 = vrot.lane.b32.xlu0 %v3271_v13, %s7343_s30  ;;  %5317 = vmatprep.subr.mxu0 %v4158_v21 }
0x1bb3   :  { %3518 = vrot.lane.b32.xlu1 %v7082_v11, %s7343_s30  ;;  %5318 = vmatpush3.msra.mxu0 %v4158_v21 }
0x1bb6   :  { %3512 = vrot.lane.b32.xlu0 %v3269_v23, %s7343_s30  ;;  %v4157_v23 = vld [vmem:[%s7346_s19 + $0x20] sm:$0xff] }
0x1bb7   :  { %3514 = vrot.lane.b32.xlu1 %v3270_v20, %s7343_s30  ;;  %5319 = vmatprep.subr.mxu0 %v4157_v23 }
0x1bb8   :  { %5320 = vmatpush3.msra.mxu0 %v4157_v23 }
0x1bba   :  { %3508 = vrot.lane.b32.xlu0 %v3267_v27, %s7343_s30 }
0x1bbb   :  { %3510 = vrot.lane.b32.xlu1 %v3268_v25, %s7343_s30 }
0x1bbe   :  { %3504 = vrot.lane.b32.xlu0 %v3265_v7, %s7343_s30 }
0x1bbf   :  { %3506 = vrot.lane.b32.xlu1 %v3266_v31, %s7343_s30 }
0x1bc2   :  { %3500 = vrot.lane.b32.xlu0 %v3263_v40, %s7343_s30 }
0x1bc3   :  { %3502 = vrot.lane.b32.xlu1 %v3264_v37, %s7343_s30 }
0x1bc6   :  { %3496 = vrot.lane.b32.xlu0 %v3261_v44, %s7343_s30 }
0x1bc7   :  { %3498 = vrot.lane.b32.xlu1 %v3262_v42, %s7343_s30 }
0x1bcb   :  { %3494 = vrot.lane.b32.xlu1 %v3260_v46, %s7343_s30 }
0x1c21   :  { %v3408_v36 = vpop.xlane.xlu0 %3407 }
0x1c22   :  { %v3410_v51 = vsub.f32 %v3402_v48, %v3408_v36  ;;  %v4201_v48 = vld [vmem:[%s7291_s24 + $0x30] sm:$0xff] }
0x1c23   :  { %v3406_v52 = vpop.xlane.xlu1 %3405  ;;  %v4213_v36 = vld [vmem:[%s7293_s26 + $0x70] sm:$0xff] }
0x1c24   :  { %v3409_v53 = vsub.f32 %v3397_v50, %v3406_v52  ;;  %v3413_v54 = vmul.f32 1.442695, %v3410_v51  ;;  %v4214_v50 = vld [vmem:[%s7293_s26 + $0x78] sm:$0xff]  ;;  %v4212_v51 = vld [vmem:[%s7293_s26 + $0x68] sm:$0xff]  ;;  %v4211_v52 = vld [vmem:[%s7293_s26 + $0x60] sm:$0xff] }
0x1c25   :  { %v3523_v58 = vpop.permute.xlu0 %3522  ;;  %5335 = vmatprep.subr.mxu0 %v4214_v50 }
0x1c26   :  { %v3411_v55 = vmul.f32 1.442695, %v3409_v53 }
0x1c27   :  { %v3525_v56 = vpop.permute.xlu1 %3524 }
0x1c28   :  { %5401 = vpow2.f32 %v3411_v55  ;;  %5278 = vmatprep.subr.mxu1 %v3525_v56 }
0x1c29   :  { %5403 = vpow2.f32 %v3413_v54  ;;  %v3517_v34 = vpop.permute.xlu0 %3516 }
0x1c2b   :  { %v3521_v57 = vpop.permute.xlu1 %3520 }
0x1c2d   :  { %v3513_v60 = vpop.permute.xlu0 %3512 }
0x1c2f   :  { %v3519_v59 = vpop.permute.xlu1 %3518 }
0x1c31   :  { %v3509_v62 = vpop.permute.xlu0 %3508 }
0x1c33   :  { %v3515_v33 = vpop.permute.xlu1 %3514 }
0x1c35   :  { %v5402_v18 = vpop.eup %5401  ;;  %v3505_v32 = vpop.permute.xlu0 %3504 }
0x1c36   :  { %v5404_v16 = vpop.eup %5403  ;;  %5275 = vmatprep.mubr.f32.mxu1 %v5402_v18 }
0x1c37   :  { %5276 = vmatmul.mubr.f32.vlgmr.msra.gmra.mxu1 %v5404_v16  ;;  %v3511_v61 = vpop.permute.xlu1 %3510 }
0x1c38   :  { %5279 = vmatpush3.msra.mxu1 %v3525_v56 }
0x1c39   :  { %5280 = vmatprep.subr.mxu1 %v3523_v58  ;;  %v3501_v0 = vpop.permute.xlu0 %3500 }
0x1c3a   :  { %5281 = vmatpush3.msra.mxu1 %v3523_v58 }
0x1c3b   :  { %5282 = vmatprep.subr.mxu1 %v3521_v57  ;;  %v3507_v35 = vpop.permute.xlu1 %3506 }
0x1c3c   :  { %5283 = vmatpush3.msra.mxu1 %v3521_v57 }
0x1c3d   :  { %5284 = vmatprep.subr.mxu1 %v3519_v59  ;;  %v3497_v2 = vpop.permute.xlu0 %3496 }
0x1c3e   :  { %5285 = vmatpush3.msra.mxu1 %v3519_v59  ;;  %v3735_v59 = vrot.slane %v6959_v15, %v6529_v19 }
0x1c3f   :  { %5286 = vmatprep.subr.mxu1 %v3517_v34  ;;  %v3503_v63 = vpop.permute.xlu1 %3502 }
0x1c40   :  { %5287 = vmatpush3.msra.mxu1 %v3517_v34 }
0x1c41   :  { %5288 = vmatprep.subr.mxu1 %v3515_v33 }
0x1c42   :  { %5289 = vmatpush3.msra.mxu1 %v3515_v33 }
0x1c43   :  { %5290 = vmatprep.subr.mxu1 %v3513_v60  ;;  %v3499_v1 = vpop.permute.xlu1 %3498 }
0x1c44   :  { %5291 = vmatpush3.msra.mxu1 %v3513_v60 }
0x1c45   :  { %5292 = vmatprep.subr.mxu1 %v3511_v61 }
0x1c46   :  { %5293 = vmatpush3.msra.mxu1 %v3511_v61 }
0x1c47   :  { %5294 = vmatprep.subr.mxu1 %v3509_v62  ;;  %v3495_v3 = vpop.permute.xlu1 %3494 }
0x1c48   :  { %5295 = vmatpush3.msra.mxu1 %v3509_v62 }
0x1c49   :  { %5296 = vmatprep.subr.mxu1 %v3507_v35 }
0x1c4a   :  { %5297 = vmatpush3.msra.mxu1 %v3507_v35 }
0x1c4b   :  { %5298 = vmatprep.subr.mxu1 %v3505_v32 }
0x1c4c   :  { %5299 = vmatpush3.msra.mxu1 %v3505_v32 }
0x1c4d   :  { %5300 = vmatprep.subr.mxu1 %v3503_v63 }
0x1c4e   :  { %5301 = vmatpush3.msra.mxu1 %v3503_v63  ;;  %v4210_v63 = vld [vmem:[%s7293_s26 + $0x58] sm:$0xff] }
0x1c4f   :  { %5302 = vmatprep.subr.mxu1 %v3501_v0 }
0x1c50   :  { %5303 = vmatpush3.msra.mxu1 %v3501_v0  ;;  %v4208_v0 = vld [vmem:[%s7293_s26 + $0x48] sm:$0xff] }
0x1c51   :  { %5304 = vmatprep.subr.mxu1 %v3499_v1 }
0x1c52   :  { %5305 = vmatpush3.msra.mxu1 %v3499_v1  ;;  %v4207_v1 = vld [vmem:[%s7293_s26 + $0x40] sm:$0xff] }
0x1c53   :  { %5306 = vmatprep.subr.mxu1 %v3497_v2 }
0x1c54   :  { %5307 = vmatpush3.msra.mxu1 %v3497_v2  ;;  %v4204_v2 = vld [vmem:[%s7292_s25 + $0x1] ss:$0 sm:$0xff]  ;;  %s5544_s25 = smov [#allocation2]  }
0x1c55   :  { %5308 = vmatprep.subr.mxu1 %v3495_v3 }
0x1c56   :  { %5309 = vmatpush3.msra.mxu1 %v3495_v3 }
0x1cf7   :  { %v5277_v10 = vpop.f32.mrf.mxu1 }
0x1cf8   :  { %5405 = vrcp.f32 %v5277_v10 }
0x1cf9   :  { %v3481_v11 = vpop.f32.mrf.mxu1 }
0x1cfa   :  { %5407 = vrcp.f32 %v3481_v11 }
0x1d05   :  { %v5406_v12 = vpop.eup %5405 }
0x1d06   :  { %v3493_v20 = vmul.f32 %v5406_v12, %v5404_v16  ;;  %v3741_v16 = vrot.slane %v6964_v17, %v6529_v19  ;;  %v4209_v19 = vld [vmem:[%s7293_s26 + $0x50] sm:$0xff]  ;;  %s3985_s26 = sshll.u32 %s5544_s25, 4  ;;  %s3986_s26 = int_to_ptr.vmem [resolvable:$true] %s3985_s26 }
0x1d07   :  { %v5408_v13 = vpop.eup %5407  ;;  %p5524_p1 = scmp.lt.s32.totalorder %s3986_s26, %s3986_s26 }
0x1d08   :  { %v3492_v14 = vmul.f32 %v5408_v13, %v5402_v18  ;;  %v4216_v13 = vld [vmem:[%s7294_s27 + $0x1] ss:$0 sm:$0xff]  ;;  %s5519_s27 = scalar_lea.vmem %s3986_s26, 256 }
0x1d09   :  { %p5520_p0 = scmp.ne.s32.totalorder %s3986_s26, %s5519_s27  ;;  %p5525_p2 = scmp.lt.s32.totalorder %s5519_s27, %s5519_s27 }
0x1d0a   :  { %5310 = vmatprep.mubr.f32.mxu1 %v3492_v14 }
0x1d0b   :  { %5311 = vmatmul.mubr.f32.vlgmr.msra.gmra.mxu1 %v3493_v20  ;;  %p5526_p3 = por %p5525_p2, %p5524_p1 }
0x1d0d   :  { %p5527_p4 = pnand %p5526_p3, %p5520_p0 }
0x1dcb   :  { %v5312_v24 = vpop.f32.mrf.mxu1 }
0x1dcd   :  { %v3608_v25 = vpop.f32.mrf.mxu1 }
0x1dce   :  { %5321 = vmatprep.mubr.msk.f32.mxu0 %vm317_vm2, %v3608_v25 }
0x1dcf   :  { %5322 = vmatmul.mubr.msk.f32.vlgmr.msra.gmra.mxu0 %vm317_vm2, %v5312_v24 }
0x1dd0   :  { %5336 = vmatpush3.msra.mxu0 %v4214_v50 }
0x1dd1   :  { %5337 = vmatprep.subr.mxu0 %v4213_v36 }
0x1dd2   :  { %5338 = vmatpush3.msra.mxu0 %v4213_v36 }
0x1dd3   :  { %5339 = vmatprep.subr.mxu0 %v4212_v51 }
0x1dd4   :  { %5340 = vmatpush3.msra.mxu0 %v4212_v51 }
0x1dd5   :  { %5341 = vmatprep.subr.mxu0 %v4211_v52 }
0x1dd6   :  { %5342 = vmatpush3.msra.mxu0 %v4211_v52 }
0x1dd7   :  { %5343 = vmatprep.subr.mxu0 %v4210_v63 }
0x1dd8   :  { %5344 = vmatpush3.msra.mxu0 %v4210_v63 }
0x1dd9   :  { %5345 = vmatprep.subr.mxu0 %v4209_v19 }
0x1dda   :  { %5346 = vmatpush3.msra.mxu0 %v4209_v19 }
0x1ddb   :  { %5347 = vmatprep.subr.mxu0 %v4208_v0 }
0x1ddc   :  { %5348 = vmatpush3.msra.mxu0 %v4208_v0 }
0x1ddd   :  { %5349 = vmatprep.subr.mxu0 %v4207_v1 }
0x1dde   :  { %5350 = vmatpush3.msra.mxu0 %v4207_v1 }
0x1e8f   :  { %v5323_v27 = vpop.f32.mrf.mxu0 }
0x1e90   :  { %v3701_v30 = vadd.f32 %v5323_v27, %v4196_v26 }
0x1e91   :  { %v3695_v31 = vpop.f32.mrf.mxu0 }
0x1e92   :  { %v3696_v8 = vadd.f32 %v4196_v26, %v3695_v31  ;;  %v3705_v7 = vadd.f32 %v3701_v30, %v6974_v6 }
0x1e94   :  { %v3709_v9 = vsel %vm317_vm2, %v3705_v7, 0.0  ;;  %v3704_v37 = vadd.f32 %v3696_v8, %v6970_v29  ;;  %v4202_v29 = vld [vmem:[%s7291_s24 + $0x38] sm:$0xff] }
0x1e95   :  { %3710 = vadd.xlane.f32.xlu1 %v3709_v9  ;;  %5324 = vmatprep.subr.mxu1 %v4202_v29 }
0x1e96   :  { %v3706_v39 = vsel %vm317_vm2, %v3704_v37, 0.0  ;;  %5325 = vmatpush3.msra.mxu1 %v4202_v29 }
0x1e97   :  { %3707 = vadd.xlane.f32.xlu0 %v3706_v39  ;;  %5326 = vmatprep.subr.mxu1 %v4201_v48 }
0x1e98   :  { %5327 = vmatpush3.msra.mxu1 %v4201_v48 }
0x1e99   :  { %5328 = vmatprep.subr.mxu1 %v4200_v38 }
0x1e9a   :  { %5329 = vmatpush3.msra.mxu1 %v4200_v38  ;;  %v3975_v38 = vrot.slane %v6964_v17, %v6630_v22 }
0x1e9b   :  { %5330 = vmatprep.subr.mxu1 %v4199_v49 }
0x1e9c   :  { %5331 = vmatpush3.msra.mxu1 %v4199_v49 }
0x1f1e   :  { %v3711_v40 = vpop.xlane.xlu1 %3710 }
0x1f1f   :  { %v3713_v41 = vmul.f32 0.03125, %v3711_v40 }
0x1f20   :  { %v3708_v42 = vpop.xlane.xlu0 %3707 }
0x1f21   :  { %v3712_v43 = vmul.f32 0.03125, %v3708_v42  ;;  %v3715_v44 = vsub.f32 %v3705_v7, %v3713_v41 }
0x1f23   :  { %v3714_v45 = vsub.f32 %v3704_v37, %v3712_v43  ;;  %v3717_v28 = vmul.f32 %v3715_v44, %v3715_v44 }
0x1f25   :  { %v3716_v46 = vmul.f32 %v3714_v45, %v3714_v45  ;;  %v3721_v6 = vsel %vm317_vm2, %v3717_v28, 0.0 }
0x1f27   :  { %v3718_v47 = vsel %vm317_vm2, %v3716_v46, 0.0 }
0x1f28   :  { %3719 = vadd.xlane.f32.xlu0 %v3718_v47 }
0x1f2c   :  { %3722 = vadd.xlane.f32.xlu0 %v3721_v6  ;;  %v3969_v6 = vrot.slane %v6959_v15, %v6630_v22 }
0x1fb1   :  { %v3720_v53 = vpop.xlane.xlu0 %3719 }
0x1fb2   :  { %v3724_v54 = vmul.f32 0.03125, %v3720_v53 }
0x1fb4   :  { %v3726_v55 = vadd.f32 1e-06, %v3724_v54 }
0x1fb5   :  { %v3723_v56 = vpop.xlane.xlu0 %3722 }
0x1fb6   :  { %5409 = vrsqrt.f32 %v3726_v55  ;;  %v3725_v57 = vmul.f32 0.03125, %v3723_v56 }
0x1fb8   :  { %v3727_v58 = vadd.f32 1e-06, %v3725_v57 }
0x1fba   :  { %5411 = vrsqrt.f32 %v3727_v58 }
0x1fc3   :  { %v5410_v34 = vpop.eup %5409 }
0x1fc4   :  { %v3730_v18 = vmul.f32 %v5410_v34, %v3714_v45 }
0x1fc6   :  { %v3736_v33 = vmul.f32 %v3735_v59, %v3730_v18 }
0x1fc7   :  { %v5412_v60 = vpop.eup %5411 }
0x1fc8   :  { %v3731_v61 = vmul.f32 %v5412_v60, %v3715_v44  ;;  %v3742_v62 = vadd.f32 %v3741_v16, %v3736_v33 }
0x1fca   :  { %v3737_v35 = vmul.f32 %v3735_v59, %v3731_v61  ;;  %5332 = vmatprep.mubr.msk.f32.mxu1 %vm317_vm2, %v3742_v62 }
0x1fcc   :  { %v3743_v32 = vadd.f32 %v3741_v16, %v3737_v35 }
0x1fce   :  { %5333 = vmatmul.mubr.msk.f32.vlgmr.msra.gmra.mxu1 %vm317_vm2, %v3743_v32 }
0x208e   :  { %v5334_v3 = vpop.f32.mrf.mxu1 }
0x208f   :  { %v3835_v4 = vadd.f32 %v5334_v3, %v4204_v2 }
0x2090   :  { %v3829_v5 = vpop.f32.mrf.mxu1 }
0x2091   :  { %v3830_v10 = vadd.f32 %v4204_v2, %v3829_v5  ;;  %v3839_v12 = vmax.f32 %v3835_v4, 0.0 }
0x2093   :  { %v3838_v11 = vmax.f32 %v3830_v10, 0.0 }
0x2095   :  { %5351 = vmatprep.mubr.msk.f32.mxu0 %vm2064_vm4, %v3838_v11 }
0x2096   :  { %5352 = vmatmul.mubr.msk.f32.vlgmr.msra.gmra.mxu0 %vm2064_vm4, %v3839_v12 }
0x2156   :  { %v5353_v14 = vpop.f32.mrf.mxu0 }
0x2157   :  { %v3935_v20 = vadd.f32 %v5353_v14, %v4216_v13 }
0x2158   :  { %v3929_v21 = vpop.f32.mrf.mxu0 }
0x2159   :  { %v3939_v23 = vadd.f32 %v3935_v20, %v3743_v32  ;;  %v3930_v24 = vadd.f32 %v4216_v13, %v3929_v21 }
0x215b   :  { %v3943_v25 = vsel %vm317_vm2, %v3939_v23, 0.0  ;;  %v3938_v26 = vadd.f32 %v3930_v24, %v3742_v62 }
0x215c   :  { %3944 = vadd.xlane.f32.xlu0 %v3943_v25 }
0x215d   :  { %v3940_v27 = vsel %vm317_vm2, %v3938_v26, 0.0 }
0x215e   :  { %3941 = vadd.xlane.f32.xlu1 %v3940_v27 }
0x21e5   :  { %v3945_v30 = vpop.xlane.xlu0 %3944 }
0x21e6   :  { %v3947_v31 = vmul.f32 0.03125, %v3945_v30 }
0x21e7   :  { %v3942_v8 = vpop.xlane.xlu1 %3941 }
0x21e8   :  { %v3949_v7 = vsub.f32 %v3939_v23, %v3947_v31  ;;  %v3946_v9 = vmul.f32 0.03125, %v3942_v8 }
0x21ea   :  { %v3948_v37 = vsub.f32 %v3938_v26, %v3946_v9  ;;  %v3951_v39 = vmul.f32 %v3949_v7, %v3949_v7 }
0x21ec   :  { %v3955_v40 = vsel %vm317_vm2, %v3951_v39, 0.0  ;;  %v3950_v41 = vmul.f32 %v3948_v37, %v3948_v37 }
0x21ed   :  { %3956 = vadd.xlane.f32.xlu0 %v3955_v40 }
0x21ee   :  { %v3952_v42 = vsel %vm317_vm2, %v3950_v41, 0.0 }
0x21ef   :  { %3953 = vadd.xlane.f32.xlu1 %v3952_v42 }
0x2276   :  { %v3957_v43 = vpop.xlane.xlu0 %3956 }
0x2277   :  { %v3959_v44 = vmul.f32 0.03125, %v3957_v43 }
0x2278   :  { %v3954_v45 = vpop.xlane.xlu1 %3953 }
0x2279   :  { %v3961_v46 = vadd.f32 1e-06, %v3959_v44  ;;  %v3958_v47 = vmul.f32 0.03125, %v3954_v45 }
0x227b   :  { %5413 = vrsqrt.f32 %v3961_v46  ;;  %v3960_v28 = vadd.f32 1e-06, %v3958_v47 }
0x227d   :  { %5415 = vrsqrt.f32 %v3960_v28 }
0x2288   :  { %v5414_v29 = vpop.eup %5413 }
0x2289   :  { %v3965_v48 = vmul.f32 %v5414_v29, %v3949_v7 }
0x228a   :  { %v5416_v49 = vpop.eup %5415 }
0x228b   :  { %v3964_v50 = vmul.f32 %v5416_v49, %v3948_v37  ;;  %v3971_v36 = vmul.f32 %v3969_v6, %v3965_v48 }
0x228d   :  { %v3970_v51 = vmul.f32 %v3969_v6, %v3964_v50  ;;  %v3977_v52 = vadd.f32 %v3975_v38, %v3971_v36 }
0x228f   :  { %v3976_v53 = vadd.f32 %v3975_v38, %v3970_v51  ;;  %3979 = vst.msk [vmem:[#allocation2 + $0x8] sm:$0xff] %vm317_vm2, %v3977_v52 }
0x2291   :  { %3978 = vst.msk [vmem:[#allocation2] sm:$0xff] %vm317_vm2, %v3976_v53 }
0x2292   :  { %5530 = shalt.err (!%p5527_p4)
}
0x2293   :  { %s5545_s7 = smov 128   ;;  %s5546_s15 = smov 8  }
0x2294   :  { %s7348_s12 = sld [smem:[#allocation20_spill]] }
0x229a   :  { %3991 = dma.vmem_to_hbm [thread:$0]  %s3986_s26, 256, %s7348_s12, [#allocation3], %s5545_s7, %s5545_s7, %s5546_s15  }
0x229b   :  { %5539 = dma.done.wait [#allocation3], 256  }
0x229c   :  { %5540 = vsyncadd [#allocation3], 4294967040 }
0x229d   :  { %3995 = vsyncpa [#allocation3], 1 }

</bundles_post_ra>
